<compile_context>
chip_gen: v7x
topology: tpu7x:2x2x1
jax: 0.10.0
libtpu: 0.0.40
codegen_flags: <defaults>
</compile_context>

<pallas_src>
import functools

import jax
import jax.numpy as jnp
from jax.experimental import pallas as pl
from jax.experimental.pallas import tpu as pltpu

HIDDEN = 128              # LSTM hidden size (both layers)
FF = 256                  # Linear(input_dim -> 256)
NUM_GATES = 4             # i, f, g, o  (PyTorch gate order)
G = NUM_GATES * HIDDEN    # 512


def _round_up(n, m):
    return ((n + m - 1) // m) * m


def _chronos_fallback_kernel(
    x_ref,                    # [T*Bp, D]   f32, time-major rows (t*Bp + b)
    w1_ref, b1_ref,           # [D, FF] bf16, [1, FF] f32
    wih1_ref, bg1_ref,        # [FF, G] bf16, [1, G] f32
    whh1_ref,                 # [H, G]  bf16
    w2f_ref, bg2_ref,         # [2H, G] bf16  (concat [wih2; whh2]), [1, G] f32
    wout_ref, bout_ref,       # [H, Pp] bf16, [1, Pp] f32
    mean_ref,                 # [Bp, Pp] f32 output
    pre1_ref,                 # VMEM scratch [T*Bp, G] f32 (layer-1 input gates)
    *, t_steps, bp,
):
    # ---- timestep-independent work, batched over all T*Bp rows -----------
    x2 = x_ref[...]                                               # [T*Bp, D]
    y = jnp.dot(x2.astype(jnp.bfloat16), w1_ref[...],
                preferred_element_type=jnp.float32) + b1_ref[...]
    y = jnp.maximum(y, 0.0)                                       # [T*Bp, FF]
    pre1_ref[...] = jnp.dot(y.astype(jnp.bfloat16), wih1_ref[...],
                            preferred_element_type=jnp.float32) + bg1_ref[...]

    def gates_to_hc(gates, c_prev):
        # PyTorch gate order i, f, g, o; all elementwise math stays f32.
        i = jax.nn.sigmoid(gates[:, 0 * HIDDEN:1 * HIDDEN])
        f = jax.nn.sigmoid(gates[:, 1 * HIDDEN:2 * HIDDEN])
        g = jnp.tanh(gates[:, 2 * HIDDEN:3 * HIDDEN])
        o = jax.nn.sigmoid(gates[:, 3 * HIDDEN:4 * HIDDEN])
        c_new = f * c_prev + i * g
        h_new = o * jnp.tanh(c_new)
        return h_new, c_new

    # ---- sequential recurrence over time (only 2 MXU launches per step) ---
    def step(t, carry):
        h1, c1, h2, c2 = carry
        row = pl.multiple_of(t * bp, bp)                          # sublane-aligned
        g1 = pre1_ref[pl.ds(row, bp), :] + jnp.dot(
            h1.astype(jnp.bfloat16), whh1_ref[...],
            preferred_element_type=jnp.float32)
        h1, c1 = gates_to_hc(g1, c1)

        z = jnp.concatenate([h1, h2], axis=-1).astype(jnp.bfloat16)  # [Bp, 2H]
        g2 = jnp.dot(z, w2f_ref[...],
                     preferred_element_type=jnp.float32) + bg2_ref[...]
        h2, c2 = gates_to_hc(g2, c2)
        return h1, c1, h2, c2

    zeros = jnp.zeros((bp, HIDDEN), jnp.float32)
    h1, c1, h2, c2 = jax.lax.fori_loop(
        0, t_steps, step, (zeros, zeros, zeros, zeros), unroll=True)

    # ---- output head on the final layer-2 hidden state --------------------
    mean_ref[...] = jnp.dot(h2.astype(jnp.bfloat16), wout_ref[...],
                            preferred_element_type=jnp.float32) + bout_ref[...]


def chronos_fallback_forward(x, params):
    """x: [B, T, D] float32 -> dict(mean, variance, uncertainty)."""
    B, T, D = x.shape
    P = params["wout"].shape[1]
    Bp = _round_up(B, 8)       # sublane multiple: VPU/EUP rows come for free
    Pp = _round_up(P, 128)     # lane-dense output store

    # one bulk transpose+flatten on the host side; the kernel then indexes
    # timesteps in VMEM (no per-step DMAs).
    x_p = jnp.pad(x.astype(jnp.float32), ((0, Bp - B), (0, 0), (0, 0)))
    x_flat = jnp.transpose(x_p, (1, 0, 2)).reshape(T * Bp, D)     # [T*Bp, D]

    # bf16 weights for the MXU (f32 accumulation in-kernel); biases stay f32.
    w1 = params["w1"].astype(jnp.bfloat16)
    wih1 = params["wih1"].astype(jnp.bfloat16)
    whh1 = params["whh1"].astype(jnp.bfloat16)
    w2f = jnp.concatenate([params["wih2"], params["whh2"]],
                          axis=0).astype(jnp.bfloat16)            # [2H, G]
    wout_p = jnp.pad(params["wout"], ((0, 0), (0, Pp - P))).astype(jnp.bfloat16)
    bout_p = jnp.pad(params["bout"], ((0, 0), (0, Pp - P)))

    const2 = lambda i: (0, 0)
    grid_spec = pltpu.PrefetchScalarGridSpec(
        num_scalar_prefetch=0,
        grid=(1,),                                   # single invocation
        in_specs=[
            pl.BlockSpec((T * Bp, D), const2),       # x (time-major rows)
            pl.BlockSpec((D, FF), const2),           # w1
            pl.BlockSpec((1, FF), const2),           # b1
            pl.BlockSpec((FF, G), const2),           # wih1
            pl.BlockSpec((1, G), const2),            # bg1
            pl.BlockSpec((HIDDEN, G), const2),       # whh1
            pl.BlockSpec((2 * HIDDEN, G), const2),   # fused [wih2; whh2]
            pl.BlockSpec((1, G), const2),            # bg2
            pl.BlockSpec((HIDDEN, Pp), const2),      # wout (lane-padded)
            pl.BlockSpec((1, Pp), const2),           # bout (lane-padded)
        ],
        out_specs=pl.BlockSpec((Bp, Pp), const2),
        scratch_shapes=[pltpu.VMEM((T * Bp, G), jnp.float32)],    # pre-gates L1
    )

    kernel = functools.partial(_chronos_fallback_kernel, t_steps=T, bp=Bp)

    mean_p = pl.pallas_call(
        kernel,
        out_shape=jax.ShapeDtypeStruct((Bp, Pp), jnp.float32),
        grid_spec=grid_spec,
        compiler_params=pltpu.CompilerParams(
            dimension_semantics=("arbitrary",)),
    )(
        x_flat,
        w1, params["b1"],
        wih1, params["bg1"],
        whh1,
        w2f, params["bg2"],
        wout_p, bout_p,
    )

    mean = mean_p[:B, :P]
    uncertainty = jnp.full_like(mean, 0.1)
    return {"mean": mean, "variance": uncertainty ** 2, "uncertainty": uncertainty}


def make_params(input_dim, prediction_horizon, key):
    """Deterministic synthetic parameters matching the PyTorch module shapes.

    PyTorch stores Linear weight as [out, in] and LSTM weights as
    weight_ih_l{k}: [4H, in], weight_hh_l{k}: [4H, H]; we keep the transposed
    [in, out] layout (kernel does x @ W) and fold b_ih + b_hh into one bias.
    """
    ks = jax.random.split(key, 8)
    scale = 0.05
    return {
        # nn.Linear(input_dim, 256)
        "w1": scale * jax.random.normal(ks[0], (input_dim, FF), jnp.float32),
        "b1": scale * jax.random.normal(ks[1], (1, FF), jnp.float32),
        # nn.LSTM(256, 128) layer 0
        "wih1": scale * jax.random.normal(ks[2], (FF, G), jnp.float32),
        "whh1": scale * jax.random.normal(ks[3], (HIDDEN, G), jnp.float32),
        "bg1": jnp.zeros((1, G), jnp.float32),
        # nn.LSTM layer 1 (input 128)
        "wih2": scale * jax.random.normal(ks[4], (HIDDEN, G), jnp.float32),
        "whh2": scale * jax.random.normal(ks[5], (HIDDEN, G), jnp.float32),
        "bg2": jnp.zeros((1, G), jnp.float32),
        # nn.Linear(128, prediction_horizon)
        "wout": scale * jax.random.normal(ks[6], (HIDDEN, prediction_horizon),
                                          jnp.float32),
        "bout": scale * jax.random.normal(ks[7], (1, prediction_horizon),
                                          jnp.float32),
    }


if __name__ == "__main__":
    B, T = 2, 8
    input_dim = 4
    prediction_horizon = 8

    key = jax.random.PRNGKey(0)
    kx, kp = jax.random.split(key)
    x = jax.random.normal(kx, (B, T, input_dim), jnp.float32)
    params = make_params(input_dim, prediction_horizon, kp)

    out = chronos_fallback_forward(x, params)
    jax.block_until_ready(out["mean"])
    jax.block_until_ready(out["variance"])
    jax.block_until_ready(out["uncertainty"])

    assert out["mean"].shape == (B, prediction_horizon)
    assert out["variance"].shape == (B, prediction_horizon)
    assert out["uncertainty"].shape == (B, prediction_horizon)
    print("KERNEL_OK")
</pallas_src>

<mosaic_0001>
module attributes {stable_mosaic.version = 11 : i64} {
  func.func @_chronos_fallback_kernel(%arg0: i32, %arg1: memref<64x4xf32, #tpu.memory_space<vmem>>, %arg2: memref<4x256xbf16, #tpu.memory_space<vmem>>, %arg3: memref<1x256xf32, #tpu.memory_space<vmem>>, %arg4: memref<256x512xbf16, #tpu.memory_space<vmem>>, %arg5: memref<1x512xf32, #tpu.memory_space<vmem>>, %arg6: memref<128x512xbf16, #tpu.memory_space<vmem>>, %arg7: memref<256x512xbf16, #tpu.memory_space<vmem>>, %arg8: memref<1x512xf32, #tpu.memory_space<vmem>>, %arg9: memref<128x128xbf16, #tpu.memory_space<vmem>>, %arg10: memref<1x128xf32, #tpu.memory_space<vmem>>, %arg11: memref<8x128xf32, #tpu.memory_space<vmem>>, %arg12: memref<64x512xf32, #tpu.memory_space<vmem>>) attributes {dimension_semantics = [#tpu.dimension_semantics<arbitrary>], iteration_bounds = array<i64: 1>, scalar_prefetch = 0 : i64, scratch_operands = 1 : i64, tpu.core_type = #tpu.core_type<tc>, window_params = [{pipeline_mode = #tpu.pipeline_mode<synchronous>, transform_indices = @transform_0, window_bounds = array<i64: 64, 4>}, {pipeline_mode = #tpu.pipeline_mode<synchronous>, transform_indices = @transform_1, window_bounds = array<i64: 4, 256>}, {pipeline_mode = #tpu.pipeline_mode<synchronous>, transform_indices = @transform_2, window_bounds = array<i64: 1, 256>}, {pipeline_mode = #tpu.pipeline_mode<synchronous>, transform_indices = @transform_3, window_bounds = array<i64: 256, 512>}, {pipeline_mode = #tpu.pipeline_mode<synchronous>, transform_indices = @transform_4, window_bounds = array<i64: 1, 512>}, {pipeline_mode = #tpu.pipeline_mode<synchronous>, transform_indices = @transform_5, window_bounds = array<i64: 128, 512>}, {pipeline_mode = #tpu.pipeline_mode<synchronous>, transform_indices = @transform_6, window_bounds = array<i64: 256, 512>}, {pipeline_mode = #tpu.pipeline_mode<synchronous>, transform_indices = @transform_7, window_bounds = array<i64: 1, 512>}, {pipeline_mode = #tpu.pipeline_mode<synchronous>, transform_indices = @transform_8, window_bounds = array<i64: 128, 128>}, {pipeline_mode = #tpu.pipeline_mode<synchronous>, transform_indices = @transform_9, window_bounds = array<i64: 1, 128>}, {pipeline_mode = #tpu.pipeline_mode<synchronous>, transform_indices = @transform_10, window_bounds = array<i64: 8, 128>}]} {
    %c0 = arith.constant 0 : index
    %c0_0 = arith.constant 0 : index
    %0 = vector.load %arg1[%c0, %c0_0] : memref<64x4xf32, #tpu.memory_space<vmem>>, vector<64x4xf32>
    %1 = arith.truncf %0 : vector<64x4xf32> to vector<64x4xbf16>
    %c0_1 = arith.constant 0 : index
    %c0_2 = arith.constant 0 : index
    %2 = vector.load %arg2[%c0_1, %c0_2] : memref<4x256xbf16, #tpu.memory_space<vmem>>, vector<4x256xbf16>
    %cst = arith.constant dense<0.000000e+00> : vector<64x256xf32>
    %3 = tpu.matmul %1, %2, %cst {dimension_numbers = #tpu.dot_dimension_numbers<[1], [0], [0], [1], [0, 0, 1, 1], [], []>} : vector<64x4xbf16>, vector<4x256xbf16>, vector<64x256xf32> -> vector<64x256xf32>
    %c0_3 = arith.constant 0 : index
    %c0_4 = arith.constant 0 : index
    %4 = vector.load %arg3[%c0_3, %c0_4] : memref<1x256xf32, #tpu.memory_space<vmem>>, vector<1x256xf32>
    %5 = vector.broadcast %4 : vector<1x256xf32> to vector<64x256xf32>
    %6 = arith.addf %3, %5 : vector<64x256xf32>
    %cst_5 = arith.constant 0.000000e+00 : f32
    %7 = vector.broadcast %cst_5 : f32 to vector<64x256xf32>
    %8 = arith.maximumf %6, %7 : vector<64x256xf32>
    %9 = arith.truncf %8 : vector<64x256xf32> to vector<64x256xbf16>
    %c0_6 = arith.constant 0 : index
    %c0_7 = arith.constant 0 : index
    %10 = vector.load %arg4[%c0_6, %c0_7] : memref<256x512xbf16, #tpu.memory_space<vmem>>, vector<256x512xbf16>
    %cst_8 = arith.constant dense<0.000000e+00> : vector<64x512xf32>
    %11 = tpu.matmul %9, %10, %cst_8 {dimension_numbers = #tpu.dot_dimension_numbers<[1], [0], [0], [1], [0, 0, 1, 1], [], []>} : vector<64x256xbf16>, vector<256x512xbf16>, vector<64x512xf32> -> vector<64x512xf32>
    %c0_9 = arith.constant 0 : index
    %c0_10 = arith.constant 0 : index
    %12 = vector.load %arg5[%c0_9, %c0_10] : memref<1x512xf32, #tpu.memory_space<vmem>>, vector<1x512xf32>
    %13 = vector.broadcast %12 : vector<1x512xf32> to vector<64x512xf32>
    %14 = arith.addf %11, %13 : vector<64x512xf32>
    %c0_11 = arith.constant 0 : index
    %c0_12 = arith.constant 0 : index
    %15 = vector.load %arg12[%c0_11, %c0_12] : memref<64x512xf32, #tpu.memory_space<vmem>>, vector<64x512xf32>
    tpu.vector_store %arg12[%c0_11, %c0_12], %14 {strides = array<i32>} : memref<64x512xf32, #tpu.memory_space<vmem>>, vector<64x512xf32>,
    %cst_13 = arith.constant 0.000000e+00 : f32
    %16 = vector.broadcast %cst_13 : f32 to vector<8x128xf32>
    %c0_i32 = arith.constant 0 : i32
    %c8_i32 = arith.constant 8 : i32
    %17 = arith.muli %c0_i32, %c8_i32 : i32
    %18 = tpu.assume_multiple %17, 8 : i32
    %19 = arith.index_cast %18 : i32 to index
    %c0_14 = arith.constant 0 : index
    %20 = vector.load %arg12[%19, %c0_14] : memref<64x512xf32, #tpu.memory_space<vmem>>, vector<8x512xf32>
    %21 = arith.truncf %16 : vector<8x128xf32> to vector<8x128xbf16>
    %c0_15 = arith.constant 0 : index
    %c0_16 = arith.constant 0 : index
    %22 = vector.load %arg6[%c0_15, %c0_16] : memref<128x512xbf16, #tpu.memory_space<vmem>>, vector<128x512xbf16>
    %cst_17 = arith.constant dense<0.000000e+00> : vector<8x512xf32>
    %23 = tpu.matmul %21, %22, %cst_17 {dimension_numbers = #tpu.dot_dimension_numbers<[1], [0], [0], [1], [0, 0, 1, 1], [], []>} : vector<8x128xbf16>, vector<128x512xbf16>, vector<8x512xf32> -> vector<8x512xf32>
    %24 = arith.addf %20, %23 : vector<8x512xf32>
    %25 = vector.extract_strided_slice %24 {offsets = [0, 0], sizes = [8, 128], strides = [1, 1]} : vector<8x512xf32> to vector<8x128xf32>
    %26 = arith.negf %25 : vector<8x128xf32>
    %27 = math.exp %26 : vector<8x128xf32>
    %cst_18 = arith.constant 1.000000e+00 : f32
    %28 = vector.broadcast %cst_18 : f32 to vector<8x128xf32>
    %29 = arith.addf %28, %27 : vector<8x128xf32>
    %30 = arith.divf %28, %29 : vector<8x128xf32>
    %31 = vector.extract_strided_slice %24 {offsets = [0, 128], sizes = [8, 128], strides = [1, 1]} : vector<8x512xf32> to vector<8x128xf32>
    %32 = arith.negf %31 : vector<8x128xf32>
    %33 = math.exp %32 : vector<8x128xf32>
    %cst_19 = arith.constant 1.000000e+00 : f32
    %34 = vector.broadcast %cst_19 : f32 to vector<8x128xf32>
    %35 = arith.addf %34, %33 : vector<8x128xf32>
    %36 = arith.divf %34, %35 : vector<8x128xf32>
    %37 = vector.extract_strided_slice %24 {offsets = [0, 256], sizes = [8, 128], strides = [1, 1]} : vector<8x512xf32> to vector<8x128xf32>
    %38 = math.tanh %37 : vector<8x128xf32>
    %39 = vector.extract_strided_slice %24 {offsets = [0, 384], sizes = [8, 128], strides = [1, 1]} : vector<8x512xf32> to vector<8x128xf32>
    %40 = arith.negf %39 : vector<8x128xf32>
    %41 = math.exp %40 : vector<8x128xf32>
    %cst_20 = arith.constant 1.000000e+00 : f32
    %42 = vector.broadcast %cst_20 : f32 to vector<8x128xf32>
    %43 = arith.addf %42, %41 : vector<8x128xf32>
    %44 = arith.divf %42, %43 : vector<8x128xf32>
    %45 = arith.mulf %36, %16 : vector<8x128xf32>
    %46 = arith.mulf %30, %38 : vector<8x128xf32>
    %47 = arith.addf %45, %46 : vector<8x128xf32>
    %48 = math.tanh %47 : vector<8x128xf32>
    %49 = arith.mulf %44, %48 : vector<8x128xf32>
    %50 = tpu.concatenate %49, %16 in 1 : vector<8x128xf32>, vector<8x128xf32> -> vector<8x256xf32>
    %51 = arith.truncf %50 : vector<8x256xf32> to vector<8x256xbf16>
    %c0_21 = arith.constant 0 : index
    %c0_22 = arith.constant 0 : index
    %52 = vector.load %arg7[%c0_21, %c0_22] : memref<256x512xbf16, #tpu.memory_space<vmem>>, vector<256x512xbf16>
    %cst_23 = arith.constant dense<0.000000e+00> : vector<8x512xf32>
    %53 = tpu.matmul %51, %52, %cst_23 {dimension_numbers = #tpu.dot_dimension_numbers<[1], [0], [0], [1], [0, 0, 1, 1], [], []>} : vector<8x256xbf16>, vector<256x512xbf16>, vector<8x512xf32> -> vector<8x512xf32>
    %c0_24 = arith.constant 0 : index
    %c0_25 = arith.constant 0 : index
    %54 = vector.load %arg8[%c0_24, %c0_25] : memref<1x512xf32, #tpu.memory_space<vmem>>, vector<1x512xf32>
    %55 = vector.broadcast %54 : vector<1x512xf32> to vector<8x512xf32>
    %56 = arith.addf %53, %55 : vector<8x512xf32>
    %57 = vector.extract_strided_slice %56 {offsets = [0, 0], sizes = [8, 128], strides = [1, 1]} : vector<8x512xf32> to vector<8x128xf32>
    %58 = arith.negf %57 : vector<8x128xf32>
    %59 = math.exp %58 : vector<8x128xf32>
    %cst_26 = arith.constant 1.000000e+00 : f32
    %60 = vector.broadcast %cst_26 : f32 to vector<8x128xf32>
    %61 = arith.addf %60, %59 : vector<8x128xf32>
    %62 = arith.divf %60, %61 : vector<8x128xf32>
    %63 = vector.extract_strided_slice %56 {offsets = [0, 128], sizes = [8, 128], strides = [1, 1]} : vector<8x512xf32> to vector<8x128xf32>
    %64 = arith.negf %63 : vector<8x128xf32>
    %65 = math.exp %64 : vector<8x128xf32>
    %cst_27 = arith.constant 1.000000e+00 : f32
    %66 = vector.broadcast %cst_27 : f32 to vector<8x128xf32>
    %67 = arith.addf %66, %65 : vector<8x128xf32>
    %68 = arith.divf %66, %67 : vector<8x128xf32>
    %69 = vector.extract_strided_slice %56 {offsets = [0, 256], sizes = [8, 128], strides = [1, 1]} : vector<8x512xf32> to vector<8x128xf32>
    %70 = math.tanh %69 : vector<8x128xf32>
    %71 = vector.extract_strided_slice %56 {offsets = [0, 384], sizes = [8, 128], strides = [1, 1]} : vector<8x512xf32> to vector<8x128xf32>
    %72 = arith.negf %71 : vector<8x128xf32>
    %73 = math.exp %72 : vector<8x128xf32>
    %cst_28 = arith.constant 1.000000e+00 : f32
    %74 = vector.broadcast %cst_28 : f32 to vector<8x128xf32>
    %75 = arith.addf %74, %73 : vector<8x128xf32>
    %76 = arith.divf %74, %75 : vector<8x128xf32>
    %77 = arith.mulf %68, %16 : vector<8x128xf32>
    %78 = arith.mulf %62, %70 : vector<8x128xf32>
    %79 = arith.addf %77, %78 : vector<8x128xf32>
    %80 = math.tanh %79 : vector<8x128xf32>
    %81 = arith.mulf %76, %80 : vector<8x128xf32>
    %c1_i32 = arith.constant 1 : i32
    %c8_i32_29 = arith.constant 8 : i32
    %82 = arith.muli %c1_i32, %c8_i32_29 : i32
    %83 = tpu.assume_multiple %82, 8 : i32
    %84 = arith.index_cast %83 : i32 to index
    %c0_30 = arith.constant 0 : index
    %85 = vector.load %arg12[%84, %c0_30] : memref<64x512xf32, #tpu.memory_space<vmem>>, vector<8x512xf32>
    %86 = arith.truncf %49 : vector<8x128xf32> to vector<8x128xbf16>
    %c0_31 = arith.constant 0 : index
    %c0_32 = arith.constant 0 : index
    %87 = vector.load %arg6[%c0_31, %c0_32] : memref<128x512xbf16, #tpu.memory_space<vmem>>, vector<128x512xbf16>
    %cst_33 = arith.constant dense<0.000000e+00> : vector<8x512xf32>
    %88 = tpu.matmul %86, %87, %cst_33 {dimension_numbers = #tpu.dot_dimension_numbers<[1], [0], [0], [1], [0, 0, 1, 1], [], []>} : vector<8x128xbf16>, vector<128x512xbf16>, vector<8x512xf32> -> vector<8x512xf32>
    %89 = arith.addf %85, %88 : vector<8x512xf32>
    %90 = vector.extract_strided_slice %89 {offsets = [0, 0], sizes = [8, 128], strides = [1, 1]} : vector<8x512xf32> to vector<8x128xf32>
    %91 = arith.negf %90 : vector<8x128xf32>
    %92 = math.exp %91 : vector<8x128xf32>
    %cst_34 = arith.constant 1.000000e+00 : f32
    %93 = vector.broadcast %cst_34 : f32 to vector<8x128xf32>
    %94 = arith.addf %93, %92 : vector<8x128xf32>
    %95 = arith.divf %93, %94 : vector<8x128xf32>
    %96 = vector.extract_strided_slice %89 {offsets = [0, 128], sizes = [8, 128], strides = [1, 1]} : vector<8x512xf32> to vector<8x128xf32>
    %97 = arith.negf %96 : vector<8x128xf32>
    %98 = math.exp %97 : vector<8x128xf32>
    %cst_35 = arith.constant 1.000000e+00 : f32
    %99 = vector.broadcast %cst_35 : f32 to vector<8x128xf32>
    %100 = arith.addf %99, %98 : vector<8x128xf32>
    %101 = arith.divf %99, %100 : vector<8x128xf32>
    %102 = vector.extract_strided_slice %89 {offsets = [0, 256], sizes = [8, 128], strides = [1, 1]} : vector<8x512xf32> to vector<8x128xf32>
    %103 = math.tanh %102 : vector<8x128xf32>
    %104 = vector.extract_strided_slice %89 {offsets = [0, 384], sizes = [8, 128], strides = [1, 1]} : vector<8x512xf32> to vector<8x128xf32>
    %105 = arith.negf %104 : vector<8x128xf32>
    %106 = math.exp %105 : vector<8x128xf32>
    %cst_36 = arith.constant 1.000000e+00 : f32
    %107 = vector.broadcast %cst_36 : f32 to vector<8x128xf32>
    %108 = arith.addf %107, %106 : vector<8x128xf32>
    %109 = arith.divf %107, %108 : vector<8x128xf32>
    %110 = arith.mulf %101, %47 : vector<8x128xf32>
    %111 = arith.mulf %95, %103 : vector<8x128xf32>
    %112 = arith.addf %110, %111 : vector<8x128xf32>
    %113 = math.tanh %112 : vector<8x128xf32>
    %114 = arith.mulf %109, %113 : vector<8x128xf32>
    %115 = tpu.concatenate %114, %81 in 1 : vector<8x128xf32>, vector<8x128xf32> -> vector<8x256xf32>
    %116 = arith.truncf %115 : vector<8x256xf32> to vector<8x256xbf16>
    %c0_37 = arith.constant 0 : index
    %c0_38 = arith.constant 0 : index
    %117 = vector.load %arg7[%c0_37, %c0_38] : memref<256x512xbf16, #tpu.memory_space<vmem>>, vector<256x512xbf16>
    %cst_39 = arith.constant dense<0.000000e+00> : vector<8x512xf32>
    %118 = tpu.matmul %116, %117, %cst_39 {dimension_numbers = #tpu.dot_dimension_numbers<[1], [0], [0], [1], [0, 0, 1, 1], [], []>} : vector<8x256xbf16>, vector<256x512xbf16>, vector<8x512xf32> -> vector<8x512xf32>
    %c0_40 = arith.constant 0 : index
    %c0_41 = arith.constant 0 : index
    %119 = vector.load %arg8[%c0_40, %c0_41] : memref<1x512xf32, #tpu.memory_space<vmem>>, vector<1x512xf32>
    %120 = vector.broadcast %119 : vector<1x512xf32> to vector<8x512xf32>
    %121 = arith.addf %118, %120 : vector<8x512xf32>
    %122 = vector.extract_strided_slice %121 {offsets = [0, 0], sizes = [8, 128], strides = [1, 1]} : vector<8x512xf32> to vector<8x128xf32>
    %123 = arith.negf %122 : vector<8x128xf32>
    %124 = math.exp %123 : vector<8x128xf32>
    %cst_42 = arith.constant 1.000000e+00 : f32
    %125 = vector.broadcast %cst_42 : f32 to vector<8x128xf32>
    %126 = arith.addf %125, %124 : vector<8x128xf32>
    %127 = arith.divf %125, %126 : vector<8x128xf32>
    %128 = vector.extract_strided_slice %121 {offsets = [0, 128], sizes = [8, 128], strides = [1, 1]} : vector<8x512xf32> to vector<8x128xf32>
    %129 = arith.negf %128 : vector<8x128xf32>
    %130 = math.exp %129 : vector<8x128xf32>
    %cst_43 = arith.constant 1.000000e+00 : f32
    %131 = vector.broadcast %cst_43 : f32 to vector<8x128xf32>
    %132 = arith.addf %131, %130 : vector<8x128xf32>
    %133 = arith.divf %131, %132 : vector<8x128xf32>
    %134 = vector.extract_strided_slice %121 {offsets = [0, 256], sizes = [8, 128], strides = [1, 1]} : vector<8x512xf32> to vector<8x128xf32>
    %135 = math.tanh %134 : vector<8x128xf32>
    %136 = vector.extract_strided_slice %121 {offsets = [0, 384], sizes = [8, 128], strides = [1, 1]} : vector<8x512xf32> to vector<8x128xf32>
    %137 = arith.negf %136 : vector<8x128xf32>
    %138 = math.exp %137 : vector<8x128xf32>
    %cst_44 = arith.constant 1.000000e+00 : f32
    %139 = vector.broadcast %cst_44 : f32 to vector<8x128xf32>
    %140 = arith.addf %139, %138 : vector<8x128xf32>
    %141 = arith.divf %139, %140 : vector<8x128xf32>
    %142 = arith.mulf %133, %79 : vector<8x128xf32>
    %143 = arith.mulf %127, %135 : vector<8x128xf32>
    %144 = arith.addf %142, %143 : vector<8x128xf32>
    %145 = math.tanh %144 : vector<8x128xf32>
    %146 = arith.mulf %141, %145 : vector<8x128xf32>
    %c2_i32 = arith.constant 2 : i32
    %c8_i32_45 = arith.constant 8 : i32
    %147 = arith.muli %c2_i32, %c8_i32_45 : i32
    %148 = tpu.assume_multiple %147, 8 : i32
    %149 = arith.index_cast %148 : i32 to index
    %c0_46 = arith.constant 0 : index
    %150 = vector.load %arg12[%149, %c0_46] : memref<64x512xf32, #tpu.memory_space<vmem>>, vector<8x512xf32>
    %151 = arith.truncf %114 : vector<8x128xf32> to vector<8x128xbf16>
    %c0_47 = arith.constant 0 : index
    %c0_48 = arith.constant 0 : index
    %152 = vector.load %arg6[%c0_47, %c0_48] : memref<128x512xbf16, #tpu.memory_space<vmem>>, vector<128x512xbf16>
    %cst_49 = arith.constant dense<0.000000e+00> : vector<8x512xf32>
    %153 = tpu.matmul %151, %152, %cst_49 {dimension_numbers = #tpu.dot_dimension_numbers<[1], [0], [0], [1], [0, 0, 1, 1], [], []>} : vector<8x128xbf16>, vector<128x512xbf16>, vector<8x512xf32> -> vector<8x512xf32>
    %154 = arith.addf %150, %153 : vector<8x512xf32>
    %155 = vector.extract_strided_slice %154 {offsets = [0, 0], sizes = [8, 128], strides = [1, 1]} : vector<8x512xf32> to vector<8x128xf32>
    %156 = arith.negf %155 : vector<8x128xf32>
    %157 = math.exp %156 : vector<8x128xf32>
    %cst_50 = arith.constant 1.000000e+00 : f32
    %158 = vector.broadcast %cst_50 : f32 to vector<8x128xf32>
    %159 = arith.addf %158, %157 : vector<8x128xf32>
    %160 = arith.divf %158, %159 : vector<8x128xf32>
    %161 = vector.extract_strided_slice %154 {offsets = [0, 128], sizes = [8, 128], strides = [1, 1]} : vector<8x512xf32> to vector<8x128xf32>
    %162 = arith.negf %161 : vector<8x128xf32>
    %163 = math.exp %162 : vector<8x128xf32>
    %cst_51 = arith.constant 1.000000e+00 : f32
    %164 = vector.broadcast %cst_51 : f32 to vector<8x128xf32>
    %165 = arith.addf %164, %163 : vector<8x128xf32>
    %166 = arith.divf %164, %165 : vector<8x128xf32>
    %167 = vector.extract_strided_slice %154 {offsets = [0, 256], sizes = [8, 128], strides = [1, 1]} : vector<8x512xf32> to vector<8x128xf32>
    %168 = math.tanh %167 : vector<8x128xf32>
    %169 = vector.extract_strided_slice %154 {offsets = [0, 384], sizes = [8, 128], strides = [1, 1]} : vector<8x512xf32> to vector<8x128xf32>
    %170 = arith.negf %169 : vector<8x128xf32>
    %171 = math.exp %170 : vector<8x128xf32>
    %cst_52 = arith.constant 1.000000e+00 : f32
    %172 = vector.broadcast %cst_52 : f32 to vector<8x128xf32>
    %173 = arith.addf %172, %171 : vector<8x128xf32>
    %174 = arith.divf %172, %173 : vector<8x128xf32>
    %175 = arith.mulf %166, %112 : vector<8x128xf32>
    %176 = arith.mulf %160, %168 : vector<8x128xf32>
    %177 = arith.addf %175, %176 : vector<8x128xf32>
    %178 = math.tanh %177 : vector<8x128xf32>
    %179 = arith.mulf %174, %178 : vector<8x128xf32>
    %180 = tpu.concatenate %179, %146 in 1 : vector<8x128xf32>, vector<8x128xf32> -> vector<8x256xf32>
    %181 = arith.truncf %180 : vector<8x256xf32> to vector<8x256xbf16>
    %c0_53 = arith.constant 0 : index
    %c0_54 = arith.constant 0 : index
    %182 = vector.load %arg7[%c0_53, %c0_54] : memref<256x512xbf16, #tpu.memory_space<vmem>>, vector<256x512xbf16>
    %cst_55 = arith.constant dense<0.000000e+00> : vector<8x512xf32>
    %183 = tpu.matmul %181, %182, %cst_55 {dimension_numbers = #tpu.dot_dimension_numbers<[1], [0], [0], [1], [0, 0, 1, 1], [], []>} : vector<8x256xbf16>, vector<256x512xbf16>, vector<8x512xf32> -> vector<8x512xf32>
    %c0_56 = arith.constant 0 : index
    %c0_57 = arith.constant 0 : index
    %184 = vector.load %arg8[%c0_56, %c0_57] : memref<1x512xf32, #tpu.memory_space<vmem>>, vector<1x512xf32>
    %185 = vector.broadcast %184 : vector<1x512xf32> to vector<8x512xf32>
    %186 = arith.addf %183, %185 : vector<8x512xf32>
    %187 = vector.extract_strided_slice %186 {offsets = [0, 0], sizes = [8, 128], strides = [1, 1]} : vector<8x512xf32> to vector<8x128xf32>
    %188 = arith.negf %187 : vector<8x128xf32>
    %189 = math.exp %188 : vector<8x128xf32>
    %cst_58 = arith.constant 1.000000e+00 : f32
    %190 = vector.broadcast %cst_58 : f32 to vector<8x128xf32>
    %191 = arith.addf %190, %189 : vector<8x128xf32>
    %192 = arith.divf %190, %191 : vector<8x128xf32>
    %193 = vector.extract_strided_slice %186 {offsets = [0, 128], sizes = [8, 128], strides = [1, 1]} : vector<8x512xf32> to vector<8x128xf32>
    %194 = arith.negf %193 : vector<8x128xf32>
    %195 = math.exp %194 : vector<8x128xf32>
    %cst_59 = arith.constant 1.000000e+00 : f32
    %196 = vector.broadcast %cst_59 : f32 to vector<8x128xf32>
    %197 = arith.addf %196, %195 : vector<8x128xf32>
    %198 = arith.divf %196, %197 : vector<8x128xf32>
    %199 = vector.extract_strided_slice %186 {offsets = [0, 256], sizes = [8, 128], strides = [1, 1]} : vector<8x512xf32> to vector<8x128xf32>
    %200 = math.tanh %199 : vector<8x128xf32>
    %201 = vector.extract_strided_slice %186 {offsets = [0, 384], sizes = [8, 128], strides = [1, 1]} : vector<8x512xf32> to vector<8x128xf32>
    %202 = arith.negf %201 : vector<8x128xf32>
    %203 = math.exp %202 : vector<8x128xf32>
    %cst_60 = arith.constant 1.000000e+00 : f32
    %204 = vector.broadcast %cst_60 : f32 to vector<8x128xf32>
    %205 = arith.addf %204, %203 : vector<8x128xf32>
    %206 = arith.divf %204, %205 : vector<8x128xf32>
    %207 = arith.mulf %198, %144 : vector<8x128xf32>
    %208 = arith.mulf %192, %200 : vector<8x128xf32>
    %209 = arith.addf %207, %208 : vector<8x128xf32>
    %210 = math.tanh %209 : vector<8x128xf32>
    %211 = arith.mulf %206, %210 : vector<8x128xf32>
    %c3_i32 = arith.constant 3 : i32
    %c8_i32_61 = arith.constant 8 : i32
    %212 = arith.muli %c3_i32, %c8_i32_61 : i32
    %213 = tpu.assume_multiple %212, 8 : i32
    %214 = arith.index_cast %213 : i32 to index
    %c0_62 = arith.constant 0 : index
    %215 = vector.load %arg12[%214, %c0_62] : memref<64x512xf32, #tpu.memory_space<vmem>>, vector<8x512xf32>
    %216 = arith.truncf %179 : vector<8x128xf32> to vector<8x128xbf16>
    %c0_63 = arith.constant 0 : index
    %c0_64 = arith.constant 0 : index
    %217 = vector.load %arg6[%c0_63, %c0_64] : memref<128x512xbf16, #tpu.memory_space<vmem>>, vector<128x512xbf16>
    %cst_65 = arith.constant dense<0.000000e+00> : vector<8x512xf32>
    %218 = tpu.matmul %216, %217, %cst_65 {dimension_numbers = #tpu.dot_dimension_numbers<[1], [0], [0], [1], [0, 0, 1, 1], [], []>} : vector<8x128xbf16>, vector<128x512xbf16>, vector<8x512xf32> -> vector<8x512xf32>
    %219 = arith.addf %215, %218 : vector<8x512xf32>
    %220 = vector.extract_strided_slice %219 {offsets = [0, 0], sizes = [8, 128], strides = [1, 1]} : vector<8x512xf32> to vector<8x128xf32>
    %221 = arith.negf %220 : vector<8x128xf32>
    %222 = math.exp %221 : vector<8x128xf32>
    %cst_66 = arith.constant 1.000000e+00 : f32
    %223 = vector.broadcast %cst_66 : f32 to vector<8x128xf32>
    %224 = arith.addf %223, %222 : vector<8x128xf32>
    %225 = arith.divf %223, %224 : vector<8x128xf32>
    %226 = vector.extract_strided_slice %219 {offsets = [0, 128], sizes = [8, 128], strides = [1, 1]} : vector<8x512xf32> to vector<8x128xf32>
    %227 = arith.negf %226 : vector<8x128xf32>
    %228 = math.exp %227 : vector<8x128xf32>
    %cst_67 = arith.constant 1.000000e+00 : f32
    %229 = vector.broadcast %cst_67 : f32 to vector<8x128xf32>
    %230 = arith.addf %229, %228 : vector<8x128xf32>
    %231 = arith.divf %229, %230 : vector<8x128xf32>
    %232 = vector.extract_strided_slice %219 {offsets = [0, 256], sizes = [8, 128], strides = [1, 1]} : vector<8x512xf32> to vector<8x128xf32>
    %233 = math.tanh %232 : vector<8x128xf32>
    %234 = vector.extract_strided_slice %219 {offsets = [0, 384], sizes = [8, 128], strides = [1, 1]} : vector<8x512xf32> to vector<8x128xf32>
    %235 = arith.negf %234 : vector<8x128xf32>
    %236 = math.exp %235 : vector<8x128xf32>
    %cst_68 = arith.constant 1.000000e+00 : f32
    %237 = vector.broadcast %cst_68 : f32 to vector<8x128xf32>
    %238 = arith.addf %237, %236 : vector<8x128xf32>
    %239 = arith.divf %237, %238 : vector<8x128xf32>
    %240 = arith.mulf %231, %177 : vector<8x128xf32>
    %241 = arith.mulf %225, %233 : vector<8x128xf32>
    %242 = arith.addf %240, %241 : vector<8x128xf32>
    %243 = math.tanh %242 : vector<8x128xf32>
    %244 = arith.mulf %239, %243 : vector<8x128xf32>
    %245 = tpu.concatenate %244, %211 in 1 : vector<8x128xf32>, vector<8x128xf32> -> vector<8x256xf32>
    %246 = arith.truncf %245 : vector<8x256xf32> to vector<8x256xbf16>
    %c0_69 = arith.constant 0 : index
    %c0_70 = arith.constant 0 : index
    %247 = vector.load %arg7[%c0_69, %c0_70] : memref<256x512xbf16, #tpu.memory_space<vmem>>, vector<256x512xbf16>
    %cst_71 = arith.constant dense<0.000000e+00> : vector<8x512xf32>
    %248 = tpu.matmul %246, %247, %cst_71 {dimension_numbers = #tpu.dot_dimension_numbers<[1], [0], [0], [1], [0, 0, 1, 1], [], []>} : vector<8x256xbf16>, vector<256x512xbf16>, vector<8x512xf32> -> vector<8x512xf32>
    %c0_72 = arith.constant 0 : index
    %c0_73 = arith.constant 0 : index
    %249 = vector.load %arg8[%c0_72, %c0_73] : memref<1x512xf32, #tpu.memory_space<vmem>>, vector<1x512xf32>
    %250 = vector.broadcast %249 : vector<1x512xf32> to vector<8x512xf32>
    %251 = arith.addf %248, %250 : vector<8x512xf32>
    %252 = vector.extract_strided_slice %251 {offsets = [0, 0], sizes = [8, 128], strides = [1, 1]} : vector<8x512xf32> to vector<8x128xf32>
    %253 = arith.negf %252 : vector<8x128xf32>
    %254 = math.exp %253 : vector<8x128xf32>
    %cst_74 = arith.constant 1.000000e+00 : f32
    %255 = vector.broadcast %cst_74 : f32 to vector<8x128xf32>
    %256 = arith.addf %255, %254 : vector<8x128xf32>
    %257 = arith.divf %255, %256 : vector<8x128xf32>
    %258 = vector.extract_strided_slice %251 {offsets = [0, 128], sizes = [8, 128], strides = [1, 1]} : vector<8x512xf32> to vector<8x128xf32>
    %259 = arith.negf %258 : vector<8x128xf32>
    %260 = math.exp %259 : vector<8x128xf32>
    %cst_75 = arith.constant 1.000000e+00 : f32
    %261 = vector.broadcast %cst_75 : f32 to vector<8x128xf32>
    %262 = arith.addf %261, %260 : vector<8x128xf32>
    %263 = arith.divf %261, %262 : vector<8x128xf32>
    %264 = vector.extract_strided_slice %251 {offsets = [0, 256], sizes = [8, 128], strides = [1, 1]} : vector<8x512xf32> to vector<8x128xf32>
    %265 = math.tanh %264 : vector<8x128xf32>
    %266 = vector.extract_strided_slice %251 {offsets = [0, 384], sizes = [8, 128], strides = [1, 1]} : vector<8x512xf32> to vector<8x128xf32>
    %267 = arith.negf %266 : vector<8x128xf32>
    %268 = math.exp %267 : vector<8x128xf32>
    %cst_76 = arith.constant 1.000000e+00 : f32
    %269 = vector.broadcast %cst_76 : f32 to vector<8x128xf32>
    %270 = arith.addf %269, %268 : vector<8x128xf32>
    %271 = arith.divf %269, %270 : vector<8x128xf32>
    %272 = arith.mulf %263, %209 : vector<8x128xf32>
    %273 = arith.mulf %257, %265 : vector<8x128xf32>
    %274 = arith.addf %272, %273 : vector<8x128xf32>
    %275 = math.tanh %274 : vector<8x128xf32>
    %276 = arith.mulf %271, %275 : vector<8x128xf32>
    %c4_i32 = arith.constant 4 : i32
    %c8_i32_77 = arith.constant 8 : i32
    %277 = arith.muli %c4_i32, %c8_i32_77 : i32
    %278 = tpu.assume_multiple %277, 8 : i32
    %279 = arith.index_cast %278 : i32 to index
    %c0_78 = arith.constant 0 : index
    %280 = vector.load %arg12[%279, %c0_78] : memref<64x512xf32, #tpu.memory_space<vmem>>, vector<8x512xf32>
    %281 = arith.truncf %244 : vector<8x128xf32> to vector<8x128xbf16>
    %c0_79 = arith.constant 0 : index
    %c0_80 = arith.constant 0 : index
    %282 = vector.load %arg6[%c0_79, %c0_80] : memref<128x512xbf16, #tpu.memory_space<vmem>>, vector<128x512xbf16>
    %cst_81 = arith.constant dense<0.000000e+00> : vector<8x512xf32>
    %283 = tpu.matmul %281, %282, %cst_81 {dimension_numbers = #tpu.dot_dimension_numbers<[1], [0], [0], [1], [0, 0, 1, 1], [], []>} : vector<8x128xbf16>, vector<128x512xbf16>, vector<8x512xf32> -> vector<8x512xf32>
    %284 = arith.addf %280, %283 : vector<8x512xf32>
    %285 = vector.extract_strided_slice %284 {offsets = [0, 0], sizes = [8, 128], strides = [1, 1]} : vector<8x512xf32> to vector<8x128xf32>
    %286 = arith.negf %285 : vector<8x128xf32>
    %287 = math.exp %286 : vector<8x128xf32>
    %cst_82 = arith.constant 1.000000e+00 : f32
    %288 = vector.broadcast %cst_82 : f32 to vector<8x128xf32>
    %289 = arith.addf %288, %287 : vector<8x128xf32>
    %290 = arith.divf %288, %289 : vector<8x128xf32>
    %291 = vector.extract_strided_slice %284 {offsets = [0, 128], sizes = [8, 128], strides = [1, 1]} : vector<8x512xf32> to vector<8x128xf32>
    %292 = arith.negf %291 : vector<8x128xf32>
    %293 = math.exp %292 : vector<8x128xf32>
    %cst_83 = arith.constant 1.000000e+00 : f32
    %294 = vector.broadcast %cst_83 : f32 to vector<8x128xf32>
    %295 = arith.addf %294, %293 : vector<8x128xf32>
    %296 = arith.divf %294, %295 : vector<8x128xf32>
    %297 = vector.extract_strided_slice %284 {offsets = [0, 256], sizes = [8, 128], strides = [1, 1]} : vector<8x512xf32> to vector<8x128xf32>
    %298 = math.tanh %297 : vector<8x128xf32>
    %299 = vector.extract_strided_slice %284 {offsets = [0, 384], sizes = [8, 128], strides = [1, 1]} : vector<8x512xf32> to vector<8x128xf32>
    %300 = arith.negf %299 : vector<8x128xf32>
    %301 = math.exp %300 : vector<8x128xf32>
    %cst_84 = arith.constant 1.000000e+00 : f32
    %302 = vector.broadcast %cst_84 : f32 to vector<8x128xf32>
    %303 = arith.addf %302, %301 : vector<8x128xf32>
    %304 = arith.divf %302, %303 : vector<8x128xf32>
    %305 = arith.mulf %296, %242 : vector<8x128xf32>
    %306 = arith.mulf %290, %298 : vector<8x128xf32>
    %307 = arith.addf %305, %306 : vector<8x128xf32>
    %308 = math.tanh %307 : vector<8x128xf32>
    %309 = arith.mulf %304, %308 : vector<8x128xf32>
    %310 = tpu.concatenate %309, %276 in 1 : vector<8x128xf32>, vector<8x128xf32> -> vector<8x256xf32>
    %311 = arith.truncf %310 : vector<8x256xf32> to vector<8x256xbf16>
    %c0_85 = arith.constant 0 : index
    %c0_86 = arith.constant 0 : index
    %312 = vector.load %arg7[%c0_85, %c0_86] : memref<256x512xbf16, #tpu.memory_space<vmem>>, vector<256x512xbf16>
    %cst_87 = arith.constant dense<0.000000e+00> : vector<8x512xf32>
    %313 = tpu.matmul %311, %312, %cst_87 {dimension_numbers = #tpu.dot_dimension_numbers<[1], [0], [0], [1], [0, 0, 1, 1], [], []>} : vector<8x256xbf16>, vector<256x512xbf16>, vector<8x512xf32> -> vector<8x512xf32>
    %c0_88 = arith.constant 0 : index
    %c0_89 = arith.constant 0 : index
    %314 = vector.load %arg8[%c0_88, %c0_89] : memref<1x512xf32, #tpu.memory_space<vmem>>, vector<1x512xf32>
    %315 = vector.broadcast %314 : vector<1x512xf32> to vector<8x512xf32>
    %316 = arith.addf %313, %315 : vector<8x512xf32>
    %317 = vector.extract_strided_slice %316 {offsets = [0, 0], sizes = [8, 128], strides = [1, 1]} : vector<8x512xf32> to vector<8x128xf32>
    %318 = arith.negf %317 : vector<8x128xf32>
    %319 = math.exp %318 : vector<8x128xf32>
    %cst_90 = arith.constant 1.000000e+00 : f32
    %320 = vector.broadcast %cst_90 : f32 to vector<8x128xf32>
    %321 = arith.addf %320, %319 : vector<8x128xf32>
    %322 = arith.divf %320, %321 : vector<8x128xf32>
    %323 = vector.extract_strided_slice %316 {offsets = [0, 128], sizes = [8, 128], strides = [1, 1]} : vector<8x512xf32> to vector<8x128xf32>
    %324 = arith.negf %323 : vector<8x128xf32>
    %325 = math.exp %324 : vector<8x128xf32>
    %cst_91 = arith.constant 1.000000e+00 : f32
    %326 = vector.broadcast %cst_91 : f32 to vector<8x128xf32>
    %327 = arith.addf %326, %325 : vector<8x128xf32>
    %328 = arith.divf %326, %327 : vector<8x128xf32>
    %329 = vector.extract_strided_slice %316 {offsets = [0, 256], sizes = [8, 128], strides = [1, 1]} : vector<8x512xf32> to vector<8x128xf32>
    %330 = math.tanh %329 : vector<8x128xf32>
    %331 = vector.extract_strided_slice %316 {offsets = [0, 384], sizes = [8, 128], strides = [1, 1]} : vector<8x512xf32> to vector<8x128xf32>
    %332 = arith.negf %331 : vector<8x128xf32>
    %333 = math.exp %332 : vector<8x128xf32>
    %cst_92 = arith.constant 1.000000e+00 : f32
    %334 = vector.broadcast %cst_92 : f32 to vector<8x128xf32>
    %335 = arith.addf %334, %333 : vector<8x128xf32>
    %336 = arith.divf %334, %335 : vector<8x128xf32>
    %337 = arith.mulf %328, %274 : vector<8x128xf32>
    %338 = arith.mulf %322, %330 : vector<8x128xf32>
    %339 = arith.addf %337, %338 : vector<8x128xf32>
    %340 = math.tanh %339 : vector<8x128xf32>
    %341 = arith.mulf %336, %340 : vector<8x128xf32>
    %c5_i32 = arith.constant 5 : i32
    %c8_i32_93 = arith.constant 8 : i32
    %342 = arith.muli %c5_i32, %c8_i32_93 : i32
    %343 = tpu.assume_multiple %342, 8 : i32
    %344 = arith.index_cast %343 : i32 to index
    %c0_94 = arith.constant 0 : index
    %345 = vector.load %arg12[%344, %c0_94] : memref<64x512xf32, #tpu.memory_space<vmem>>, vector<8x512xf32>
    %346 = arith.truncf %309 : vector<8x128xf32> to vector<8x128xbf16>
    %c0_95 = arith.constant 0 : index
    %c0_96 = arith.constant 0 : index
    %347 = vector.load %arg6[%c0_95, %c0_96] : memref<128x512xbf16, #tpu.memory_space<vmem>>, vector<128x512xbf16>
    %cst_97 = arith.constant dense<0.000000e+00> : vector<8x512xf32>
    %348 = tpu.matmul %346, %347, %cst_97 {dimension_numbers = #tpu.dot_dimension_numbers<[1], [0], [0], [1], [0, 0, 1, 1], [], []>} : vector<8x128xbf16>, vector<128x512xbf16>, vector<8x512xf32> -> vector<8x512xf32>
    %349 = arith.addf %345, %348 : vector<8x512xf32>
    %350 = vector.extract_strided_slice %349 {offsets = [0, 0], sizes = [8, 128], strides = [1, 1]} : vector<8x512xf32> to vector<8x128xf32>
    %351 = arith.negf %350 : vector<8x128xf32>
    %352 = math.exp %351 : vector<8x128xf32>
    %cst_98 = arith.constant 1.000000e+00 : f32
    %353 = vector.broadcast %cst_98 : f32 to vector<8x128xf32>
    %354 = arith.addf %353, %352 : vector<8x128xf32>
    %355 = arith.divf %353, %354 : vector<8x128xf32>
    %356 = vector.extract_strided_slice %349 {offsets = [0, 128], sizes = [8, 128], strides = [1, 1]} : vector<8x512xf32> to vector<8x128xf32>
    %357 = arith.negf %356 : vector<8x128xf32>
    %358 = math.exp %357 : vector<8x128xf32>
    %cst_99 = arith.constant 1.000000e+00 : f32
    %359 = vector.broadcast %cst_99 : f32 to vector<8x128xf32>
    %360 = arith.addf %359, %358 : vector<8x128xf32>
    %361 = arith.divf %359, %360 : vector<8x128xf32>
    %362 = vector.extract_strided_slice %349 {offsets = [0, 256], sizes = [8, 128], strides = [1, 1]} : vector<8x512xf32> to vector<8x128xf32>
    %363 = math.tanh %362 : vector<8x128xf32>
    %364 = vector.extract_strided_slice %349 {offsets = [0, 384], sizes = [8, 128], strides = [1, 1]} : vector<8x512xf32> to vector<8x128xf32>
    %365 = arith.negf %364 : vector<8x128xf32>
    %366 = math.exp %365 : vector<8x128xf32>
    %cst_100 = arith.constant 1.000000e+00 : f32
    %367 = vector.broadcast %cst_100 : f32 to vector<8x128xf32>
    %368 = arith.addf %367, %366 : vector<8x128xf32>
    %369 = arith.divf %367, %368 : vector<8x128xf32>
    %370 = arith.mulf %361, %307 : vector<8x128xf32>
    %371 = arith.mulf %355, %363 : vector<8x128xf32>
    %372 = arith.addf %370, %371 : vector<8x128xf32>
    %373 = math.tanh %372 : vector<8x128xf32>
    %374 = arith.mulf %369, %373 : vector<8x128xf32>
    %375 = tpu.concatenate %374, %341 in 1 : vector<8x128xf32>, vector<8x128xf32> -> vector<8x256xf32>
    %376 = arith.truncf %375 : vector<8x256xf32> to vector<8x256xbf16>
    %c0_101 = arith.constant 0 : index
    %c0_102 = arith.constant 0 : index
    %377 = vector.load %arg7[%c0_101, %c0_102] : memref<256x512xbf16, #tpu.memory_space<vmem>>, vector<256x512xbf16>
    %cst_103 = arith.constant dense<0.000000e+00> : vector<8x512xf32>
    %378 = tpu.matmul %376, %377, %cst_103 {dimension_numbers = #tpu.dot_dimension_numbers<[1], [0], [0], [1], [0, 0, 1, 1], [], []>} : vector<8x256xbf16>, vector<256x512xbf16>, vector<8x512xf32> -> vector<8x512xf32>
    %c0_104 = arith.constant 0 : index
    %c0_105 = arith.constant 0 : index
    %379 = vector.load %arg8[%c0_104, %c0_105] : memref<1x512xf32, #tpu.memory_space<vmem>>, vector<1x512xf32>
    %380 = vector.broadcast %379 : vector<1x512xf32> to vector<8x512xf32>
    %381 = arith.addf %378, %380 : vector<8x512xf32>
    %382 = vector.extract_strided_slice %381 {offsets = [0, 0], sizes = [8, 128], strides = [1, 1]} : vector<8x512xf32> to vector<8x128xf32>
    %383 = arith.negf %382 : vector<8x128xf32>
    %384 = math.exp %383 : vector<8x128xf32>
    %cst_106 = arith.constant 1.000000e+00 : f32
    %385 = vector.broadcast %cst_106 : f32 to vector<8x128xf32>
    %386 = arith.addf %385, %384 : vector<8x128xf32>
    %387 = arith.divf %385, %386 : vector<8x128xf32>
    %388 = vector.extract_strided_slice %381 {offsets = [0, 128], sizes = [8, 128], strides = [1, 1]} : vector<8x512xf32> to vector<8x128xf32>
    %389 = arith.negf %388 : vector<8x128xf32>
    %390 = math.exp %389 : vector<8x128xf32>
    %cst_107 = arith.constant 1.000000e+00 : f32
    %391 = vector.broadcast %cst_107 : f32 to vector<8x128xf32>
    %392 = arith.addf %391, %390 : vector<8x128xf32>
    %393 = arith.divf %391, %392 : vector<8x128xf32>
    %394 = vector.extract_strided_slice %381 {offsets = [0, 256], sizes = [8, 128], strides = [1, 1]} : vector<8x512xf32> to vector<8x128xf32>
    %395 = math.tanh %394 : vector<8x128xf32>
    %396 = vector.extract_strided_slice %381 {offsets = [0, 384], sizes = [8, 128], strides = [1, 1]} : vector<8x512xf32> to vector<8x128xf32>
    %397 = arith.negf %396 : vector<8x128xf32>
    %398 = math.exp %397 : vector<8x128xf32>
    %cst_108 = arith.constant 1.000000e+00 : f32
    %399 = vector.broadcast %cst_108 : f32 to vector<8x128xf32>
    %400 = arith.addf %399, %398 : vector<8x128xf32>
    %401 = arith.divf %399, %400 : vector<8x128xf32>
    %402 = arith.mulf %393, %339 : vector<8x128xf32>
    %403 = arith.mulf %387, %395 : vector<8x128xf32>
    %404 = arith.addf %402, %403 : vector<8x128xf32>
    %405 = math.tanh %404 : vector<8x128xf32>
    %406 = arith.mulf %401, %405 : vector<8x128xf32>
    %c6_i32 = arith.constant 6 : i32
    %c8_i32_109 = arith.constant 8 : i32
    %407 = arith.muli %c6_i32, %c8_i32_109 : i32
    %408 = tpu.assume_multiple %407, 8 : i32
    %409 = arith.index_cast %408 : i32 to index
    %c0_110 = arith.constant 0 : index
    %410 = vector.load %arg12[%409, %c0_110] : memref<64x512xf32, #tpu.memory_space<vmem>>, vector<8x512xf32>
    %411 = arith.truncf %374 : vector<8x128xf32> to vector<8x128xbf16>
    %c0_111 = arith.constant 0 : index
    %c0_112 = arith.constant 0 : index
    %412 = vector.load %arg6[%c0_111, %c0_112] : memref<128x512xbf16, #tpu.memory_space<vmem>>, vector<128x512xbf16>
    %cst_113 = arith.constant dense<0.000000e+00> : vector<8x512xf32>
    %413 = tpu.matmul %411, %412, %cst_113 {dimension_numbers = #tpu.dot_dimension_numbers<[1], [0], [0], [1], [0, 0, 1, 1], [], []>} : vector<8x128xbf16>, vector<128x512xbf16>, vector<8x512xf32> -> vector<8x512xf32>
    %414 = arith.addf %410, %413 : vector<8x512xf32>
    %415 = vector.extract_strided_slice %414 {offsets = [0, 0], sizes = [8, 128], strides = [1, 1]} : vector<8x512xf32> to vector<8x128xf32>
    %416 = arith.negf %415 : vector<8x128xf32>
    %417 = math.exp %416 : vector<8x128xf32>
    %cst_114 = arith.constant 1.000000e+00 : f32
    %418 = vector.broadcast %cst_114 : f32 to vector<8x128xf32>
    %419 = arith.addf %418, %417 : vector<8x128xf32>
    %420 = arith.divf %418, %419 : vector<8x128xf32>
    %421 = vector.extract_strided_slice %414 {offsets = [0, 128], sizes = [8, 128], strides = [1, 1]} : vector<8x512xf32> to vector<8x128xf32>
    %422 = arith.negf %421 : vector<8x128xf32>
    %423 = math.exp %422 : vector<8x128xf32>
    %cst_115 = arith.constant 1.000000e+00 : f32
    %424 = vector.broadcast %cst_115 : f32 to vector<8x128xf32>
    %425 = arith.addf %424, %423 : vector<8x128xf32>
    %426 = arith.divf %424, %425 : vector<8x128xf32>
    %427 = vector.extract_strided_slice %414 {offsets = [0, 256], sizes = [8, 128], strides = [1, 1]} : vector<8x512xf32> to vector<8x128xf32>
    %428 = math.tanh %427 : vector<8x128xf32>
    %429 = vector.extract_strided_slice %414 {offsets = [0, 384], sizes = [8, 128], strides = [1, 1]} : vector<8x512xf32> to vector<8x128xf32>
    %430 = arith.negf %429 : vector<8x128xf32>
    %431 = math.exp %430 : vector<8x128xf32>
    %cst_116 = arith.constant 1.000000e+00 : f32
    %432 = vector.broadcast %cst_116 : f32 to vector<8x128xf32>
    %433 = arith.addf %432, %431 : vector<8x128xf32>
    %434 = arith.divf %432, %433 : vector<8x128xf32>
    %435 = arith.mulf %426, %372 : vector<8x128xf32>
    %436 = arith.mulf %420, %428 : vector<8x128xf32>
    %437 = arith.addf %435, %436 : vector<8x128xf32>
    %438 = math.tanh %437 : vector<8x128xf32>
    %439 = arith.mulf %434, %438 : vector<8x128xf32>
    %440 = tpu.concatenate %439, %406 in 1 : vector<8x128xf32>, vector<8x128xf32> -> vector<8x256xf32>
    %441 = arith.truncf %440 : vector<8x256xf32> to vector<8x256xbf16>
    %c0_117 = arith.constant 0 : index
    %c0_118 = arith.constant 0 : index
    %442 = vector.load %arg7[%c0_117, %c0_118] : memref<256x512xbf16, #tpu.memory_space<vmem>>, vector<256x512xbf16>
    %cst_119 = arith.constant dense<0.000000e+00> : vector<8x512xf32>
    %443 = tpu.matmul %441, %442, %cst_119 {dimension_numbers = #tpu.dot_dimension_numbers<[1], [0], [0], [1], [0, 0, 1, 1], [], []>} : vector<8x256xbf16>, vector<256x512xbf16>, vector<8x512xf32> -> vector<8x512xf32>
    %c0_120 = arith.constant 0 : index
    %c0_121 = arith.constant 0 : index
    %444 = vector.load %arg8[%c0_120, %c0_121] : memref<1x512xf32, #tpu.memory_space<vmem>>, vector<1x512xf32>
    %445 = vector.broadcast %444 : vector<1x512xf32> to vector<8x512xf32>
    %446 = arith.addf %443, %445 : vector<8x512xf32>
    %447 = vector.extract_strided_slice %446 {offsets = [0, 0], sizes = [8, 128], strides = [1, 1]} : vector<8x512xf32> to vector<8x128xf32>
    %448 = arith.negf %447 : vector<8x128xf32>
    %449 = math.exp %448 : vector<8x128xf32>
    %cst_122 = arith.constant 1.000000e+00 : f32
    %450 = vector.broadcast %cst_122 : f32 to vector<8x128xf32>
    %451 = arith.addf %450, %449 : vector<8x128xf32>
    %452 = arith.divf %450, %451 : vector<8x128xf32>
    %453 = vector.extract_strided_slice %446 {offsets = [0, 128], sizes = [8, 128], strides = [1, 1]} : vector<8x512xf32> to vector<8x128xf32>
    %454 = arith.negf %453 : vector<8x128xf32>
    %455 = math.exp %454 : vector<8x128xf32>
    %cst_123 = arith.constant 1.000000e+00 : f32
    %456 = vector.broadcast %cst_123 : f32 to vector<8x128xf32>
    %457 = arith.addf %456, %455 : vector<8x128xf32>
    %458 = arith.divf %456, %457 : vector<8x128xf32>
    %459 = vector.extract_strided_slice %446 {offsets = [0, 256], sizes = [8, 128], strides = [1, 1]} : vector<8x512xf32> to vector<8x128xf32>
    %460 = math.tanh %459 : vector<8x128xf32>
    %461 = vector.extract_strided_slice %446 {offsets = [0, 384], sizes = [8, 128], strides = [1, 1]} : vector<8x512xf32> to vector<8x128xf32>
    %462 = arith.negf %461 : vector<8x128xf32>
    %463 = math.exp %462 : vector<8x128xf32>
    %cst_124 = arith.constant 1.000000e+00 : f32
    %464 = vector.broadcast %cst_124 : f32 to vector<8x128xf32>
    %465 = arith.addf %464, %463 : vector<8x128xf32>
    %466 = arith.divf %464, %465 : vector<8x128xf32>
    %467 = arith.mulf %458, %404 : vector<8x128xf32>
    %468 = arith.mulf %452, %460 : vector<8x128xf32>
    %469 = arith.addf %467, %468 : vector<8x128xf32>
    %470 = math.tanh %469 : vector<8x128xf32>
    %471 = arith.mulf %466, %470 : vector<8x128xf32>
    %c7_i32 = arith.constant 7 : i32
    %c8_i32_125 = arith.constant 8 : i32
    %472 = arith.muli %c7_i32, %c8_i32_125 : i32
    %473 = tpu.assume_multiple %472, 8 : i32
    %474 = arith.index_cast %473 : i32 to index
    %c0_126 = arith.constant 0 : index
    %475 = vector.load %arg12[%474, %c0_126] : memref<64x512xf32, #tpu.memory_space<vmem>>, vector<8x512xf32>
    %476 = arith.truncf %439 : vector<8x128xf32> to vector<8x128xbf16>
    %c0_127 = arith.constant 0 : index
    %c0_128 = arith.constant 0 : index
    %477 = vector.load %arg6[%c0_127, %c0_128] : memref<128x512xbf16, #tpu.memory_space<vmem>>, vector<128x512xbf16>
    %cst_129 = arith.constant dense<0.000000e+00> : vector<8x512xf32>
    %478 = tpu.matmul %476, %477, %cst_129 {dimension_numbers = #tpu.dot_dimension_numbers<[1], [0], [0], [1], [0, 0, 1, 1], [], []>} : vector<8x128xbf16>, vector<128x512xbf16>, vector<8x512xf32> -> vector<8x512xf32>
    %479 = arith.addf %475, %478 : vector<8x512xf32>
    %480 = vector.extract_strided_slice %479 {offsets = [0, 0], sizes = [8, 128], strides = [1, 1]} : vector<8x512xf32> to vector<8x128xf32>
    %481 = arith.negf %480 : vector<8x128xf32>
    %482 = math.exp %481 : vector<8x128xf32>
    %cst_130 = arith.constant 1.000000e+00 : f32
    %483 = vector.broadcast %cst_130 : f32 to vector<8x128xf32>
    %484 = arith.addf %483, %482 : vector<8x128xf32>
    %485 = arith.divf %483, %484 : vector<8x128xf32>
    %486 = vector.extract_strided_slice %479 {offsets = [0, 128], sizes = [8, 128], strides = [1, 1]} : vector<8x512xf32> to vector<8x128xf32>
    %487 = arith.negf %486 : vector<8x128xf32>
    %488 = math.exp %487 : vector<8x128xf32>
    %cst_131 = arith.constant 1.000000e+00 : f32
    %489 = vector.broadcast %cst_131 : f32 to vector<8x128xf32>
    %490 = arith.addf %489, %488 : vector<8x128xf32>
    %491 = arith.divf %489, %490 : vector<8x128xf32>
    %492 = vector.extract_strided_slice %479 {offsets = [0, 256], sizes = [8, 128], strides = [1, 1]} : vector<8x512xf32> to vector<8x128xf32>
    %493 = math.tanh %492 : vector<8x128xf32>
    %494 = vector.extract_strided_slice %479 {offsets = [0, 384], sizes = [8, 128], strides = [1, 1]} : vector<8x512xf32> to vector<8x128xf32>
    %495 = arith.negf %494 : vector<8x128xf32>
    %496 = math.exp %495 : vector<8x128xf32>
    %cst_132 = arith.constant 1.000000e+00 : f32
    %497 = vector.broadcast %cst_132 : f32 to vector<8x128xf32>
    %498 = arith.addf %497, %496 : vector<8x128xf32>
    %499 = arith.divf %497, %498 : vector<8x128xf32>
    %500 = arith.mulf %491, %437 : vector<8x128xf32>
    %501 = arith.mulf %485, %493 : vector<8x128xf32>
    %502 = arith.addf %500, %501 : vector<8x128xf32>
    %503 = math.tanh %502 : vector<8x128xf32>
    %504 = arith.mulf %499, %503 : vector<8x128xf32>
    %505 = tpu.concatenate %504, %471 in 1 : vector<8x128xf32>, vector<8x128xf32> -> vector<8x256xf32>
    %506 = arith.truncf %505 : vector<8x256xf32> to vector<8x256xbf16>
    %c0_133 = arith.constant 0 : index
    %c0_134 = arith.constant 0 : index
    %507 = vector.load %arg7[%c0_133, %c0_134] : memref<256x512xbf16, #tpu.memory_space<vmem>>, vector<256x512xbf16>
    %cst_135 = arith.constant dense<0.000000e+00> : vector<8x512xf32>
    %508 = tpu.matmul %506, %507, %cst_135 {dimension_numbers = #tpu.dot_dimension_numbers<[1], [0], [0], [1], [0, 0, 1, 1], [], []>} : vector<8x256xbf16>, vector<256x512xbf16>, vector<8x512xf32> -> vector<8x512xf32>
    %c0_136 = arith.constant 0 : index
    %c0_137 = arith.constant 0 : index
    %509 = vector.load %arg8[%c0_136, %c0_137] : memref<1x512xf32, #tpu.memory_space<vmem>>, vector<1x512xf32>
    %510 = vector.broadcast %509 : vector<1x512xf32> to vector<8x512xf32>
    %511 = arith.addf %508, %510 : vector<8x512xf32>
    %512 = vector.extract_strided_slice %511 {offsets = [0, 0], sizes = [8, 128], strides = [1, 1]} : vector<8x512xf32> to vector<8x128xf32>
    %513 = arith.negf %512 : vector<8x128xf32>
    %514 = math.exp %513 : vector<8x128xf32>
    %cst_138 = arith.constant 1.000000e+00 : f32
    %515 = vector.broadcast %cst_138 : f32 to vector<8x128xf32>
    %516 = arith.addf %515, %514 : vector<8x128xf32>
    %517 = arith.divf %515, %516 : vector<8x128xf32>
    %518 = vector.extract_strided_slice %511 {offsets = [0, 128], sizes = [8, 128], strides = [1, 1]} : vector<8x512xf32> to vector<8x128xf32>
    %519 = arith.negf %518 : vector<8x128xf32>
    %520 = math.exp %519 : vector<8x128xf32>
    %cst_139 = arith.constant 1.000000e+00 : f32
    %521 = vector.broadcast %cst_139 : f32 to vector<8x128xf32>
    %522 = arith.addf %521, %520 : vector<8x128xf32>
    %523 = arith.divf %521, %522 : vector<8x128xf32>
    %524 = vector.extract_strided_slice %511 {offsets = [0, 256], sizes = [8, 128], strides = [1, 1]} : vector<8x512xf32> to vector<8x128xf32>
    %525 = math.tanh %524 : vector<8x128xf32>
    %526 = vector.extract_strided_slice %511 {offsets = [0, 384], sizes = [8, 128], strides = [1, 1]} : vector<8x512xf32> to vector<8x128xf32>
    %527 = arith.negf %526 : vector<8x128xf32>
    %528 = math.exp %527 : vector<8x128xf32>
    %cst_140 = arith.constant 1.000000e+00 : f32
    %529 = vector.broadcast %cst_140 : f32 to vector<8x128xf32>
    %530 = arith.addf %529, %528 : vector<8x128xf32>
    %531 = arith.divf %529, %530 : vector<8x128xf32>
    %532 = arith.mulf %523, %469 : vector<8x128xf32>
    %533 = arith.mulf %517, %525 : vector<8x128xf32>
    %534 = arith.addf %532, %533 : vector<8x128xf32>
    %535 = math.tanh %534 : vector<8x128xf32>
    %536 = arith.mulf %531, %535 : vector<8x128xf32>
    %c8_i32_141 = arith.constant 8 : i32
    %537 = arith.truncf %536 : vector<8x128xf32> to vector<8x128xbf16>
    %c0_142 = arith.constant 0 : index
    %c0_143 = arith.constant 0 : index
    %538 = vector.load %arg9[%c0_142, %c0_143] : memref<128x128xbf16, #tpu.memory_space<vmem>>, vector<128x128xbf16>
    %cst_144 = arith.constant dense<0.000000e+00> : vector<8x128xf32>
    %539 = tpu.matmul %537, %538, %cst_144 {dimension_numbers = #tpu.dot_dimension_numbers<[1], [0], [0], [1], [0, 0, 1, 1], [], []>} : vector<8x128xbf16>, vector<128x128xbf16>, vector<8x128xf32> -> vector<8x128xf32>
    %c0_145 = arith.constant 0 : index
    %c0_146 = arith.constant 0 : index
    %540 = vector.load %arg10[%c0_145, %c0_146] : memref<1x128xf32, #tpu.memory_space<vmem>>, vector<1x128xf32>
    %541 = vector.broadcast %540 : vector<1x128xf32> to vector<8x128xf32>
    %542 = arith.addf %539, %541 : vector<8x128xf32>
    %c0_147 = arith.constant 0 : index
    %c0_148 = arith.constant 0 : index
    %543 = vector.load %arg11[%c0_147, %c0_148] : memref<8x128xf32, #tpu.memory_space<vmem>>, vector<8x128xf32>
    tpu.vector_store %arg11[%c0_147, %c0_148], %542 {strides = array<i32>} : memref<8x128xf32, #tpu.memory_space<vmem>>, vector<8x128xf32>,
    return
  }
  func.func @transform_0(%arg0: i32) -> (i32, i32) {
    %c0_i32 = arith.constant 0 : i32
    %c0_i32_0 = arith.constant 0 : i32
    %c0_i32_1 = arith.constant 0 : i32
    return %c0_i32, %c0_i32_0 : i32, i32
  }
  func.func @transform_1(%arg0: i32) -> (i32, i32) {
    %c0_i32 = arith.constant 0 : i32
    %c0_i32_0 = arith.constant 0 : i32
    %c0_i32_1 = arith.constant 0 : i32
    return %c0_i32, %c0_i32_0 : i32, i32
  }
  func.func @transform_2(%arg0: i32) -> (i32, i32) {
    %c0_i32 = arith.constant 0 : i32
    %c0_i32_0 = arith.constant 0 : i32
    %c0_i32_1 = arith.constant 0 : i32
    return %c0_i32, %c0_i32_0 : i32, i32
  }
  func.func @transform_3(%arg0: i32) -> (i32, i32) {
    %c0_i32 = arith.constant 0 : i32
    %c0_i32_0 = arith.constant 0 : i32
    %c0_i32_1 = arith.constant 0 : i32
    return %c0_i32, %c0_i32_0 : i32, i32
  }
  func.func @transform_4(%arg0: i32) -> (i32, i32) {
    %c0_i32 = arith.constant 0 : i32
    %c0_i32_0 = arith.constant 0 : i32
    %c0_i32_1 = arith.constant 0 : i32
    return %c0_i32, %c0_i32_0 : i32, i32
  }
  func.func @transform_5(%arg0: i32) -> (i32, i32) {
    %c0_i32 = arith.constant 0 : i32
    %c0_i32_0 = arith.constant 0 : i32
    %c0_i32_1 = arith.constant 0 : i32
    return %c0_i32, %c0_i32_0 : i32, i32
  }
  func.func @transform_6(%arg0: i32) -> (i32, i32) {
    %c0_i32 = arith.constant 0 : i32
    %c0_i32_0 = arith.constant 0 : i32
    %c0_i32_1 = arith.constant 0 : i32
    return %c0_i32, %c0_i32_0 : i32, i32
  }
  func.func @transform_7(%arg0: i32) -> (i32, i32) {
    %c0_i32 = arith.constant 0 : i32
    %c0_i32_0 = arith.constant 0 : i32
    %c0_i32_1 = arith.constant 0 : i32
    return %c0_i32, %c0_i32_0 : i32, i32
  }
  func.func @transform_8(%arg0: i32) -> (i32, i32) {
    %c0_i32 = arith.constant 0 : i32
    %c0_i32_0 = arith.constant 0 : i32
    %c0_i32_1 = arith.constant 0 : i32
    return %c0_i32, %c0_i32_0 : i32, i32
  }
  func.func @transform_9(%arg0: i32) -> (i32, i32) {
    %c0_i32 = arith.constant 0 : i32
    %c0_i32_0 = arith.constant 0 : i32
    %c0_i32_1 = arith.constant 0 : i32
    return %c0_i32, %c0_i32_0 : i32, i32
  }
  func.func @transform_10(%arg0: i32) -> (i32, i32) {
    %c0_i32 = arith.constant 0 : i32
    %c0_i32_0 = arith.constant 0 : i32
    %c0_i32_1 = arith.constant 0 : i32
    return %c0_i32, %c0_i32_0 : i32, i32
  }
}

</mosaic_0001>

<bundles_post_ra>
// kernel: tpu_custom_call.1
= control target key start
LH: loop header
LB: loop body
LE: loop exit
PB: predicated region body
PF: predicated region fallthrough
CT: control target
= control target key end

     0   :  { %15 = vsyncpa [#allocation4], 0  ;;  %s6191_s0 = inlined_call_operand.vmem [shape: f32[64,4], index: 0, kind: input, shape index: {}]   ;;  %s6192_s1 = inlined_call_operand.vmem [shape: bf16[4,256], index: 1, kind: input, shape index: {}]   ;;  %s6193_s2 = inlined_call_operand.vmem [shape: f32[1,256], index: 2, kind: input, shape index: {}]   ;;  %s6194_s3 = inlined_call_operand.hbm [shape: bf16[256,512], index: 3, kind: input, shape index: {}]   ;;  %s6195_s4 = inlined_call_operand.vmem [shape: f32[1,512], index: 4, kind: input, shape index: {}]   ;;  %s6196_s5 = inlined_call_operand.hbm [shape: bf16[128,512], index: 5, kind: input, shape index: {}]   ;;  %s6197_s6 = inlined_call_operand.hbm [shape: bf16[256,512], index: 6, kind: input, shape index: {}]   ;;  %s6198_s7 = inlined_call_operand.vmem [shape: f32[1,512], index: 7, kind: input, shape index: {}]   ;;  %s6199_s8 = inlined_call_operand.vmem [shape: bf16[128,128], index: 8, kind: input, shape index: {}]   ;;  %s6200_s9 = inlined_call_operand.vmem [shape: f32[1,128], index: 9, kind: input, shape index: {}]   ;;  %s6201_s10 = inlined_call_operand.hbm [shape: f32[8,128], index: 10, kind: output, shape index: {}]  }
   0x1   :  { %16 = vsyncpa [#allocation7], 0 }
   0x2   :  { %17 = vsyncpa [#allocation5], 0  ;;  %s4399_s13 = smov [#allocation6]   ;;  %s4400_s15 = smov [#allocation3]  }
   0x3   :  { %s43_s14 = sshll.u32 %s4399_s13, 4  ;;  %s29_s16 = sshll.u32 %s4400_s15, 4  ;;  %s44_s14 = int_to_ptr.vmem [resolvable:$true] %s43_s14  ;;  %s4464_s16 = int_to_ptr.vmem [resolvable:$true] %s29_s16 }
   0x4   :  { %s4305_s19 = scalar_lea.hbm %s6196_s5, 4096 }
   0x5   :  { %p4306_p0 = scmp.ne.s32.totalorder %s6196_s5, %s4305_s19  ;;  %p4309_p1 = scmp.lt.u32.totalorder %s4305_s19, %s6196_s5 }
   0x7   :  { %p4311_p2 = pnand %p4309_p1, %p4306_p0 }
   0x9   :  { %4314 = shalt.err (!%p4311_p2)
}
   0xa   :  { %s4315_s24 = scalar_lea.vmem %s44_s14, 4096  ;;  %p4320_p4 = scmp.lt.s32.totalorder %s44_s14, %s44_s14 }
   0xb   :  { %p4316_p3 = scmp.ne.s32.totalorder %s44_s14, %s4315_s24  ;;  %p4321_p5 = scmp.lt.s32.totalorder %s4315_s24, %s4315_s24 }
   0xd   :  { %p4322_p6 = por %p4321_p5, %p4320_p4 }
   0xf   :  { %p4323_p7 = pnand %p4322_p6, %p4316_p3 }
  0x11   :  { %4326 = shalt.err (!%p4323_p7)
}
  0x12   :  { %s4401_s25 = smov 256   ;;  %s4402_s26 = smov 16  }
  0x13   :  { %49 = dma.hbm_to_vmem [thread:$0]  %s6196_s5, 4096, %s44_s14, [#allocation7], %s4401_s25, %s4401_s25, %s4402_s26  }
  0x14   :  { %s4327_s11 = scalar_lea.hbm %s6194_s3, 8192 }
  0x15   :  { %p4328_p8 = scmp.ne.s32.totalorder %s6194_s3, %s4327_s11  ;;  %p4331_p9 = scmp.lt.u32.totalorder %s4327_s11, %s6194_s3 }
  0x17   :  { %p4333_p10 = pnand %p4331_p9, %p4328_p8 }
  0x19   :  { %4336 = shalt.err (!%p4333_p10)
}
  0x1a   :  { %s4337_s18 = scalar_lea.vmem %s4464_s16, 8192  ;;  %p4342_p12 = scmp.lt.s32.totalorder %s4464_s16, %s4464_s16 }
  0x1b   :  { %p4338_p11 = scmp.ne.s32.totalorder %s4464_s16, %s4337_s18  ;;  %p4343_p13 = scmp.lt.s32.totalorder %s4337_s18, %s4337_s18 }
  0x1d   :  { %p4344_p0 = por %p4343_p13, %p4342_p12 }
  0x1f   :  { %p4345_p1 = pnand %p4344_p0, %p4338_p11 }
  0x21   :  { %4348 = shalt.err (!%p4345_p1)
}
  0x22   :  { %35 = dma.hbm_to_vmem [thread:$0]  %s6194_s3, 8192, %s4464_s16, [#allocation4], %s4401_s25, %s4401_s25, %s4402_s26  }
  0x23   :  { %s4403_s19 = smov [#allocation8]   ;;  %s4349_s23 = scalar_lea.hbm %s6197_s6, 8192 }
  0x24   :  { %s55_s20 = sshll.u32 %s4403_s19, 4  ;;  %p4350_p2 = scmp.ne.s32.totalorder %s6197_s6, %s4349_s23  ;;  %s56_s20 = int_to_ptr.vmem [resolvable:$true] %s55_s20 }
  0x25   :  { %p4353_p3 = scmp.lt.u32.totalorder %s4349_s23, %s6197_s6 }
  0x27   :  { %p4355_p4 = pnand %p4353_p3, %p4350_p2 }
  0x29   :  { %4358 = shalt.err (!%p4355_p4)
}
  0x2a   :  { %s4359_s30 = scalar_lea.vmem %s56_s20, 8192  ;;  %p4364_p6 = scmp.lt.s32.totalorder %s56_s20, %s56_s20 }
  0x2b   :  { %p4360_p5 = scmp.ne.s32.totalorder %s56_s20, %s4359_s30  ;;  %p4365_p7 = scmp.lt.s32.totalorder %s4359_s30, %s4359_s30 }
  0x2d   :  { %p4366_p8 = por %p4365_p7, %p4364_p6 }
  0x2f   :  { %p4367_p9 = pnand %p4366_p8, %p4360_p5 }
  0x31   :  { %4370 = shalt.err (!%p4367_p9)
}
  0x32   :  { %61 = dma.hbm_to_vmem [thread:$0]  %s6197_s6, 8192, %s56_s20, [#allocation7], %s4401_s25, %s4401_s25, %s4402_s26  }
  0x33   :  { %4393 = dma.done.wait [#allocation4], 8192  }
  0x34   :  { %4394 = vsyncadd [#allocation4], 4294959104 }
  0x35   :  { %4395 = dma.done.wait [#allocation7], 12288  }
  0x36   :  { %4396 = vsyncadd [#allocation7], 4294955008  ;;  %v6202_v0 = vmov 0   ;;  %vm125_vm0 = vcmask 1041408   ;;  %v78_v2 = vld [vmem:[%s6191_s0] sm:$0xff]  ;;  %v79_v3 = vld [vmem:[%s6191_s0 + $0x8] sm:$0xff] }
  0x37   :  { %164 = vmatprep.mubr.bf16.mxu0 %v6202_v0  ;;  %v3347_v1 = vld.sshfl [vmem:[%s6192_s1] sm:$0x33 pattern:$0x76325410]  ;;  %v86_v6 = vpack.c.bf16 %v79_v3, %v78_v2  ;;  %v3609_v7 = vld [vmem:[#allocation3 + $0x4] ss:$16 sps:$4 sm:$0xff]  }
  0x38   :  { %v111_v4 = vcombine.high %v3347_v1, %v3347_v1  ;;  %v127_v5 = vsel %vm125_vm0, %v3347_v1, 0  ;;  %vm112_vm1 = vcmask 31744   ;;  %v3611_v8 = vld [vmem:[#allocation3] ss:$16 sps:$4 sm:$0xff]   ;;  %635 = vmatprep.subr.bf16.mxu1 %v3609_v7  ;;  %v3612_v9 = vld [vmem:[#allocation3 + $0x8] ss:$16 sps:$4 sm:$0xff]  }
  0x39   :  { %v3614_v10 = vld [vmem:[#allocation3 + $0xc] ss:$16 sps:$4 sm:$0xff]   ;;  %v81_v12 = vld [vmem:[%s6191_s0 + $0x18] sm:$0xff]  ;;  %636 = vmatpush1.bf16.msra.mxu1 %v3611_v8  ;;  %v3618_v15 = vld [vmem:[#allocation3 + $0x28] ss:$16 sps:$4 sm:$0xff]   ;;  %vm4407_vm2 = vmmov 0  }
  0x3a   :  { %3348 = vmatprep.subr.msk.bf16.mxu0 %vm125_vm0, %v111_v4  ;;  %v80_v11 = vld [vmem:[%s6191_s0 + $0x10] sm:$0xff]  ;;  %v3615_v13 = vld [vmem:[#allocation3 + $0x24] ss:$16 sps:$4 sm:$0xff]   ;;  %v3617_v14 = vld [vmem:[#allocation3 + $0x20] ss:$16 sps:$4 sm:$0xff]   ;;  %s4408_s20 = smov [#allocation9]  }
  0x3b   :  { %133 = vmatpush1.bf16.msra.mxu0 %v127_v5  ;;  %v3620_v16 = vld [vmem:[#allocation3 + $0x2c] ss:$16 sps:$4 sm:$0xff]   ;;  %637 = vmatprep.subr.bf16.mxu1 %v3615_v13  ;;  %v3621_v17 = vld [vmem:[#allocation3 + $0x44] ss:$16 sps:$4 sm:$0xff]   ;;  %v3623_v18 = vld [vmem:[#allocation3 + $0x40] ss:$16 sps:$4 sm:$0xff]   ;;  %v87_v20 = vpack.c.bf16 %v81_v12, %v80_v11 }
  0x3c   :  { %708 = vmatprep.subr.bf16.mxu0 %v3614_v10  ;;  %v3626_v19 = vld [vmem:[#allocation3 + $0x4c] ss:$16 sps:$4 sm:$0xff]   ;;  %v3627_v21 = vld [vmem:[#allocation3 + $0x64] ss:$16 sps:$4 sm:$0xff]   ;;  %v3624_v22 = vld [vmem:[#allocation3 + $0x48] ss:$16 sps:$4 sm:$0xff]  }
  0x3d   :  { %638 = vmatpush1.bf16.msra.mxu1 %v3617_v14  ;;  %v3632_v23 = vld [vmem:[#allocation3 + $0x6c] ss:$16 sps:$4 sm:$0xff]   ;;  %v83_v25 = vld [vmem:[%s6191_s0 + $0x28] sm:$0xff]  ;;  %v3630_v28 = vld [vmem:[#allocation3 + $0x68] ss:$16 sps:$4 sm:$0xff]   ;;  %s3330_s21 = sshll.u32 %s4408_s20, 4  ;;  %s3331_s21 = int_to_ptr.vmem [resolvable:$true] %s3330_s21 }
  0x3e   :  { %3349 = vmatmul.mubr.msk.bf16.vlgmr.msra.gmra.mrb[0].mxu0 %vm112_vm1, %v86_v6  ;;  %639 = vmatprep.subr.bf16.mxu1 %v3621_v17  ;;  %v82_v24 = vld [vmem:[%s6191_s0 + $0x20] sm:$0xff]  ;;  %v3629_v26 = vld [vmem:[#allocation3 + $0x60] ss:$16 sps:$4 sm:$0xff]   ;;  %v3633_v27 = vld [vmem:[#allocation3 + $0x84] ss:$16 sps:$4 sm:$0xff]   ;;  %s4371_s22 = scalar_lea.vmem %s3331_s21, 128  ;;  %p4376_p11 = scmp.lt.s32.totalorder %s3331_s21, %s3331_s21 }
  0x3f   :  { %174 = vmatprep.mubr.bf16.mxu0 %v6202_v0  ;;  %709 = vmatpush1.bf16.msra.mxu0 %v3612_v9  ;;  %v3638_v29 = vld [vmem:[#allocation3 + $0x8c] ss:$16 sps:$4 sm:$0xff]   ;;  %v3635_v30 = vld [vmem:[#allocation3 + $0x80] ss:$16 sps:$4 sm:$0xff]   ;;  %v88_v31 = vpack.c.bf16 %v83_v25, %v82_v24  ;;  %v3639_v32 = vld [vmem:[#allocation3 + $0xa4] ss:$16 sps:$4 sm:$0xff]   ;;  %p4372_p10 = scmp.ne.s32.totalorder %s3331_s21, %s4371_s22  ;;  %p4377_p12 = scmp.lt.s32.totalorder %s4371_s22, %s4371_s22 }
  0x40   :  { %710 = vmatprep.subr.bf16.mxu0 %v3620_v16  ;;  %v3636_v33 = vld [vmem:[#allocation3 + $0x88] ss:$16 sps:$4 sm:$0xff]   ;;  %v3644_v34 = vld [vmem:[#allocation3 + $0xac] ss:$16 sps:$4 sm:$0xff]   ;;  %v85_v36 = vld [vmem:[%s6191_s0 + $0x38] sm:$0xff] }
  0x41   :  { %640 = vmatpush1.bf16.msra.mxu1 %v3623_v18  ;;  %v84_v35 = vld [vmem:[%s6191_s0 + $0x30] sm:$0xff]  ;;  %v3641_v37 = vld [vmem:[#allocation3 + $0xa0] ss:$16 sps:$4 sm:$0xff]   ;;  %v3645_v38 = vld [vmem:[#allocation3 + $0xc4] ss:$16 sps:$4 sm:$0xff]   ;;  %p4378_p13 = por %p4377_p12, %p4376_p11 }
  0x42   :  { %641 = vmatprep.subr.bf16.mxu1 %v3627_v21  ;;  %v3642_v39 = vld [vmem:[#allocation3 + $0xa8] ss:$16 sps:$4 sm:$0xff]   ;;  %v3650_v40 = vld [vmem:[#allocation3 + $0xcc] ss:$16 sps:$4 sm:$0xff]   ;;  %v3647_v41 = vld [vmem:[#allocation3 + $0xc0] ss:$16 sps:$4 sm:$0xff]   ;;  %v89_v42 = vpack.c.bf16 %v85_v36, %v84_v35 }
  0x43   :  { %711 = vmatpush1.bf16.msra.mxu0 %v3618_v15  ;;  %v3651_v43 = vld [vmem:[#allocation3 + $0xe4] ss:$16 sps:$4 sm:$0xff]   ;;  %v3648_v44 = vld [vmem:[#allocation3 + $0xc8] ss:$16 sps:$4 sm:$0xff]   ;;  %v3656_v45 = vld [vmem:[#allocation3 + $0xec] ss:$16 sps:$4 sm:$0xff]   ;;  %p4379_p0 = pnand %p4378_p13, %p4372_p10 }
  0x44   :  { %712 = vmatprep.subr.bf16.mxu0 %v3626_v19  ;;  %v3653_v46 = vld [vmem:[#allocation3 + $0xe0] ss:$16 sps:$4 sm:$0xff]   ;;  %v3657_v47 = vld [vmem:[#allocation3 + $0x104] ss:$16 sps:$4 sm:$0xff]   ;;  %v3654_v48 = vld [vmem:[#allocation3 + $0xe8] ss:$16 sps:$4 sm:$0xff]   ;;  %v93_v19 = vlaneseq }
  0x45   :  { %642 = vmatpush1.bf16.msra.mxu1 %v3629_v26  ;;  %v3662_v49 = vld [vmem:[#allocation3 + $0x10c] ss:$16 sps:$4 sm:$0xff]   ;;  %v3659_v50 = vld [vmem:[#allocation3 + $0x100] ss:$16 sps:$4 sm:$0xff]   ;;  %v3663_v51 = vld [vmem:[#allocation3 + $0x124] ss:$16 sps:$4 sm:$0xff]  }
  0x46   :  { %3350 = vmatmul.mubr.msk.bf16.gmra.mrb[4].mxu0 %vm112_vm1, %v87_v20  ;;  %643 = vmatprep.subr.bf16.mxu1 %v3633_v27  ;;  %v3660_v52 = vld [vmem:[#allocation3 + $0x108] ss:$16 sps:$4 sm:$0xff]   ;;  %v3668_v53 = vld [vmem:[#allocation3 + $0x12c] ss:$16 sps:$4 sm:$0xff]   ;;  %v3665_v54 = vld [vmem:[#allocation3 + $0x120] ss:$16 sps:$4 sm:$0xff]  }
  0x47   :  { %184 = vmatprep.mubr.bf16.mxu0 %v6202_v0  ;;  %713 = vmatpush1.bf16.msra.mxu0 %v3624_v22  ;;  %v3666_v55 = vld [vmem:[#allocation3 + $0x128] ss:$16 sps:$4 sm:$0xff]   ;;  %v3669_v56 = vld [vmem:[#allocation3 + $0x144] ss:$16 sps:$4 sm:$0xff]   ;;  %v3671_v57 = vld [vmem:[#allocation3 + $0x140] ss:$16 sps:$4 sm:$0xff]  }
  0x48   :  { %714 = vmatprep.subr.bf16.mxu0 %v3632_v23  ;;  %v3674_v58 = vld [vmem:[#allocation3 + $0x14c] ss:$16 sps:$4 sm:$0xff]   ;;  %v3675_v59 = vld [vmem:[#allocation3 + $0x164] ss:$16 sps:$4 sm:$0xff]   ;;  %v3672_v60 = vld [vmem:[#allocation3 + $0x148] ss:$16 sps:$4 sm:$0xff]  }
  0x49   :  { %644 = vmatpush1.bf16.msra.mxu1 %v3635_v30  ;;  %v3680_v61 = vld [vmem:[#allocation3 + $0x16c] ss:$16 sps:$4 sm:$0xff]   ;;  %v3677_v62 = vld [vmem:[#allocation3 + $0x160] ss:$16 sps:$4 sm:$0xff]   ;;  %v3681_v63 = vld [vmem:[#allocation3 + $0x184] ss:$16 sps:$4 sm:$0xff]  }
  0x4a   :  { %645 = vmatprep.subr.bf16.mxu1 %v3639_v32  ;;  %v3678_v1 = vld [vmem:[#allocation3 + $0x168] ss:$16 sps:$4 sm:$0xff]   ;;  %v3686_v2 = vld [vmem:[#allocation3 + $0x18c] ss:$16 sps:$4 sm:$0xff]   ;;  %v3683_v3 = vld [vmem:[#allocation3 + $0x180] ss:$16 sps:$4 sm:$0xff]  }
  0x4b   :  { %715 = vmatpush1.bf16.msra.mxu0 %v3630_v28  ;;  %v3687_v4 = vld [vmem:[#allocation3 + $0x1a4] ss:$16 sps:$4 sm:$0xff]   ;;  %v3684_v5 = vld [vmem:[#allocation3 + $0x188] ss:$16 sps:$4 sm:$0xff]   ;;  %v3692_v6 = vld [vmem:[#allocation3 + $0x1ac] ss:$16 sps:$4 sm:$0xff]  }
  0x4c   :  { %716 = vmatprep.subr.bf16.mxu0 %v3638_v29  ;;  %v3689_v7 = vld [vmem:[#allocation3 + $0x1a0] ss:$16 sps:$4 sm:$0xff]   ;;  %v3690_v8 = vld [vmem:[#allocation3 + $0x1a8] ss:$16 sps:$4 sm:$0xff]   ;;  %v3693_v9 = vld [vmem:[#allocation3 + $0x1c4] ss:$16 sps:$4 sm:$0xff]  }
  0x4d   :  { %646 = vmatpush1.bf16.msra.mxu1 %v3641_v37  ;;  %v3698_v10 = vld [vmem:[#allocation3 + $0x1cc] ss:$16 sps:$4 sm:$0xff]   ;;  %v3695_v11 = vld [vmem:[#allocation3 + $0x1c0] ss:$16 sps:$4 sm:$0xff]   ;;  %v3696_v12 = vld [vmem:[#allocation3 + $0x1c8] ss:$16 sps:$4 sm:$0xff]  }
  0x4e   :  { %3351 = vmatmul.mubr.msk.bf16.gmra.mrb[8].mxu0 %vm112_vm1, %v88_v31  ;;  %647 = vmatprep.subr.bf16.mxu1 %v3645_v38  ;;  %v3699_v13 = vld [vmem:[#allocation3 + $0x1e4] ss:$16 sps:$4 sm:$0xff]   ;;  %v3704_v14 = vld [vmem:[#allocation3 + $0x1ec] ss:$16 sps:$4 sm:$0xff]   ;;  %v3701_v15 = vld [vmem:[#allocation3 + $0x1e0] ss:$16 sps:$4 sm:$0xff]  }
  0x4f   :  { %194 = vmatprep.mubr.bf16.mxu0 %v6202_v0  ;;  %717 = vmatpush1.bf16.msra.mxu0 %v3636_v33  ;;  %v3702_v16 = vld [vmem:[#allocation3 + $0x1e8] ss:$16 sps:$4 sm:$0xff]   ;;  %v4551_v17 = vld [vmem:[#allocation6 + $0x4] ss:$16 sps:$4 sm:$0xff]   ;;  %v4553_v18 = vld [vmem:[#allocation6 + $0xc] ss:$16 sps:$4 sm:$0xff]  }
  0x50   :  { %718 = vmatprep.subr.bf16.mxu0 %v3644_v34  ;;  %6505 = vst [vmem:[#allocation13_spill] sm:$0xff] %v4551_v17  ;;  %6506 = vst [vmem:[#allocation14_spill] sm:$0xff] %v4553_v18  ;;  %v4557_v20 = vshrl.u32 %v93_v19, 7  ;;  %v91_v22 = vld [vmem:[%s6193_s2] sm:$0x3] }
  0x51   :  { %648 = vmatpush1.bf16.msra.mxu1 %v3647_v41  ;;  %v4578_v41 = vld [vmem:[#allocation6] ss:$16 sps:$4 sm:$0xff]  }
  0x52   :  { %649 = vmatprep.subr.bf16.mxu1 %v3651_v43  ;;  %6507 = vst [vmem:[#allocation15_spill] sm:$0xff] %v4557_v20  ;;  %v4560_v21 = vsub.s32 0, %v4557_v20  ;;  %v4566_v23 = vsub.s32 1, %v4557_v20 }
  0x53   :  { %719 = vmatpush1.bf16.msra.mxu0 %v3642_v39 }
  0x54   :  { %720 = vmatprep.subr.bf16.mxu0 %v3650_v40  ;;  %6508 = vst [vmem:[#allocation16_spill] sm:$0xff] %v4560_v21  ;;  %6509 = vst [vmem:[#allocation17_spill] sm:$0xff] %v4566_v23  ;;  %v4569_v24 = vrot.slane %v91_v22, %v4560_v21  ;;  %v4572_v25 = vrot.slane %v91_v22, %v4566_v23 }
  0x55   :  { %650 = vmatpush1.bf16.msra.mxu1 %v3653_v46  ;;  %v4585_v46 = vld [vmem:[#allocation6 + $0x2c] ss:$16 sps:$4 sm:$0xff]  }
  0x56   :  { %3352 = vmatmul.mubr.msk.bf16.gmra.mrb[12].mxu0 %vm112_vm1, %v89_v42  ;;  %651 = vmatprep.subr.bf16.mxu1 %v3657_v47  ;;  %v4580_v42 = vld [vmem:[#allocation6 + $0x8] ss:$16 sps:$4 sm:$0xff]  }
  0x57   :  { %721 = vmatpush1.bf16.msra.mxu0 %v3648_v44 }
  0x58   :  { %722 = vmatprep.subr.bf16.mxu0 %v3656_v45  ;;  %v4583_v45 = vld [vmem:[#allocation6 + $0x24] ss:$16 sps:$4 sm:$0xff]  }
  0x59   :  { %652 = vmatpush1.bf16.msra.mxu1 %v3659_v50 }
  0x5a   :  { %653 = vmatprep.subr.bf16.mxu1 %v3663_v51 }
  0x5b   :  { %723 = vmatpush1.bf16.msra.mxu0 %v3654_v48 }
  0x5c   :  { %724 = vmatprep.subr.bf16.mxu0 %v3662_v49 }
  0x5d   :  { %654 = vmatpush1.bf16.msra.mxu1 %v3665_v54 }
  0x5e   :  { %655 = vmatprep.subr.bf16.mxu1 %v3669_v56  ;;  %v4598_v56 = vld [vmem:[#allocation6 + $0x44] ss:$16 sps:$4 sm:$0xff]  }
  0x5f   :  { %725 = vmatpush1.bf16.msra.mxu0 %v3660_v52  ;;  %v4592_v52 = vld [vmem:[#allocation6 + $0x20] ss:$16 sps:$4 sm:$0xff]  }
  0x60   :  { %726 = vmatprep.subr.bf16.mxu0 %v3668_v53  ;;  %v4594_v53 = vld [vmem:[#allocation6 + $0x28] ss:$16 sps:$4 sm:$0xff]  }
  0x61   :  { %656 = vmatpush1.bf16.msra.mxu1 %v3671_v57  ;;  %v4600_v57 = vld [vmem:[#allocation6 + $0x4c] ss:$16 sps:$4 sm:$0xff]  }
  0x62   :  { %657 = vmatprep.subr.bf16.mxu1 %v3675_v59 }
  0x63   :  { %727 = vmatpush1.bf16.msra.mxu0 %v3666_v55 }
  0x64   :  { %728 = vmatprep.subr.bf16.mxu0 %v3674_v58 }
  0x65   :  { %658 = vmatpush1.bf16.msra.mxu1 %v3677_v62 }
  0x66   :  { %659 = vmatprep.subr.bf16.mxu1 %v3681_v63  ;;  %v4604_v63 = vld [vmem:[#allocation6 + $0x40] ss:$16 sps:$4 sm:$0xff]  }
  0x67   :  { %729 = vmatpush1.bf16.msra.mxu0 %v3672_v60 }
  0x68   :  { %730 = vmatprep.subr.bf16.mxu0 %v3680_v61 }
  0x69   :  { %660 = vmatpush1.bf16.msra.mxu1 %v3683_v3 }
  0x6a   :  { %661 = vmatprep.subr.bf16.mxu1 %v3687_v4  ;;  %v4611_v4 = vld [vmem:[#allocation6 + $0x64] ss:$16 sps:$4 sm:$0xff]  }
  0x6b   :  { %731 = vmatpush1.bf16.msra.mxu0 %v3678_v1  ;;  %v4606_v1 = vld [vmem:[#allocation6 + $0x48] ss:$16 sps:$4 sm:$0xff]  }
  0x6c   :  { %732 = vmatprep.subr.bf16.mxu0 %v3686_v2 }
  0x6d   :  { %662 = vmatpush1.bf16.msra.mxu1 %v3689_v7 }
  0x6e   :  { %663 = vmatprep.subr.bf16.mxu1 %v3693_v9 }
  0x6f   :  { %733 = vmatpush1.bf16.msra.mxu0 %v3684_v5  ;;  %v4613_v5 = vld [vmem:[#allocation6 + $0x6c] ss:$16 sps:$4 sm:$0xff]  }
  0x70   :  { %734 = vmatprep.subr.bf16.mxu0 %v3692_v6 }
  0x71   :  { %664 = vmatpush1.bf16.msra.mxu1 %v3695_v11  ;;  %v4620_v11 = vld [vmem:[#allocation6 + $0x60] ss:$16 sps:$4 sm:$0xff]  }
  0x72   :  { %665 = vmatprep.subr.bf16.mxu1 %v3699_v13 }
  0x73   :  { %735 = vmatpush1.bf16.msra.mxu0 %v3690_v8 }
  0x74   :  { %736 = vmatprep.subr.bf16.mxu0 %v3698_v10 }
  0x75   :  { %666 = vmatpush1.bf16.msra.mxu1 %v3701_v15  ;;  %v4626_v15 = vld [vmem:[#allocation6 + $0x84] ss:$16 sps:$4 sm:$0xff]  }
  0x76   :  { %1012 = vmatprep.subr.bf16.mxu1 %v4551_v17 }
  0x77   :  { %737 = vmatpush1.bf16.msra.mxu0 %v3696_v12  ;;  %v4622_v12 = vld [vmem:[#allocation6 + $0x68] ss:$16 sps:$4 sm:$0xff]  }
  0x78   :  { %738 = vmatprep.subr.bf16.mxu0 %v3704_v14 }
  0x7b   :  { %739 = vmatpush1.bf16.msra.mxu0 %v3702_v16  ;;  %v4628_v16 = vld [vmem:[#allocation6 + $0x8c] ss:$16 sps:$4 sm:$0xff]  }
  0x7c   :  { %1053 = vmatprep.subr.bf16.mxu0 %v4553_v18 }
 0x111   :  { %v166_v26 = vpop.f32.mrb[0].mxu0 }
 0x112   :  { %v167_v27 = vadd.f32 %v166_v26, %v4569_v24  ;;  %v168_v28 = vpop.f32.mrb[1].mxu0 }
 0x113   :  { %v169_v29 = vadd.f32 %v168_v28, %v4572_v25  ;;  %v170_v30 = vpop.f32.mrb[2].mxu0 }
 0x114   :  { %v171_v31 = vadd.f32 %v170_v30, %v4569_v24  ;;  %v172_v32 = vpop.f32.mrb[3].mxu0  ;;  %v205_v34 = vmax.f32 %v167_v27, 0.0  ;;  %v4634_v30 = vld [vmem:[#allocation6 + $0x88] ss:$16 sps:$4 sm:$0xff]  }
 0x115   :  { %v173_v33 = vadd.f32 %v172_v32, %v4572_v25  ;;  %v206_v36 = vmax.f32 %v169_v29, 0.0  ;;  %v4632_v29 = vld [vmem:[#allocation6 + $0x80] ss:$16 sps:$4 sm:$0xff]  }
 0x116   :  { %v207_v35 = vmax.f32 %v171_v31, 0.0 }
 0x117   :  { %v208_v37 = vmax.f32 %v173_v33, 0.0  ;;  %v4639_v33 = vld [vmem:[#allocation6 + $0xa4] ss:$16 sps:$4 sm:$0xff]  }
 0x118   :  { %v221_v38 = vpack.c.bf16 %v207_v35, %v205_v34  ;;  %v4641_v34 = vld [vmem:[#allocation6 + $0xac] ss:$16 sps:$4 sm:$0xff]  }
 0x119   :  { %v176_v39 = vpop.f32.mrb[4].mxu0  ;;  %v222_v40 = vpack.c.bf16 %v208_v37, %v206_v36 }
 0x11a   :  { %v177_v43 = vadd.f32 %v176_v39, %v4569_v24  ;;  %v178_v44 = vpop.f32.mrb[5].mxu0 }
 0x11b   :  { %v179_v47 = vadd.f32 %v178_v44, %v4572_v25  ;;  %v180_v48 = vpop.f32.mrb[6].mxu0  ;;  %667 = vmatprep.mubr.bf16.mxu1 %v222_v40  ;;  %740 = vmatprep.mubr.bf16.mxu0 %v222_v40  ;;  %v4648_v40 = vld [vmem:[#allocation6 + $0xa0] ss:$16 sps:$4 sm:$0xff]  }
 0x11c   :  { %v181_v49 = vadd.f32 %v180_v48, %v4569_v24  ;;  %v182_v50 = vpop.f32.mrb[7].mxu0  ;;  %668 = vmatmul.mubr.bf16.vlgmr.msra.gmra.mrb[0].mxu1 %v221_v38  ;;  %741 = vmatmul.mubr.bf16.vlgmr.msra.gmra.mrb[16].mxu0 %v221_v38  ;;  %v209_v54 = vmax.f32 %v177_v43, 0.0  ;;  %v4650_v43 = vld [vmem:[#allocation6 + $0xa8] ss:$16 sps:$4 sm:$0xff]   ;;  %v4656_v48 = vld [vmem:[#allocation6 + $0xcc] ss:$16 sps:$4 sm:$0xff]  }
 0x11d   :  { %v183_v51 = vadd.f32 %v182_v50, %v4572_v25  ;;  %1013 = vmatpush1.bf16.msra.mxu1 %v4578_v41  ;;  %1054 = vmatpush1.bf16.msra.mxu0 %v4580_v42  ;;  %v210_v58 = vmax.f32 %v179_v47, 0.0 }
 0x11e   :  { %v211_v55 = vmax.f32 %v181_v49, 0.0  ;;  %1014 = vmatprep.subr.bf16.mxu1 %v4583_v45  ;;  %1055 = vmatprep.subr.bf16.mxu0 %v4585_v46 }
 0x11f   :  { %v212_v59 = vmax.f32 %v183_v51, 0.0 }
 0x120   :  { %v223_v60 = vpack.c.bf16 %v211_v55, %v209_v54  ;;  %v4660_v54 = vld [vmem:[#allocation6 + $0xc0] ss:$16 sps:$4 sm:$0xff]   ;;  %v4662_v55 = vld [vmem:[#allocation6 + $0xc8] ss:$16 sps:$4 sm:$0xff]  }
 0x121   :  { %v224_v61 = vpack.c.bf16 %v212_v59, %v210_v58  ;;  %1015 = vmatpush1.bf16.msra.mxu1 %v4592_v52  ;;  %v186_v62 = vpop.f32.mrb[8].mxu0  ;;  %1056 = vmatpush1.bf16.msra.mxu0 %v4594_v53  ;;  %v4666_v58 = vld [vmem:[#allocation6 + $0xe4] ss:$16 sps:$4 sm:$0xff]   ;;  %v4668_v59 = vld [vmem:[#allocation6 + $0xec] ss:$16 sps:$4 sm:$0xff]  }
 0x122   :  { %v187_v2 = vadd.f32 %v186_v62, %v4569_v24  ;;  %v188_v3 = vpop.f32.mrb[9].mxu0  ;;  %1016 = vmatprep.subr.bf16.mxu1 %v4598_v56  ;;  %1057 = vmatprep.subr.bf16.mxu0 %v4600_v57  ;;  %v4684_v62 = vld [vmem:[#allocation8 + $0x4] ss:$16 sps:$4 sm:$0xff]  }
 0x123   :  { %v189_v6 = vadd.f32 %v188_v3, %v4572_v25  ;;  %v190_v7 = vpop.f32.mrb[10].mxu0  ;;  %677 = vmatprep.mubr.bf16.mxu1 %v224_v61  ;;  %750 = vmatprep.mubr.bf16.mxu0 %v224_v61  ;;  %v4674_v61 = vld [vmem:[#allocation6 + $0xe8] ss:$16 sps:$4 sm:$0xff]   ;;  %v4688_v3 = vld [vmem:[#allocation8] ss:$16 sps:$4 sm:$0xff]  }
 0x124   :  { %v191_v8 = vadd.f32 %v190_v7, %v4569_v24  ;;  %v192_v9 = vpop.f32.mrb[11].mxu0  ;;  %678 = vmatmul.mubr.bf16.gmra.mrb[4].mxu1 %v223_v60  ;;  %751 = vmatmul.mubr.bf16.gmra.mrb[20].mxu0 %v223_v60  ;;  %v213_v13 = vmax.f32 %v187_v2, 0.0  ;;  %v4672_v60 = vld [vmem:[#allocation6 + $0xe0] ss:$16 sps:$4 sm:$0xff]   ;;  %v4686_v2 = vld [vmem:[#allocation8 + $0xc] ss:$16 sps:$4 sm:$0xff]  }
 0x125   :  { %v193_v10 = vadd.f32 %v192_v9, %v4572_v25  ;;  %1017 = vmatpush1.bf16.msra.mxu1 %v4604_v63  ;;  %1058 = vmatpush1.bf16.msra.mxu0 %v4606_v1  ;;  %v214_v19 = vmax.f32 %v189_v6, 0.0  ;;  %v4690_v6 = vld [vmem:[#allocation8 + $0x8] ss:$16 sps:$4 sm:$0xff]   ;;  %v4696_v7 = vld [vmem:[#allocation8 + $0x24] ss:$16 sps:$4 sm:$0xff]  }
 0x126   :  { %v215_v14 = vmax.f32 %v191_v8, 0.0  ;;  %1018 = vmatprep.subr.bf16.mxu1 %v4611_v4  ;;  %1059 = vmatprep.subr.bf16.mxu0 %v4613_v5  ;;  %v4698_v8 = vld [vmem:[#allocation8 + $0x2c] ss:$16 sps:$4 sm:$0xff]   ;;  %v4700_v9 = vld [vmem:[#allocation8 + $0x20] ss:$16 sps:$4 sm:$0xff]  }
 0x127   :  { %v216_v22 = vmax.f32 %v193_v10, 0.0  ;;  %v4702_v10 = vld [vmem:[#allocation8 + $0x28] ss:$16 sps:$4 sm:$0xff]  }
 0x128   :  { %v225_v26 = vpack.c.bf16 %v215_v14, %v213_v13  ;;  %v4708_v13 = vld [vmem:[#allocation8 + $0x44] ss:$16 sps:$4 sm:$0xff]   ;;  %v4710_v14 = vld [vmem:[#allocation8 + $0x4c] ss:$16 sps:$4 sm:$0xff]  }
 0x129   :  { %v226_v27 = vpack.c.bf16 %v216_v22, %v214_v19  ;;  %1019 = vmatpush1.bf16.msra.mxu1 %v4620_v11  ;;  %v196_v28 = vpop.f32.mrb[12].mxu0  ;;  %1060 = vmatpush1.bf16.msra.mxu0 %v4622_v12  ;;  %6510 = vst [vmem:[#allocation18_spill] sm:$0xff] %v4708_v13  ;;  %6511 = vst [vmem:[#allocation19_spill] sm:$0xff] %v4710_v14  ;;  %v4712_v19 = vld [vmem:[#allocation8 + $0x40] ss:$16 sps:$4 sm:$0xff]  }
 0x12a   :  { %v197_v31 = vadd.f32 %v196_v28, %v4569_v24  ;;  %v198_v32 = vpop.f32.mrb[13].mxu0  ;;  %1020 = vmatprep.subr.bf16.mxu1 %v4626_v15  ;;  %1061 = vmatprep.subr.bf16.mxu0 %v4628_v16  ;;  %6512 = vst [vmem:[#allocation20_spill] sm:$0xff] %v4712_v19  ;;  %v4714_v22 = vld [vmem:[#allocation8 + $0x48] ss:$16 sps:$4 sm:$0xff]   ;;  %v4724_v28 = vld [vmem:[#allocation8 + $0x60] ss:$16 sps:$4 sm:$0xff]  }
 0x12b   :  { %v199_v35 = vadd.f32 %v198_v32, %v4572_v25  ;;  %v200_v36 = vpop.f32.mrb[14].mxu0  ;;  %687 = vmatprep.mubr.bf16.mxu1 %v226_v27  ;;  %760 = vmatprep.mubr.bf16.mxu0 %v226_v27  ;;  %6513 = vst [vmem:[#allocation21_spill] sm:$0xff] %v4714_v22  ;;  %v4722_v27 = vld [vmem:[#allocation8 + $0x6c] ss:$16 sps:$4 sm:$0xff]   ;;  %6516 = vst [vmem:[#allocation24_spill] sm:$0xff] %v4724_v28 }
 0x12c   :  { %v201_v37 = vadd.f32 %v200_v36, %v4569_v24  ;;  %v202_v38 = vpop.f32.mrb[15].mxu0  ;;  %688 = vmatmul.mubr.bf16.gmra.mrb[8].mxu1 %v225_v26  ;;  %761 = vmatmul.mubr.bf16.gmra.mrb[24].mxu0 %v225_v26  ;;  %v217_v44 = vmax.f32 %v197_v31, 0.0  ;;  %v4654_v24 = vld [vmem:[#allocation6 + $0xc4] ss:$16 sps:$4 sm:$0xff]   ;;  %6515 = vst [vmem:[#allocation23_spill] sm:$0xff] %v4722_v27 }
 0x12d   :  { %v203_v39 = vadd.f32 %v202_v38, %v4572_v25  ;;  %1021 = vmatpush1.bf16.msra.mxu1 %v4632_v29  ;;  %1062 = vmatpush1.bf16.msra.mxu0 %v4634_v30  ;;  %v218_v49 = vmax.f32 %v199_v35, 0.0  ;;  %v4720_v26 = vld [vmem:[#allocation8 + $0x64] ss:$16 sps:$4 sm:$0xff]   ;;  %v4726_v31 = vld [vmem:[#allocation8 + $0x68] ss:$16 sps:$4 sm:$0xff]  }
 0x12e   :  { %v219_v47 = vmax.f32 %v201_v37, 0.0  ;;  %1022 = vmatprep.subr.bf16.mxu1 %v4639_v33  ;;  %1063 = vmatprep.subr.bf16.mxu0 %v4641_v34  ;;  %6514 = vst [vmem:[#allocation22_spill] sm:$0xff] %v4720_v26  ;;  %6517 = vst [vmem:[#allocation25_spill] sm:$0xff] %v4726_v31  ;;  %v4732_v32 = vld [vmem:[#allocation8 + $0x84] ss:$16 sps:$4 sm:$0xff]  }
 0x12f   :  { %v220_v25 = vmax.f32 %v203_v39, 0.0  ;;  %6518 = vst [vmem:[#allocation26_spill] sm:$0xff] %v4732_v32  ;;  %v4734_v35 = vld [vmem:[#allocation8 + $0x8c] ss:$16 sps:$4 sm:$0xff]   ;;  %v4738_v36 = vld [vmem:[#allocation8 + $0x80] ss:$16 sps:$4 sm:$0xff]  }
 0x130   :  { %v227_v50 = vpack.c.bf16 %v219_v47, %v217_v44  ;;  %6519 = vst [vmem:[#allocation27_spill] sm:$0xff] %v4734_v35  ;;  %6520 = vst [vmem:[#allocation28_spill] sm:$0xff] %v4738_v36  ;;  %v4740_v37 = vld [vmem:[#allocation8 + $0x88] ss:$16 sps:$4 sm:$0xff]   ;;  %v4744_v38 = vld [vmem:[#allocation8 + $0xa4] ss:$16 sps:$4 sm:$0xff]  }
 0x131   :  { %v228_v51 = vpack.c.bf16 %v220_v25, %v218_v49  ;;  %1023 = vmatpush1.bf16.msra.mxu1 %v4648_v40  ;;  %1064 = vmatpush1.bf16.msra.mxu0 %v4650_v43  ;;  %6521 = vst [vmem:[#allocation29_spill] sm:$0xff] %v4740_v37  ;;  %6522 = vst [vmem:[#allocation30_spill] sm:$0xff] %v4744_v38  ;;  %v4746_v39 = vld [vmem:[#allocation8 + $0xac] ss:$16 sps:$4 sm:$0xff]   ;;  %v4748_v44 = vld [vmem:[#allocation8 + $0xa0] ss:$16 sps:$4 sm:$0xff]  }
 0x132   :  { %1024 = vmatprep.subr.bf16.mxu1 %v4654_v24  ;;  %1065 = vmatprep.subr.bf16.mxu0 %v4656_v48  ;;  %6523 = vst [vmem:[#allocation31_spill] sm:$0xff] %v4746_v39  ;;  %6524 = vst [vmem:[#allocation32_spill] sm:$0xff] %v4748_v44  ;;  %v4750_v47 = vld [vmem:[#allocation8 + $0xa8] ss:$16 sps:$4 sm:$0xff]   ;;  %v4756_v49 = vld [vmem:[#allocation8 + $0xc4] ss:$16 sps:$4 sm:$0xff]  }
 0x133   :  { %697 = vmatprep.mubr.bf16.mxu1 %v228_v51  ;;  %770 = vmatprep.mubr.bf16.mxu0 %v228_v51  ;;  %6525 = vst [vmem:[#allocation33_spill] sm:$0xff] %v4750_v47  ;;  %6526 = vst [vmem:[#allocation34_spill] sm:$0xff] %v4756_v49  ;;  %v4758_v25 = vld [vmem:[#allocation8 + $0xcc] ss:$16 sps:$4 sm:$0xff]   ;;  %v4762_v51 = vld [vmem:[#allocation8 + $0xc8] ss:$16 sps:$4 sm:$0xff]  }
 0x134   :  { %698 = vmatmul.mubr.bf16.gmra.mrb[12].mxu1 %v227_v50  ;;  %771 = vmatmul.mubr.bf16.gmra.mrb[28].mxu0 %v227_v50  ;;  %6527 = vst [vmem:[#allocation35_spill] sm:$0xff] %v4758_v25  ;;  %v4760_v50 = vld [vmem:[#allocation8 + $0xc0] ss:$16 sps:$4 sm:$0xff]   ;;  %6529 = vst [vmem:[#allocation37_spill] sm:$0xff] %v4762_v51 }
 0x135   :  { %1025 = vmatpush1.bf16.msra.mxu1 %v4660_v54  ;;  %1066 = vmatpush1.bf16.msra.mxu0 %v4662_v55  ;;  %6528 = vst [vmem:[#allocation36_spill] sm:$0xff] %v4760_v50 }
 0x136   :  { %1026 = vmatprep.subr.bf16.mxu1 %v4666_v58  ;;  %1067 = vmatprep.subr.bf16.mxu0 %v4668_v59 }
 0x137   :  { %1044 = vmatprep.mubr.bf16.mxu1 %v6202_v0  ;;  %1085 = vmatprep.mubr.bf16.mxu0 %v6202_v0 }
 0x139   :  { %1027 = vmatpush1.bf16.msra.mxu1 %v4672_v60  ;;  %1068 = vmatpush1.bf16.msra.mxu0 %v4674_v61 }
 0x13a   :  { %1530 = vmatprep.subr.bf16.mxu1 %v4684_v62  ;;  %1571 = vmatprep.subr.bf16.mxu0 %v4686_v2 }
 0x13c   :  { %1045 = vmatmul.mubr.bf16.vlgmr.msra.gmra.mrb[16].mxu1 %v6202_v0  ;;  %1086 = vmatmul.mubr.bf16.vlgmr.msra.gmra.mrb[32].mxu0 %v6202_v0  ;;  %v4768_v0 = vld [vmem:[#allocation8 + $0xe4] ss:$16 sps:$4 sm:$0xff]  }
 0x13d   :  { %1531 = vmatpush1.bf16.msra.mxu1 %v4688_v3  ;;  %1572 = vmatpush1.bf16.msra.mxu0 %v4690_v6  ;;  %6530 = vst [vmem:[#allocation38_spill] sm:$0xff] %v4768_v0 }
 0x13e   :  { %1532 = vmatprep.subr.bf16.mxu1 %v4696_v7  ;;  %1573 = vmatprep.subr.bf16.mxu0 %v4698_v8 }
 0x141   :  { %1533 = vmatpush1.bf16.msra.mxu1 %v4700_v9  ;;  %1574 = vmatpush1.bf16.msra.mxu0 %v4702_v10 }
 0x142   :  { %1534 = vmatprep.subr.bf16.mxu1 %v4708_v13  ;;  %1575 = vmatprep.subr.bf16.mxu0 %v4710_v14 }
 0x145   :  { %1535 = vmatpush1.bf16.msra.mxu1 %v4712_v19  ;;  %1576 = vmatpush1.bf16.msra.mxu0 %v4714_v22 }
 0x146   :  { %1536 = vmatprep.subr.bf16.mxu1 %v4720_v26  ;;  %1577 = vmatprep.subr.bf16.mxu0 %v4722_v27 }
 0x149   :  { %1537 = vmatpush1.bf16.msra.mxu1 %v4724_v28  ;;  %1578 = vmatpush1.bf16.msra.mxu0 %v4726_v31 }
 0x14a   :  { %1538 = vmatprep.subr.bf16.mxu1 %v4732_v32  ;;  %1579 = vmatprep.subr.bf16.mxu0 %v4734_v35 }
 0x14d   :  { %1539 = vmatpush1.bf16.msra.mxu1 %v4738_v36  ;;  %1580 = vmatpush1.bf16.msra.mxu0 %v4740_v37  ;;  %v4850_v37 = vld [vmem:[#allocation8 + $0x1cc] ss:$16 sps:$4 sm:$0xff]   ;;  %v4405_v36 = vmov 0.0|0.0  }
 0x14e   :  { %1540 = vmatprep.subr.bf16.mxu1 %v4744_v38  ;;  %1581 = vmatprep.subr.bf16.mxu0 %v4746_v39  ;;  %v4774_v39 = vld [vmem:[#allocation8 + $0xe8] ss:$16 sps:$4 sm:$0xff]   ;;  %v4848_v38 = vld [vmem:[#allocation8 + $0x1c4] ss:$16 sps:$4 sm:$0xff]   ;;  %6559 = vst [vmem:[#allocation67_spill] sm:$0xff] %v4850_v37 }
 0x14f   :  { %6533 = vst [vmem:[#allocation41_spill] sm:$0xff] %v4774_v39  ;;  %6558 = vst [vmem:[#allocation66_spill] sm:$0xff] %v4848_v38  ;;  %1562 = vmatprep.mubr.bf16.mxu1 %v4405_v36  ;;  %1603 = vmatprep.mubr.bf16.mxu0 %v4405_v36  ;;  %v6309_v36 = vsub.s32 2, %v4557_v20 }
 0x151   :  { %1541 = vmatpush1.bf16.msra.mxu1 %v4748_v44  ;;  %1582 = vmatpush1.bf16.msra.mxu0 %v4750_v47  ;;  %v4770_v44 = vld [vmem:[#allocation8 + $0xec] ss:$16 sps:$4 sm:$0xff]   ;;  %v4772_v47 = vld [vmem:[#allocation8 + $0xe0] ss:$16 sps:$4 sm:$0xff]  }
 0x152   :  { %1542 = vmatprep.subr.bf16.mxu1 %v4756_v49  ;;  %1583 = vmatprep.subr.bf16.mxu0 %v4758_v25  ;;  %6531 = vst [vmem:[#allocation39_spill] sm:$0xff] %v4770_v44  ;;  %6532 = vst [vmem:[#allocation40_spill] sm:$0xff] %v4772_v47  ;;  %v4780_v25 = vld [vmem:[#allocation8 + $0x104] ss:$16 sps:$4 sm:$0xff]   ;;  %v4786_v49 = vld [vmem:[#allocation8 + $0x108] ss:$16 sps:$4 sm:$0xff]  }
 0x153   :  { %6534 = vst [vmem:[#allocation42_spill] sm:$0xff] %v4780_v25  ;;  %6537 = vst [vmem:[#allocation45_spill] sm:$0xff] %v4786_v49 }
 0x155   :  { %1543 = vmatpush1.bf16.msra.mxu1 %v4760_v50  ;;  %1584 = vmatpush1.bf16.msra.mxu0 %v4762_v51  ;;  %v4782_v50 = vld [vmem:[#allocation8 + $0x10c] ss:$16 sps:$4 sm:$0xff]   ;;  %v4784_v51 = vld [vmem:[#allocation8 + $0x100] ss:$16 sps:$4 sm:$0xff]  }
 0x156   :  { %1544 = vmatprep.subr.bf16.mxu1 %v4768_v0  ;;  %1585 = vmatprep.subr.bf16.mxu0 %v4770_v44  ;;  %6535 = vst [vmem:[#allocation43_spill] sm:$0xff] %v4782_v50  ;;  %6536 = vst [vmem:[#allocation44_spill] sm:$0xff] %v4784_v51  ;;  %v4792_v44 = vld [vmem:[#allocation8 + $0x124] ss:$16 sps:$4 sm:$0xff]   ;;  %v4798_v0 = vld [vmem:[#allocation8 + $0x128] ss:$16 sps:$4 sm:$0xff]  }
 0x157   :  { %6538 = vst [vmem:[#allocation46_spill] sm:$0xff] %v4792_v44  ;;  %6541 = vst [vmem:[#allocation49_spill] sm:$0xff] %v4798_v0 }
 0x159   :  { %1545 = vmatpush1.bf16.msra.mxu1 %v4772_v47  ;;  %1586 = vmatpush1.bf16.msra.mxu0 %v4774_v39  ;;  %v4794_v47 = vld [vmem:[#allocation8 + $0x12c] ss:$16 sps:$4 sm:$0xff]   ;;  %v4796_v39 = vld [vmem:[#allocation8 + $0x120] ss:$16 sps:$4 sm:$0xff]  }
 0x15a   :  { %1546 = vmatprep.subr.bf16.mxu1 %v4780_v25  ;;  %1587 = vmatprep.subr.bf16.mxu0 %v4782_v50  ;;  %6539 = vst [vmem:[#allocation47_spill] sm:$0xff] %v4794_v47  ;;  %6540 = vst [vmem:[#allocation48_spill] sm:$0xff] %v4796_v39  ;;  %v4804_v50 = vld [vmem:[#allocation8 + $0x144] ss:$16 sps:$4 sm:$0xff]   ;;  %v4810_v25 = vld [vmem:[#allocation8 + $0x148] ss:$16 sps:$4 sm:$0xff]  }
 0x15b   :  { %6542 = vst [vmem:[#allocation50_spill] sm:$0xff] %v4804_v50  ;;  %6545 = vst [vmem:[#allocation53_spill] sm:$0xff] %v4810_v25 }
 0x15d   :  { %1547 = vmatpush1.bf16.msra.mxu1 %v4784_v51  ;;  %1588 = vmatpush1.bf16.msra.mxu0 %v4786_v49  ;;  %v4806_v51 = vld [vmem:[#allocation8 + $0x14c] ss:$16 sps:$4 sm:$0xff]   ;;  %v4808_v49 = vld [vmem:[#allocation8 + $0x140] ss:$16 sps:$4 sm:$0xff]  }
 0x15e   :  { %1548 = vmatprep.subr.bf16.mxu1 %v4792_v44  ;;  %1589 = vmatprep.subr.bf16.mxu0 %v4794_v47  ;;  %6543 = vst [vmem:[#allocation51_spill] sm:$0xff] %v4806_v51  ;;  %6544 = vst [vmem:[#allocation52_spill] sm:$0xff] %v4808_v49  ;;  %v4816_v47 = vld [vmem:[#allocation8 + $0x164] ss:$16 sps:$4 sm:$0xff]   ;;  %v4822_v44 = vld [vmem:[#allocation8 + $0x168] ss:$16 sps:$4 sm:$0xff]  }
 0x15f   :  { %6546 = vst [vmem:[#allocation54_spill] sm:$0xff] %v4816_v47  ;;  %6549 = vst [vmem:[#allocation57_spill] sm:$0xff] %v4822_v44 }
 0x161   :  { %1549 = vmatpush1.bf16.msra.mxu1 %v4796_v39  ;;  %1590 = vmatpush1.bf16.msra.mxu0 %v4798_v0  ;;  %v4818_v39 = vld [vmem:[#allocation8 + $0x16c] ss:$16 sps:$4 sm:$0xff]   ;;  %v4820_v0 = vld [vmem:[#allocation8 + $0x160] ss:$16 sps:$4 sm:$0xff]  }
 0x162   :  { %1550 = vmatprep.subr.bf16.mxu1 %v4804_v50  ;;  %1591 = vmatprep.subr.bf16.mxu0 %v4806_v51  ;;  %6547 = vst [vmem:[#allocation55_spill] sm:$0xff] %v4818_v39  ;;  %6548 = vst [vmem:[#allocation56_spill] sm:$0xff] %v4820_v0  ;;  %v4828_v51 = vld [vmem:[#allocation8 + $0x184] ss:$16 sps:$4 sm:$0xff]   ;;  %v4834_v50 = vld [vmem:[#allocation8 + $0x188] ss:$16 sps:$4 sm:$0xff]  }
 0x163   :  { %6550 = vst [vmem:[#allocation58_spill] sm:$0xff] %v4828_v51  ;;  %6553 = vst [vmem:[#allocation61_spill] sm:$0xff] %v4834_v50 }
 0x165   :  { %1551 = vmatpush1.bf16.msra.mxu1 %v4808_v49  ;;  %1592 = vmatpush1.bf16.msra.mxu0 %v4810_v25  ;;  %v4830_v49 = vld [vmem:[#allocation8 + $0x18c] ss:$16 sps:$4 sm:$0xff]   ;;  %v4832_v25 = vld [vmem:[#allocation8 + $0x180] ss:$16 sps:$4 sm:$0xff]  }
 0x166   :  { %1552 = vmatprep.subr.bf16.mxu1 %v4816_v47  ;;  %1593 = vmatprep.subr.bf16.mxu0 %v4818_v39  ;;  %6551 = vst [vmem:[#allocation59_spill] sm:$0xff] %v4830_v49  ;;  %6552 = vst [vmem:[#allocation60_spill] sm:$0xff] %v4832_v25  ;;  %v4840_v39 = vld [vmem:[#allocation8 + $0x1a4] ss:$16 sps:$4 sm:$0xff]   ;;  %v4846_v47 = vld [vmem:[#allocation8 + $0x1a8] ss:$16 sps:$4 sm:$0xff]  }
 0x167   :  { %6554 = vst [vmem:[#allocation62_spill] sm:$0xff] %v4840_v39  ;;  %6557 = vst [vmem:[#allocation65_spill] sm:$0xff] %v4846_v47 }
 0x169   :  { %1553 = vmatpush1.bf16.msra.mxu1 %v4820_v0  ;;  %1594 = vmatpush1.bf16.msra.mxu0 %v4822_v44  ;;  %v4842_v0 = vld [vmem:[#allocation8 + $0x1ac] ss:$16 sps:$4 sm:$0xff]   ;;  %v4844_v44 = vld [vmem:[#allocation8 + $0x1a0] ss:$16 sps:$4 sm:$0xff]  }
 0x16a   :  { %1554 = vmatprep.subr.bf16.mxu1 %v4828_v51  ;;  %1595 = vmatprep.subr.bf16.mxu0 %v4830_v49  ;;  %6555 = vst [vmem:[#allocation63_spill] sm:$0xff] %v4842_v0  ;;  %6556 = vst [vmem:[#allocation64_spill] sm:$0xff] %v4844_v44  ;;  %v4862_v49 = vld [vmem:[#allocation8 + $0x1e4] ss:$16 sps:$4 sm:$0xff]   ;;  %v4864_v51 = vld [vmem:[#allocation8 + $0x1ec] ss:$16 sps:$4 sm:$0xff]  }
 0x16b   :  { %6562 = vst [vmem:[#allocation70_spill] sm:$0xff] %v4862_v49  ;;  %6563 = vst [vmem:[#allocation71_spill] sm:$0xff] %v4864_v51 }
 0x16d   :  { %1555 = vmatpush1.bf16.msra.mxu1 %v4832_v25  ;;  %1596 = vmatpush1.bf16.msra.mxu0 %v4834_v50  ;;  %v4856_v50 = vld [vmem:[#allocation8 + $0x1c0] ss:$16 sps:$4 sm:$0xff]   ;;  %v4858_v25 = vld [vmem:[#allocation8 + $0x1c8] ss:$16 sps:$4 sm:$0xff]  }
 0x16e   :  { %1556 = vmatprep.subr.bf16.mxu1 %v4840_v39  ;;  %1597 = vmatprep.subr.bf16.mxu0 %v4842_v0  ;;  %6560 = vst [vmem:[#allocation68_spill] sm:$0xff] %v4856_v50  ;;  %6561 = vst [vmem:[#allocation69_spill] sm:$0xff] %v4858_v25 }
 0x171   :  { %1557 = vmatpush1.bf16.msra.mxu1 %v4844_v44  ;;  %1598 = vmatpush1.bf16.msra.mxu0 %v4846_v47  ;;  %v4868_v47 = vld [vmem:[#allocation8 + $0x1e0] ss:$16 sps:$4 sm:$0xff]   ;;  %v4870_v44 = vld [vmem:[#allocation8 + $0x1e8] ss:$16 sps:$4 sm:$0xff]  }
 0x172   :  { %1558 = vmatprep.subr.bf16.mxu1 %v4848_v38  ;;  %1599 = vmatprep.subr.bf16.mxu0 %v4850_v37  ;;  %6564 = vst [vmem:[#allocation72_spill] sm:$0xff] %v4868_v47  ;;  %6565 = vst [vmem:[#allocation73_spill] sm:$0xff] %v4870_v44 }
 0x175   :  { %1559 = vmatpush1.bf16.msra.mxu1 %v4856_v50  ;;  %1600 = vmatpush1.bf16.msra.mxu0 %v4858_v25  ;;  %v293_v25 = vld [vmem:[%s6195_s4] sm:$0xf]  ;;  %v6317_v50 = vsub.s32 3, %v4557_v20 }
 0x176   :  { %1560 = vmatprep.subr.bf16.mxu1 %v4862_v49  ;;  %1601 = vmatprep.subr.bf16.mxu0 %v4864_v51 }
 0x177   :  { %v310_v38 = vrot.slane %v293_v25, %v6317_v50 }
 0x179   :  { %1561 = vmatpush1.bf16.msra.mxu1 %v4868_v47  ;;  %1602 = vmatpush1.bf16.msra.mxu0 %v4870_v44  ;;  %v298_v47 = vrot.slane %v293_v25, %v4560_v21  ;;  %v306_v44 = vrot.slane %v293_v25, %v6309_v36 }
 0x17a   :  { %1643 = vmatprep.subr.bf16.mxu1 %v4551_v17  ;;  %1684 = vmatprep.subr.bf16.mxu0 %v4553_v18  ;;  %v302_v18 = vrot.slane %v293_v25, %v4566_v23 }
 0x1ef   :  { %v4883_v37 = vpop.f32.mrb[0].mxu1  ;;  %v4885_v49 = vpop.f32.mrb[16].mxu0 }
 0x1f0   :  { %v671_v17 = vpop.f32.mrb[1].mxu1  ;;  %v744_v51 = vpop.f32.mrb[17].mxu0 }
 0x1f1   :  { %v673_v0 = vpop.f32.mrb[2].mxu1  ;;  %v746_v39 = vpop.f32.mrb[18].mxu0 }
 0x1f2   :  { %v4893_v35 = vadd.f32 %v673_v0, %v298_v47  ;;  %v4895_v32 = vadd.f32 %v746_v39, %v306_v44  ;;  %v675_v31 = vpop.f32.mrb[3].mxu1  ;;  %v748_v28 = vpop.f32.mrb[19].mxu0 }
 0x1f3   :  { %v4897_v27 = vadd.f32 %v675_v31, %v302_v18  ;;  %v4899_v21 = vadd.f32 %v748_v28, %v310_v38 }
 0x1f4   :  { %6566 = vst [vmem:[#allocation74_spill] sm:$0xff] %v4893_v35  ;;  %6567 = vst [vmem:[#allocation75_spill] sm:$0xff] %v4895_v32 }
 0x1f5   :  { %6568 = vst [vmem:[#allocation76_spill] sm:$0xff] %v4897_v27  ;;  %6569 = vst [vmem:[#allocation77_spill] sm:$0xff] %v4899_v21 }
 0x1f7   :  { %v679_v36 = vpop.f32.mrb[4].mxu1  ;;  %v752_v26 = vpop.f32.mrb[20].mxu0 }
 0x1f8   :  { %v4901_v22 = vadd.f32 %v679_v36, %v298_v47  ;;  %v4903_v23 = vadd.f32 %v752_v26, %v306_v44  ;;  %v681_v20 = vpop.f32.mrb[5].mxu1  ;;  %v754_v25 = vpop.f32.mrb[21].mxu0 }
 0x1f9   :  { %v4905_v50 = vadd.f32 %v681_v20, %v302_v18  ;;  %v4907_v0 = vadd.f32 %v754_v25, %v310_v38  ;;  %v683_v39 = vpop.f32.mrb[6].mxu1  ;;  %v756_v32 = vpop.f32.mrb[22].mxu0 }
 0x1fa   :  { %6570 = vst [vmem:[#allocation78_spill] sm:$0xff] %v4901_v22  ;;  %6571 = vst [vmem:[#allocation79_spill] sm:$0xff] %v4903_v23  ;;  %v4909_v35 = vadd.f32 %v683_v39, %v298_v47  ;;  %v4911_v31 = vadd.f32 %v756_v32, %v306_v44  ;;  %v685_v28 = vpop.f32.mrb[7].mxu1  ;;  %v758_v21 = vpop.f32.mrb[23].mxu0 }
 0x1fb   :  { %6572 = vst [vmem:[#allocation80_spill] sm:$0xff] %v4905_v50  ;;  %6573 = vst [vmem:[#allocation81_spill] sm:$0xff] %v4907_v0  ;;  %v4913_v27 = vadd.f32 %v685_v28, %v302_v18  ;;  %v4915_v36 = vadd.f32 %v758_v21, %v310_v38 }
 0x1fc   :  { %6574 = vst [vmem:[#allocation82_spill] sm:$0xff] %v4909_v35  ;;  %6575 = vst [vmem:[#allocation83_spill] sm:$0xff] %v4911_v31 }
 0x1fd   :  { %6576 = vst [vmem:[#allocation84_spill] sm:$0xff] %v4913_v27  ;;  %6577 = vst [vmem:[#allocation85_spill] sm:$0xff] %v4915_v36 }
 0x1ff   :  { %v689_v26 = vpop.f32.mrb[8].mxu1  ;;  %v762_v23 = vpop.f32.mrb[24].mxu0 }
 0x200   :  { %v4917_v22 = vadd.f32 %v689_v26, %v298_v47  ;;  %v4919_v20 = vadd.f32 %v762_v23, %v306_v44  ;;  %v691_v25 = vpop.f32.mrb[9].mxu1  ;;  %v764_v0 = vpop.f32.mrb[25].mxu0 }
 0x201   :  { %v4921_v50 = vadd.f32 %v691_v25, %v302_v18  ;;  %v4923_v39 = vadd.f32 %v764_v0, %v310_v38  ;;  %v693_v32 = vpop.f32.mrb[10].mxu1  ;;  %v766_v31 = vpop.f32.mrb[26].mxu0 }
 0x202   :  { %6578 = vst [vmem:[#allocation86_spill] sm:$0xff] %v4917_v22  ;;  %6579 = vst [vmem:[#allocation87_spill] sm:$0xff] %v4919_v20  ;;  %v4925_v35 = vadd.f32 %v693_v32, %v298_v47  ;;  %v4927_v28 = vadd.f32 %v766_v31, %v306_v44  ;;  %v695_v21 = vpop.f32.mrb[11].mxu1  ;;  %v768_v36 = vpop.f32.mrb[27].mxu0 }
 0x203   :  { %6580 = vst [vmem:[#allocation88_spill] sm:$0xff] %v4921_v50  ;;  %6581 = vst [vmem:[#allocation89_spill] sm:$0xff] %v4923_v39  ;;  %v4929_v27 = vadd.f32 %v695_v21, %v302_v18  ;;  %v4931_v26 = vadd.f32 %v768_v36, %v310_v38 }
 0x204   :  { %6582 = vst [vmem:[#allocation90_spill] sm:$0xff] %v4925_v35  ;;  %6583 = vst [vmem:[#allocation91_spill] sm:$0xff] %v4927_v28 }
 0x205   :  { %6584 = vst [vmem:[#allocation92_spill] sm:$0xff] %v4929_v27  ;;  %6585 = vst [vmem:[#allocation93_spill] sm:$0xff] %v4931_v26 }
 0x207   :  { %v699_v23 = vpop.f32.mrb[12].mxu1  ;;  %v772_v20 = vpop.f32.mrb[28].mxu0 }
 0x208   :  { %v4933_v22 = vadd.f32 %v699_v23, %v298_v47  ;;  %v4935_v25 = vadd.f32 %v772_v20, %v306_v44  ;;  %v701_v0 = vpop.f32.mrb[13].mxu1  ;;  %v774_v39 = vpop.f32.mrb[29].mxu0  ;;  %v670_v20 = vadd.f32 %v4883_v37, %v298_v47 }
 0x209   :  { %v4937_v50 = vadd.f32 %v701_v0, %v302_v18  ;;  %v4939_v32 = vadd.f32 %v774_v39, %v310_v38  ;;  %v703_v31 = vpop.f32.mrb[14].mxu1  ;;  %v776_v28 = vpop.f32.mrb[30].mxu0  ;;  %v672_v0 = vadd.f32 %v671_v17, %v302_v18 }
 0x20a   :  { %6586 = vst [vmem:[#allocation94_spill] sm:$0xff] %v4933_v22  ;;  %6587 = vst [vmem:[#allocation95_spill] sm:$0xff] %v4935_v25  ;;  %v4941_v35 = vadd.f32 %v703_v31, %v298_v47  ;;  %v4943_v21 = vadd.f32 %v776_v28, %v306_v44  ;;  %v705_v36 = vpop.f32.mrb[15].mxu1  ;;  %v778_v26 = vpop.f32.mrb[31].mxu0  ;;  %v743_v25 = vadd.f32 %v4885_v49, %v306_v44 }
 0x20b   :  { %6588 = vst [vmem:[#allocation96_spill] sm:$0xff] %v4937_v50  ;;  %6589 = vst [vmem:[#allocation97_spill] sm:$0xff] %v4939_v32  ;;  %v4945_v27 = vadd.f32 %v705_v36, %v302_v18  ;;  %v4947_v23 = vadd.f32 %v778_v26, %v310_v38  ;;  %v745_v50 = vadd.f32 %v744_v51, %v310_v38 }
 0x20c   :  { %6590 = vst [vmem:[#allocation98_spill] sm:$0xff] %v4941_v35  ;;  %6591 = vst [vmem:[#allocation99_spill] sm:$0xff] %v4943_v21 }
 0x20d   :  { %6592 = vst [vmem:[#allocation100_spill] sm:$0xff] %v4945_v27  ;;  %6593 = vst [vmem:[#allocation101_spill] sm:$0xff] %v4947_v23 }
 0x20f   :  { %v1046_v39 = vpop.f32.mrb[16].mxu1  ;;  %v1087_v32 = vpop.f32.mrb[32].mxu0 }
 0x210   :  { %v1094_v22 = vadd.f32 %v1046_v39, %v670_v20  ;;  %v1096_v19 = vadd.f32 %v1087_v32, %v743_v25  ;;  %v1048_v31 = vpop.f32.mrb[17].mxu1  ;;  %v1089_v35 = vpop.f32.mrb[33].mxu0  ;;  %v6612_v20 = vld [vmem:[#allocation35_spill] sm:$0xff]  ;;  %v6614_v39 = vld [vmem:[#allocation37_spill] sm:$0xff] }
 0x211   :  { %v1095_v28 = vadd.f32 %v1048_v31, %v672_v0  ;;  %v1097_v21 = vadd.f32 %v1089_v35, %v745_v50  ;;  %v1050_v14 = vpop.f32.mrb[18].mxu1  ;;  %v1091_v13 = vpop.f32.mrb[34].mxu0  ;;  %v6613_v0 = vld [vmem:[#allocation36_spill] sm:$0xff]  ;;  %v6615_v31 = vld [vmem:[#allocation38_spill] sm:$0xff] }
 0x212   :  { %v3449_v36 = vmul.f32 -1.442695, %v1094_v22  ;;  %v1051_v27 = vpop.f32.mrb[19].mxu1  ;;  %v1092_v26 = vpop.f32.mrb[35].mxu0 }
 0x213   :  { %v3450_v23 = vmul.f32 -1.442695, %v1095_v28  ;;  %v3451_v37 = vmul.f32 -1.442695, %v1097_v21  ;;  %v6616_v28 = vld [vmem:[#allocation39_spill] sm:$0xff]  ;;  %v6618_v26 = vld [vmem:[#allocation41_spill] sm:$0xff] }
 0x214   :  { %3857 = vpow2.f32 %v3449_v36  ;;  %v6617_v36 = vld [vmem:[#allocation40_spill] sm:$0xff] }
 0x215   :  { %3859 = vpow2.f32 %v3450_v23  ;;  %v6611_v23 = vld [vmem:[#allocation34_spill] sm:$0xff] }
 0x216   :  { %3861 = vpow2.f32 %v3451_v37  ;;  %v6619_v37 = vld [vmem:[#allocation42_spill] sm:$0xff] }
 0x217   :  { %3863 = vtanh.f32 %v1096_v19  ;;  %v6594_v19 = vmov 0  }
 0x21e   :  { %v3858_v44 = vpop.eup %3857 }
 0x21f   :  { %v3860_v17 = vpop.eup %3859  ;;  %v1101_v18 = vadd.f32 1.0, %v3858_v44  ;;  %v6620_v44 = vld [vmem:[#allocation43_spill] sm:$0xff] }
 0x220   :  { %v1107_v38 = vadd.f32 1.0, %v3860_v17  ;;  %v3862_v47 = vpop.eup %3861  ;;  %v6621_v17 = vld [vmem:[#allocation44_spill] sm:$0xff] }
 0x221   :  { %3865 = vrcp.f32 %v1101_v18  ;;  %v3864_v49 = vpop.eup %3863  ;;  %v1114_v22 = vadd.f32 1.0, %v3862_v47  ;;  %v6622_v18 = vld [vmem:[#allocation45_spill] sm:$0xff]  ;;  %v6624_v47 = vld [vmem:[#allocation47_spill] sm:$0xff] }
 0x222   :  { %3867 = vrcp.f32 %v1107_v38  ;;  %v6623_v38 = vld [vmem:[#allocation46_spill] sm:$0xff] }
 0x223   :  { %3869 = vrcp.f32 %v1114_v22  ;;  %v6629_v22 = vld [vmem:[#allocation52_spill] sm:$0xff] }
 0x22b   :  { %v3866_v35 = vpop.eup %3865 }
 0x22c   :  { %v3868_v14 = vpop.eup %3867  ;;  %v1118_v13 = vmul.f32 %v3866_v35, %v3864_v49  ;;  %v6625_v49 = vld [vmem:[#allocation48_spill] sm:$0xff]  ;;  %v6626_v35 = vld [vmem:[#allocation49_spill] sm:$0xff] }
 0x22d   :  { %v1117_v27 = vmul.f32 0.0, %v3868_v14  ;;  %v3870_v51 = vpop.eup %3869  ;;  %v6627_v14 = vld [vmem:[#allocation50_spill] sm:$0xff] }
 0x22f   :  { %v4951_v50 = vadd.f32 %v1118_v13, %v1117_v27  ;;  %v6628_v13 = vld [vmem:[#allocation51_spill] sm:$0xff]  ;;  %v6630_v27 = vld [vmem:[#allocation53_spill] sm:$0xff] }
 0x231   :  { %3871 = vtanh.f32 %v4951_v50 }
 0x23b   :  { %v3872_v25 = vpop.eup %3871 }
 0x23c   :  { %v1121_v32 = vmul.f32 %v3872_v25, %v3870_v51  ;;  %v6631_v51 = vld [vmem:[#allocation54_spill] sm:$0xff]  ;;  %v6632_v25 = vld [vmem:[#allocation55_spill] sm:$0xff] }
 0x23e   :  { %v1122_v21 = vpack.c.bf16 %v1121_v32, %v1121_v32  ;;  %v6633_v32 = vld [vmem:[#allocation56_spill] sm:$0xff] }
 0x240   :  { %1563 = vmatmul.mubr.bf16.vlgmr.msra.gmra.mrb[20].mxu1 %v1122_v21  ;;  %1604 = vmatmul.mubr.bf16.vlgmr.msra.gmra.mrb[36].mxu0 %v1122_v21 }
 0x241   :  { %1644 = vmatpush1.bf16.msra.mxu1 %v4578_v41  ;;  %1685 = vmatpush1.bf16.msra.mxu0 %v4580_v42  ;;  %v6595_v41 = vld [vmem:[#allocation18_spill] sm:$0xff]  ;;  %v6596_v42 = vld [vmem:[#allocation19_spill] sm:$0xff] }
 0x242   :  { %1645 = vmatprep.subr.bf16.mxu1 %v4583_v45  ;;  %1686 = vmatprep.subr.bf16.mxu0 %v4585_v46  ;;  %v6597_v45 = vld [vmem:[#allocation20_spill] sm:$0xff]  ;;  %v6598_v46 = vld [vmem:[#allocation21_spill] sm:$0xff] }
 0x243   :  { %1675 = vmatprep.mubr.bf16.mxu1 %v6594_v19  ;;  %1716 = vmatprep.mubr.bf16.mxu0 %v6594_v19 }
 0x245   :  { %1646 = vmatpush1.bf16.msra.mxu1 %v4592_v52  ;;  %1687 = vmatpush1.bf16.msra.mxu0 %v4594_v53  ;;  %v6599_v52 = vld [vmem:[#allocation22_spill] sm:$0xff]  ;;  %v6600_v53 = vld [vmem:[#allocation23_spill] sm:$0xff] }
 0x246   :  { %1647 = vmatprep.subr.bf16.mxu1 %v4598_v56  ;;  %1688 = vmatprep.subr.bf16.mxu0 %v4600_v57  ;;  %v6601_v56 = vld [vmem:[#allocation24_spill] sm:$0xff]  ;;  %v6602_v57 = vld [vmem:[#allocation25_spill] sm:$0xff] }
 0x249   :  { %1648 = vmatpush1.bf16.msra.mxu1 %v4604_v63  ;;  %1689 = vmatpush1.bf16.msra.mxu0 %v4606_v1  ;;  %v6603_v63 = vld [vmem:[#allocation26_spill] sm:$0xff]  ;;  %v6604_v1 = vld [vmem:[#allocation27_spill] sm:$0xff] }
 0x24a   :  { %1649 = vmatprep.subr.bf16.mxu1 %v4611_v4  ;;  %1690 = vmatprep.subr.bf16.mxu0 %v4613_v5  ;;  %v6605_v4 = vld [vmem:[#allocation28_spill] sm:$0xff]  ;;  %v6606_v5 = vld [vmem:[#allocation29_spill] sm:$0xff] }
 0x24d   :  { %1650 = vmatpush1.bf16.msra.mxu1 %v4620_v11  ;;  %1691 = vmatpush1.bf16.msra.mxu0 %v4622_v12  ;;  %v6607_v11 = vld [vmem:[#allocation30_spill] sm:$0xff]  ;;  %v6608_v12 = vld [vmem:[#allocation31_spill] sm:$0xff] }
 0x24e   :  { %1651 = vmatprep.subr.bf16.mxu1 %v4626_v15  ;;  %1692 = vmatprep.subr.bf16.mxu0 %v4628_v16  ;;  %v6609_v15 = vld [vmem:[#allocation32_spill] sm:$0xff]  ;;  %v6610_v16 = vld [vmem:[#allocation33_spill] sm:$0xff] }
 0x251   :  { %1652 = vmatpush1.bf16.msra.mxu1 %v4632_v29  ;;  %1693 = vmatpush1.bf16.msra.mxu0 %v4634_v30 }
 0x252   :  { %1653 = vmatprep.subr.bf16.mxu1 %v4639_v33  ;;  %1694 = vmatprep.subr.bf16.mxu0 %v4641_v34 }
 0x255   :  { %1654 = vmatpush1.bf16.msra.mxu1 %v4648_v40  ;;  %1695 = vmatpush1.bf16.msra.mxu0 %v4650_v43 }
 0x256   :  { %1655 = vmatprep.subr.bf16.mxu1 %v4654_v24  ;;  %1696 = vmatprep.subr.bf16.mxu0 %v4656_v48 }
 0x259   :  { %1656 = vmatpush1.bf16.msra.mxu1 %v4660_v54  ;;  %1697 = vmatpush1.bf16.msra.mxu0 %v4662_v55 }
 0x25a   :  { %1657 = vmatprep.subr.bf16.mxu1 %v4666_v58  ;;  %1698 = vmatprep.subr.bf16.mxu0 %v4668_v59 }
 0x25d   :  { %1658 = vmatpush1.bf16.msra.mxu1 %v4672_v60  ;;  %1699 = vmatpush1.bf16.msra.mxu0 %v4674_v61 }
 0x25e   :  { %1755 = vmatprep.subr.bf16.mxu1 %v4684_v62  ;;  %1796 = vmatprep.subr.bf16.mxu0 %v4686_v2 }
 0x260   :  { %1676 = vmatmul.mubr.bf16.vlgmr.msra.gmra.mrb[24].mxu1 %v1122_v21  ;;  %1717 = vmatmul.mubr.bf16.vlgmr.msra.gmra.mrb[40].mxu0 %v1122_v21  ;;  %v6634_v21 = vld [vmem:[#allocation57_spill] sm:$0xff] }
 0x261   :  { %1756 = vmatpush1.bf16.msra.mxu1 %v4688_v3  ;;  %1797 = vmatpush1.bf16.msra.mxu0 %v4690_v6 }
 0x262   :  { %1757 = vmatprep.subr.bf16.mxu1 %v4696_v7  ;;  %1798 = vmatprep.subr.bf16.mxu0 %v4698_v8 }
 0x265   :  { %1758 = vmatpush1.bf16.msra.mxu1 %v4700_v9  ;;  %1799 = vmatpush1.bf16.msra.mxu0 %v4702_v10 }
 0x266   :  { %1759 = vmatprep.subr.bf16.mxu1 %v6595_v41  ;;  %1800 = vmatprep.subr.bf16.mxu0 %v6596_v42 }
 0x269   :  { %1760 = vmatpush1.bf16.msra.mxu1 %v6597_v45  ;;  %1801 = vmatpush1.bf16.msra.mxu0 %v6598_v46 }
 0x26a   :  { %1761 = vmatprep.subr.bf16.mxu1 %v6599_v52  ;;  %1802 = vmatprep.subr.bf16.mxu0 %v6600_v53 }
 0x26d   :  { %1762 = vmatpush1.bf16.msra.mxu1 %v6601_v56  ;;  %1803 = vmatpush1.bf16.msra.mxu0 %v6602_v57 }
 0x26e   :  { %1763 = vmatprep.subr.bf16.mxu1 %v6603_v63  ;;  %1804 = vmatprep.subr.bf16.mxu0 %v6604_v1 }
 0x271   :  { %1764 = vmatpush1.bf16.msra.mxu1 %v6605_v4  ;;  %1805 = vmatpush1.bf16.msra.mxu0 %v6606_v5 }
 0x272   :  { %1765 = vmatprep.subr.bf16.mxu1 %v6607_v11  ;;  %1806 = vmatprep.subr.bf16.mxu0 %v6608_v12 }
 0x275   :  { %1766 = vmatpush1.bf16.msra.mxu1 %v6609_v15  ;;  %1807 = vmatpush1.bf16.msra.mxu0 %v6610_v16 }
 0x276   :  { %1767 = vmatprep.subr.bf16.mxu1 %v6611_v23  ;;  %1808 = vmatprep.subr.bf16.mxu0 %v6612_v20 }
 0x279   :  { %1768 = vmatpush1.bf16.msra.mxu1 %v6613_v0  ;;  %1809 = vmatpush1.bf16.msra.mxu0 %v6614_v39 }
 0x27a   :  { %1769 = vmatprep.subr.bf16.mxu1 %v6615_v31  ;;  %1810 = vmatprep.subr.bf16.mxu0 %v6616_v28 }
 0x27d   :  { %1770 = vmatpush1.bf16.msra.mxu1 %v6617_v36  ;;  %1811 = vmatpush1.bf16.msra.mxu0 %v6618_v26  ;;  %v6657_v36 = vld [vmem:[#allocation15_spill] sm:$0xff] }
 0x27e   :  { %1771 = vmatprep.subr.bf16.mxu1 %v6619_v37  ;;  %1812 = vmatprep.subr.bf16.mxu0 %v6620_v44 }
 0x281   :  { %1772 = vmatpush1.bf16.msra.mxu1 %v6621_v17  ;;  %1813 = vmatpush1.bf16.msra.mxu0 %v6622_v18 }
 0x282   :  { %1773 = vmatprep.subr.bf16.mxu1 %v6623_v38  ;;  %1814 = vmatprep.subr.bf16.mxu0 %v6624_v47  ;;  %v6635_v47 = vld [vmem:[#allocation58_spill] sm:$0xff] }
 0x285   :  { %1774 = vmatpush1.bf16.msra.mxu1 %v6625_v49  ;;  %1815 = vmatpush1.bf16.msra.mxu0 %v6626_v35  ;;  %v6636_v49 = vld [vmem:[#allocation59_spill] sm:$0xff]  ;;  %v6637_v35 = vld [vmem:[#allocation60_spill] sm:$0xff] }
 0x286   :  { %1775 = vmatprep.subr.bf16.mxu1 %v6627_v14  ;;  %1816 = vmatprep.subr.bf16.mxu0 %v6628_v13  ;;  %v6638_v14 = vld [vmem:[#allocation61_spill] sm:$0xff]  ;;  %v6639_v13 = vld [vmem:[#allocation62_spill] sm:$0xff] }
 0x289   :  { %1776 = vmatpush1.bf16.msra.mxu1 %v6629_v22  ;;  %1817 = vmatpush1.bf16.msra.mxu0 %v6630_v27  ;;  %v6640_v22 = vld [vmem:[#allocation63_spill] sm:$0xff]  ;;  %v6641_v27 = vld [vmem:[#allocation64_spill] sm:$0xff] }
 0x28a   :  { %1777 = vmatprep.subr.bf16.mxu1 %v6631_v51  ;;  %1818 = vmatprep.subr.bf16.mxu0 %v6632_v25  ;;  %v6642_v51 = vld [vmem:[#allocation65_spill] sm:$0xff]  ;;  %v6643_v25 = vld [vmem:[#allocation66_spill] sm:$0xff] }
 0x28d   :  { %1778 = vmatpush1.bf16.msra.mxu1 %v6633_v32  ;;  %1819 = vmatpush1.bf16.msra.mxu0 %v6634_v21  ;;  %v6644_v32 = vld [vmem:[#allocation67_spill] sm:$0xff]  ;;  %v6645_v21 = vld [vmem:[#allocation68_spill] sm:$0xff] }
 0x28e   :  { %1779 = vmatprep.subr.bf16.mxu1 %v6635_v47  ;;  %1820 = vmatprep.subr.bf16.mxu0 %v6636_v49  ;;  %v6646_v47 = vld [vmem:[#allocation69_spill] sm:$0xff]  ;;  %v6647_v49 = vld [vmem:[#allocation70_spill] sm:$0xff] }
 0x291   :  { %1780 = vmatpush1.bf16.msra.mxu1 %v6637_v35  ;;  %1821 = vmatpush1.bf16.msra.mxu0 %v6638_v14  ;;  %v6648_v35 = vld [vmem:[#allocation71_spill] sm:$0xff]  ;;  %v6649_v14 = vld [vmem:[#allocation72_spill] sm:$0xff] }
 0x292   :  { %1781 = vmatprep.subr.bf16.mxu1 %v6639_v13  ;;  %1822 = vmatprep.subr.bf16.mxu0 %v6640_v22  ;;  %v6650_v13 = vld [vmem:[#allocation73_spill] sm:$0xff] }
 0x293   :  { %v6651_v22 = vld [vmem:[#allocation13_spill] sm:$0xff] }
 0x295   :  { %1782 = vmatpush1.bf16.msra.mxu1 %v6641_v27  ;;  %1823 = vmatpush1.bf16.msra.mxu0 %v6642_v51  ;;  %v6652_v27 = vld [vmem:[#allocation14_spill] sm:$0xff] }
 0x296   :  { %1783 = vmatprep.subr.bf16.mxu1 %v6643_v25  ;;  %1824 = vmatprep.subr.bf16.mxu0 %v6644_v32  ;;  %v1188_v32 = vld [vmem:[%s6198_s7] sm:$0xf]  ;;  %v6653_v25 = vld [vmem:[#allocation16_spill] sm:$0xff] }
 0x299   :  { %1784 = vmatpush1.bf16.msra.mxu1 %v6645_v21  ;;  %1825 = vmatpush1.bf16.msra.mxu0 %v6646_v47  ;;  %v5056_v21 = vrot.slane %v1188_v32, %v6653_v25  ;;  %v6655_v47 = vld [vmem:[#allocation17_spill] sm:$0xff]  ;;  %v6658_v25 = vsub.s32 3, %v6657_v36 }
 0x29a   :  { %1785 = vmatprep.subr.bf16.mxu1 %v6647_v49  ;;  %1826 = vmatprep.subr.bf16.mxu0 %v6648_v35  ;;  %v5059_v51 = vrot.slane %v1188_v32, %v6655_v47 }
 0x29b   :  { %6654 = vst [vmem:[#allocation18_spill] sm:$0xff] %v5056_v21  ;;  %v5065_v28 = vrot.slane %v1188_v32, %v6658_v25 }
 0x29c   :  { %6656 = vst [vmem:[#allocation19_spill] sm:$0xff] %v5059_v51 }
 0x29d   :  { %1786 = vmatpush1.bf16.msra.mxu1 %v6649_v14  ;;  %1827 = vmatpush1.bf16.msra.mxu0 %v6650_v13  ;;  %6659 = vst [vmem:[#allocation20_spill] sm:$0xff] %v5065_v28 }
 0x29e   :  { %1868 = vmatprep.subr.bf16.mxu1 %v6651_v22  ;;  %1909 = vmatprep.subr.bf16.mxu0 %v6652_v27 }
 0x313   :  { %v1564_v49 = vpop.f32.mrb[20].mxu1  ;;  %v1605_v35 = vpop.f32.mrb[36].mxu0 }
 0x314   :  { %v1565_v14 = vadd.f32 %v1564_v49, %v5056_v21  ;;  %v1566_v38 = vpop.f32.mrb[21].mxu1  ;;  %v1607_v13 = vpop.f32.mrb[37].mxu0  ;;  %v6660_v49 = vsub.s32 2, %v6657_v36 }
 0x315   :  { %v1567_v22 = vadd.f32 %v1566_v38, %v5059_v51  ;;  %v1568_v18 = vpop.f32.mrb[22].mxu1  ;;  %v1609_v27 = vpop.f32.mrb[38].mxu0  ;;  %v1608_v47 = vadd.f32 %v1607_v13, %v5065_v28  ;;  %v6666_v28 = vld [vmem:[#allocation77_spill] sm:$0xff] }
 0x316   :  { %v3516_v17 = vmul.f32 -1.442695, %v1565_v14  ;;  %v1569_v44 = vpop.f32.mrb[23].mxu1  ;;  %v1610_v37 = vpop.f32.mrb[39].mxu0  ;;  %v5070_v21 = vrot.slane %v1188_v32, %v6660_v49 }
 0x317   :  { %v3517_v26 = vmul.f32 -1.442695, %v1567_v22  ;;  %v3518_v31 = vmul.f32 -1.442695, %v1608_v47 }
 0x318   :  { %3873 = vpow2.f32 %v3516_v17  ;;  %6661 = vst [vmem:[#allocation21_spill] sm:$0xff] %v5070_v21  ;;  %v1606_v18 = vadd.f32 %v1605_v35, %v5070_v21  ;;  %v6663_v35 = vld [vmem:[#allocation74_spill] sm:$0xff] }
 0x319   :  { %3875 = vpow2.f32 %v3517_v26 }
 0x31a   :  { %3877 = vpow2.f32 %v3518_v31 }
 0x31b   :  { %3879 = vtanh.f32 %v1606_v18 }
 0x322   :  { %v3874_v38 = vpop.eup %3873 }
 0x323   :  { %v3876_v14 = vpop.eup %3875  ;;  %v1615_v44 = vadd.f32 1.0, %v3874_v38  ;;  %v6664_v38 = vld [vmem:[#allocation75_spill] sm:$0xff] }
 0x324   :  { %v1621_v37 = vadd.f32 1.0, %v3876_v14  ;;  %v3878_v22 = vpop.eup %3877 }
 0x325   :  { %3881 = vrcp.f32 %v1615_v44  ;;  %v3880_v17 = vpop.eup %3879  ;;  %v1628_v25 = vadd.f32 1.0, %v3878_v22  ;;  %v6665_v44 = vld [vmem:[#allocation76_spill] sm:$0xff] }
 0x326   :  { %3883 = vrcp.f32 %v1621_v37 }
 0x327   :  { %3885 = vrcp.f32 %v1628_v25 }
 0x32f   :  { %v3882_v26 = vpop.eup %3881 }
 0x330   :  { %v3884_v27 = vpop.eup %3883  ;;  %v1632_v13 = vmul.f32 %v3882_v26, %v3880_v17 }
 0x331   :  { %v1631_v36 = vmul.f32 0.0, %v3884_v27  ;;  %v3886_v25 = vpop.eup %3885 }
 0x333   :  { %v5073_v32 = vadd.f32 %v1632_v13, %v1631_v36  ;;  %v1677_v47 = vpop.f32.mrb[24].mxu1  ;;  %v1718_v49 = vpop.f32.mrb[40].mxu0 }
 0x334   :  { %v1725_v21 = vadd.f32 %v1677_v47, %v6663_v35  ;;  %v1727_v31 = vadd.f32 %v1718_v49, %v6664_v38  ;;  %v1679_v18 = vpop.f32.mrb[25].mxu1  ;;  %v1720_v14 = vpop.f32.mrb[41].mxu0 }
 0x335   :  { %6662 = vst [vmem:[#allocation22_spill] sm:$0xff] %v5073_v32  ;;  %3887 = vtanh.f32 %v5073_v32  ;;  %v1726_v37 = vadd.f32 %v1679_v18, %v6665_v44  ;;  %v1728_v51 = vadd.f32 %v1720_v14, %v6666_v28  ;;  %v1681_v17 = vpop.f32.mrb[26].mxu1  ;;  %v1722_v22 = vpop.f32.mrb[42].mxu0 }
 0x336   :  { %v3519_v26 = vmul.f32 -1.442695, %v1725_v21  ;;  %v1682_v27 = vpop.f32.mrb[27].mxu1  ;;  %v1723_v13 = vpop.f32.mrb[43].mxu0 }
 0x337   :  { %v3520_v36 = vmul.f32 -1.442695, %v1726_v37  ;;  %v3521_v35 = vmul.f32 -1.442695, %v1728_v51  ;;  %v5093_v13 = vld [vmem:[#allocation6 + $0x2c] ss:$16 sps:$4 sm:$0xff]  }
 0x338   :  { %3889 = vpow2.f32 %v3519_v26 }
 0x339   :  { %3891 = vpow2.f32 %v3520_v36  ;;  %v5098_v36 = vld [vmem:[#allocation6 + $0x20] ss:$16 sps:$4 sm:$0xff]  }
 0x33a   :  { %3893 = vpow2.f32 %v3521_v35  ;;  %v5107_v35 = vld [vmem:[#allocation6 + $0x4c] ss:$16 sps:$4 sm:$0xff]  }
 0x33b   :  { %3895 = vtanh.f32 %v1727_v31 }
 0x33f   :  { %v3888_v47 = vpop.eup %3887 }
 0x340   :  { %v1635_v49 = vmul.f32 %v3888_v47, %v3886_v25  ;;  %v5101_v25 = vld [vmem:[#allocation6 + $0x28] ss:$16 sps:$4 sm:$0xff]   ;;  %v5104_v47 = vld [vmem:[#allocation6 + $0x44] ss:$16 sps:$4 sm:$0xff]  }
 0x342   :  { %v3890_v38 = vpop.eup %3889  ;;  %v1754_v39 = vpack.c.bf16 %v1635_v49, %v1635_v49  ;;  %v5110_v49 = vld [vmem:[#allocation6 + $0x40] ss:$16 sps:$4 sm:$0xff]  }
 0x343   :  { %v3892_v0 = vpop.eup %3891  ;;  %v1732_v32 = vadd.f32 1.0, %v3890_v38  ;;  %v5113_v38 = vld [vmem:[#allocation6 + $0x48] ss:$16 sps:$4 sm:$0xff]  }
 0x344   :  { %v1738_v18 = vadd.f32 1.0, %v3892_v0  ;;  %1787 = vmatprep.mubr.bf16.mxu1 %v1754_v39  ;;  %1828 = vmatprep.mubr.bf16.mxu0 %v1754_v39  ;;  %v3894_v28 = vpop.eup %3893  ;;  %v5084_v39 = vld [vmem:[#allocation6] ss:$16 sps:$4 sm:$0xff]  }
 0x345   :  { %3897 = vrcp.f32 %v1732_v32  ;;  %v3896_v21 = vpop.eup %3895  ;;  %v1745_v17 = vadd.f32 1.0, %v3894_v28  ;;  %v5087_v32 = vld [vmem:[#allocation6 + $0x8] ss:$16 sps:$4 sm:$0xff]   ;;  %v5119_v28 = vld [vmem:[#allocation6 + $0x6c] ss:$16 sps:$4 sm:$0xff]  }
 0x346   :  { %3899 = vrcp.f32 %v1738_v18  ;;  %v5116_v18 = vld [vmem:[#allocation6 + $0x64] ss:$16 sps:$4 sm:$0xff]  }
 0x347   :  { %3901 = vrcp.f32 %v1745_v17 }
 0x34f   :  { %v3898_v14 = vpop.eup %3897 }
 0x350   :  { %v3900_v44 = vpop.eup %3899  ;;  %v1749_v37 = vmul.f32 %v3898_v14, %v3896_v21  ;;  %v5122_v21 = vld [vmem:[#allocation6 + $0x60] ss:$16 sps:$4 sm:$0xff]   ;;  %v5125_v14 = vld [vmem:[#allocation6 + $0x68] ss:$16 sps:$4 sm:$0xff]  }
 0x351   :  { %v1748_v51 = vmul.f32 %v3900_v44, %v4951_v50  ;;  %v3902_v26 = vpop.eup %3901  ;;  %v5090_v50 = vld [vmem:[#allocation6 + $0x24] ss:$16 sps:$4 sm:$0xff]  }
 0x352   :  { %v5128_v44 = vld [vmem:[#allocation6 + $0x84] ss:$16 sps:$4 sm:$0xff]  }
 0x353   :  { %v5081_v22 = vadd.f32 %v1749_v37, %v1748_v51  ;;  %v5131_v37 = vld [vmem:[#allocation6 + $0x8c] ss:$16 sps:$4 sm:$0xff]  }
 0x355   :  { %3903 = vtanh.f32 %v5081_v22 }
 0x35f   :  { %v3904_v31 = vpop.eup %3903 }
 0x360   :  { %v1752_v0 = vmul.f32 %v3904_v31, %v3902_v26  ;;  %v6707_v26 = vld [vmem:[#allocation18_spill] sm:$0xff] }
 0x362   :  { %v1753_v27 = vpack.c.bf16 %v1752_v0, %v1752_v0 }
 0x364   :  { %1788 = vmatmul.mubr.bf16.vlgmr.msra.gmra.mrb[28].mxu1 %v1753_v27  ;;  %1829 = vmatmul.mubr.bf16.vlgmr.msra.gmra.mrb[44].mxu0 %v1753_v27 }
 0x365   :  { %1869 = vmatpush1.bf16.msra.mxu1 %v5084_v39  ;;  %1910 = vmatpush1.bf16.msra.mxu0 %v5087_v32 }
 0x366   :  { %1870 = vmatprep.subr.bf16.mxu1 %v5090_v50  ;;  %1911 = vmatprep.subr.bf16.mxu0 %v5093_v13 }
 0x367   :  { %1900 = vmatprep.mubr.bf16.mxu1 %v6594_v19  ;;  %1941 = vmatprep.mubr.bf16.mxu0 %v6594_v19 }
 0x369   :  { %1871 = vmatpush1.bf16.msra.mxu1 %v5098_v36  ;;  %1912 = vmatpush1.bf16.msra.mxu0 %v5101_v25 }
 0x36a   :  { %1872 = vmatprep.subr.bf16.mxu1 %v5104_v47  ;;  %1913 = vmatprep.subr.bf16.mxu0 %v5107_v35 }
 0x36d   :  { %1873 = vmatpush1.bf16.msra.mxu1 %v5110_v49  ;;  %1914 = vmatpush1.bf16.msra.mxu0 %v5113_v38 }
 0x36e   :  { %1874 = vmatprep.subr.bf16.mxu1 %v5116_v18  ;;  %1915 = vmatprep.subr.bf16.mxu0 %v5119_v28 }
 0x371   :  { %1875 = vmatpush1.bf16.msra.mxu1 %v5122_v21  ;;  %1916 = vmatpush1.bf16.msra.mxu0 %v5125_v14 }
 0x372   :  { %1876 = vmatprep.subr.bf16.mxu1 %v5128_v44  ;;  %1917 = vmatprep.subr.bf16.mxu0 %v5131_v37 }
 0x375   :  { %1877 = vmatpush1.bf16.msra.mxu1 %v4632_v29  ;;  %1918 = vmatpush1.bf16.msra.mxu0 %v4634_v30  ;;  %v6667_v29 = vld [vmem:[#allocation36_spill] sm:$0xff]  ;;  %v6668_v30 = vld [vmem:[#allocation37_spill] sm:$0xff] }
 0x376   :  { %1878 = vmatprep.subr.bf16.mxu1 %v4639_v33  ;;  %1919 = vmatprep.subr.bf16.mxu0 %v4641_v34  ;;  %v6669_v33 = vld [vmem:[#allocation38_spill] sm:$0xff]  ;;  %v6670_v34 = vld [vmem:[#allocation39_spill] sm:$0xff] }
 0x379   :  { %1879 = vmatpush1.bf16.msra.mxu1 %v4648_v40  ;;  %1920 = vmatpush1.bf16.msra.mxu0 %v4650_v43  ;;  %v6671_v40 = vld [vmem:[#allocation40_spill] sm:$0xff]  ;;  %v6672_v43 = vld [vmem:[#allocation41_spill] sm:$0xff] }
 0x37a   :  { %1880 = vmatprep.subr.bf16.mxu1 %v4654_v24  ;;  %1921 = vmatprep.subr.bf16.mxu0 %v4656_v48  ;;  %v6673_v24 = vld [vmem:[#allocation42_spill] sm:$0xff]  ;;  %v6674_v48 = vld [vmem:[#allocation43_spill] sm:$0xff] }
 0x37d   :  { %1881 = vmatpush1.bf16.msra.mxu1 %v4660_v54  ;;  %1922 = vmatpush1.bf16.msra.mxu0 %v4662_v55  ;;  %v6675_v54 = vld [vmem:[#allocation44_spill] sm:$0xff]  ;;  %v6676_v55 = vld [vmem:[#allocation45_spill] sm:$0xff] }
 0x37e   :  { %1882 = vmatprep.subr.bf16.mxu1 %v4666_v58  ;;  %1923 = vmatprep.subr.bf16.mxu0 %v4668_v59  ;;  %v6677_v58 = vld [vmem:[#allocation46_spill] sm:$0xff]  ;;  %v6678_v59 = vld [vmem:[#allocation47_spill] sm:$0xff] }
 0x381   :  { %1883 = vmatpush1.bf16.msra.mxu1 %v4672_v60  ;;  %1924 = vmatpush1.bf16.msra.mxu0 %v4674_v61  ;;  %v6679_v60 = vld [vmem:[#allocation48_spill] sm:$0xff]  ;;  %v6680_v61 = vld [vmem:[#allocation49_spill] sm:$0xff] }
 0x382   :  { %1980 = vmatprep.subr.bf16.mxu1 %v4684_v62  ;;  %2021 = vmatprep.subr.bf16.mxu0 %v4686_v2  ;;  %v6681_v62 = vld [vmem:[#allocation50_spill] sm:$0xff]  ;;  %v6682_v2 = vld [vmem:[#allocation51_spill] sm:$0xff] }
 0x384   :  { %1901 = vmatmul.mubr.bf16.vlgmr.msra.gmra.mrb[32].mxu1 %v1753_v27  ;;  %1942 = vmatmul.mubr.bf16.vlgmr.msra.gmra.mrb[48].mxu0 %v1753_v27 }
 0x385   :  { %1981 = vmatpush1.bf16.msra.mxu1 %v4688_v3  ;;  %2022 = vmatpush1.bf16.msra.mxu0 %v4690_v6  ;;  %v6683_v3 = vld [vmem:[#allocation52_spill] sm:$0xff]  ;;  %v6684_v6 = vld [vmem:[#allocation53_spill] sm:$0xff] }
 0x386   :  { %1982 = vmatprep.subr.bf16.mxu1 %v4696_v7  ;;  %2023 = vmatprep.subr.bf16.mxu0 %v4698_v8  ;;  %v6685_v7 = vld [vmem:[#allocation54_spill] sm:$0xff]  ;;  %v6686_v8 = vld [vmem:[#allocation55_spill] sm:$0xff] }
 0x389   :  { %1983 = vmatpush1.bf16.msra.mxu1 %v4700_v9  ;;  %2024 = vmatpush1.bf16.msra.mxu0 %v4702_v10  ;;  %v6687_v9 = vld [vmem:[#allocation56_spill] sm:$0xff]  ;;  %v6688_v10 = vld [vmem:[#allocation57_spill] sm:$0xff] }
 0x38a   :  { %1984 = vmatprep.subr.bf16.mxu1 %v6595_v41  ;;  %2025 = vmatprep.subr.bf16.mxu0 %v6596_v42  ;;  %v6689_v41 = vld [vmem:[#allocation58_spill] sm:$0xff]  ;;  %v6690_v42 = vld [vmem:[#allocation59_spill] sm:$0xff] }
 0x38d   :  { %1985 = vmatpush1.bf16.msra.mxu1 %v6597_v45  ;;  %2026 = vmatpush1.bf16.msra.mxu0 %v6598_v46  ;;  %v6691_v45 = vld [vmem:[#allocation60_spill] sm:$0xff]  ;;  %v6692_v46 = vld [vmem:[#allocation61_spill] sm:$0xff] }
 0x38e   :  { %1986 = vmatprep.subr.bf16.mxu1 %v6599_v52  ;;  %2027 = vmatprep.subr.bf16.mxu0 %v6600_v53  ;;  %v6693_v52 = vld [vmem:[#allocation62_spill] sm:$0xff]  ;;  %v6694_v53 = vld [vmem:[#allocation63_spill] sm:$0xff] }
 0x391   :  { %1987 = vmatpush1.bf16.msra.mxu1 %v6601_v56  ;;  %2028 = vmatpush1.bf16.msra.mxu0 %v6602_v57  ;;  %v6695_v56 = vld [vmem:[#allocation64_spill] sm:$0xff]  ;;  %v6696_v57 = vld [vmem:[#allocation65_spill] sm:$0xff] }
 0x392   :  { %1988 = vmatprep.subr.bf16.mxu1 %v6603_v63  ;;  %2029 = vmatprep.subr.bf16.mxu0 %v6604_v1  ;;  %v6697_v63 = vld [vmem:[#allocation66_spill] sm:$0xff]  ;;  %v6698_v1 = vld [vmem:[#allocation67_spill] sm:$0xff] }
 0x395   :  { %1989 = vmatpush1.bf16.msra.mxu1 %v6605_v4  ;;  %2030 = vmatpush1.bf16.msra.mxu0 %v6606_v5  ;;  %v6699_v4 = vld [vmem:[#allocation68_spill] sm:$0xff]  ;;  %v6700_v5 = vld [vmem:[#allocation69_spill] sm:$0xff] }
 0x396   :  { %1990 = vmatprep.subr.bf16.mxu1 %v6607_v11  ;;  %2031 = vmatprep.subr.bf16.mxu0 %v6608_v12  ;;  %v6701_v11 = vld [vmem:[#allocation70_spill] sm:$0xff]  ;;  %v6702_v12 = vld [vmem:[#allocation71_spill] sm:$0xff] }
 0x399   :  { %1991 = vmatpush1.bf16.msra.mxu1 %v6609_v15  ;;  %2032 = vmatpush1.bf16.msra.mxu0 %v6610_v16  ;;  %v6703_v15 = vld [vmem:[#allocation72_spill] sm:$0xff]  ;;  %v6704_v16 = vld [vmem:[#allocation73_spill] sm:$0xff] }
 0x39a   :  { %1992 = vmatprep.subr.bf16.mxu1 %v6611_v23  ;;  %2033 = vmatprep.subr.bf16.mxu0 %v6612_v20  ;;  %v5212_v23 = vld [vmem:[#allocation6 + $0x4] ss:$16 sps:$4 sm:$0xff]   ;;  %v5215_v20 = vld [vmem:[#allocation6 + $0xc] ss:$16 sps:$4 sm:$0xff]  }
 0x39b   :  { %6705 = vst [vmem:[#allocation23_spill] sm:$0xff] %v5212_v23  ;;  %6706 = vst [vmem:[#allocation24_spill] sm:$0xff] %v5215_v20 }
 0x39d   :  { %1993 = vmatpush1.bf16.msra.mxu1 %v6667_v29  ;;  %2034 = vmatpush1.bf16.msra.mxu0 %v6668_v30  ;;  %v6708_v29 = vld [vmem:[#allocation19_spill] sm:$0xff] }
 0x39e   :  { %1994 = vmatprep.subr.bf16.mxu1 %v6669_v33  ;;  %2035 = vmatprep.subr.bf16.mxu0 %v6670_v34 }
 0x3a1   :  { %1995 = vmatpush1.bf16.msra.mxu1 %v6671_v40  ;;  %2036 = vmatpush1.bf16.msra.mxu0 %v6672_v43 }
 0x3a2   :  { %1996 = vmatprep.subr.bf16.mxu1 %v6673_v24  ;;  %2037 = vmatprep.subr.bf16.mxu0 %v6674_v48 }
 0x3a5   :  { %1997 = vmatpush1.bf16.msra.mxu1 %v6675_v54  ;;  %2038 = vmatpush1.bf16.msra.mxu0 %v6676_v55  ;;  %v6709_v54 = vld [vmem:[#allocation20_spill] sm:$0xff] }
 0x3a6   :  { %1998 = vmatprep.subr.bf16.mxu1 %v6677_v58  ;;  %2039 = vmatprep.subr.bf16.mxu0 %v6678_v59  ;;  %v6710_v59 = vld [vmem:[#allocation21_spill] sm:$0xff] }
 0x3a9   :  { %1999 = vmatpush1.bf16.msra.mxu1 %v6679_v60  ;;  %2040 = vmatpush1.bf16.msra.mxu0 %v6680_v61 }
 0x3aa   :  { %2000 = vmatprep.subr.bf16.mxu1 %v6681_v62  ;;  %2041 = vmatprep.subr.bf16.mxu0 %v6682_v2 }
 0x3ad   :  { %2001 = vmatpush1.bf16.msra.mxu1 %v6683_v3  ;;  %2042 = vmatpush1.bf16.msra.mxu0 %v6684_v6 }
 0x3ae   :  { %2002 = vmatprep.subr.bf16.mxu1 %v6685_v7  ;;  %2043 = vmatprep.subr.bf16.mxu0 %v6686_v8 }
 0x3b1   :  { %2003 = vmatpush1.bf16.msra.mxu1 %v6687_v9  ;;  %2044 = vmatpush1.bf16.msra.mxu0 %v6688_v10 }
 0x3b2   :  { %2004 = vmatprep.subr.bf16.mxu1 %v6689_v41  ;;  %2045 = vmatprep.subr.bf16.mxu0 %v6690_v42  ;;  %v6711_v42 = vld [vmem:[#allocation22_spill] sm:$0xff] }
 0x3b5   :  { %2005 = vmatpush1.bf16.msra.mxu1 %v6691_v45  ;;  %2046 = vmatpush1.bf16.msra.mxu0 %v6692_v46 }
 0x3b6   :  { %2006 = vmatprep.subr.bf16.mxu1 %v6693_v52  ;;  %2047 = vmatprep.subr.bf16.mxu0 %v6694_v53 }
 0x3b9   :  { %2007 = vmatpush1.bf16.msra.mxu1 %v6695_v56  ;;  %2048 = vmatpush1.bf16.msra.mxu0 %v6696_v57  ;;  %v6712_v56 = vld [vmem:[#allocation78_spill] sm:$0xff] }
 0x3ba   :  { %2008 = vmatprep.subr.bf16.mxu1 %v6697_v63  ;;  %2049 = vmatprep.subr.bf16.mxu0 %v6698_v1  ;;  %v6713_v63 = vld [vmem:[#allocation79_spill] sm:$0xff] }
 0x3bd   :  { %2009 = vmatpush1.bf16.msra.mxu1 %v6699_v4  ;;  %2050 = vmatpush1.bf16.msra.mxu0 %v6700_v5 }
 0x3be   :  { %2010 = vmatprep.subr.bf16.mxu1 %v6701_v11  ;;  %2051 = vmatprep.subr.bf16.mxu0 %v6702_v12  ;;  %v6714_v11 = vld [vmem:[#allocation80_spill] sm:$0xff] }
 0x3c1   :  { %2011 = vmatpush1.bf16.msra.mxu1 %v6703_v15  ;;  %2052 = vmatpush1.bf16.msra.mxu0 %v6704_v16  ;;  %v6715_v15 = vld [vmem:[#allocation81_spill] sm:$0xff] }
 0x3c2   :  { %2093 = vmatprep.subr.bf16.mxu1 %v5212_v23  ;;  %2134 = vmatprep.subr.bf16.mxu0 %v5215_v20 }
 0x437   :  { %v1789_v17 = vpop.f32.mrb[28].mxu1  ;;  %v1830_v51 = vpop.f32.mrb[44].mxu0 }
 0x438   :  { %v1790_v31 = vadd.f32 %v1789_v17, %v6707_v26  ;;  %v1791_v0 = vpop.f32.mrb[29].mxu1  ;;  %v1832_v27 = vpop.f32.mrb[45].mxu0  ;;  %v1831_v60 = vadd.f32 %v1830_v51, %v6710_v59 }
 0x439   :  { %v1792_v30 = vadd.f32 %v1791_v0, %v6708_v29  ;;  %v1793_v33 = vpop.f32.mrb[30].mxu1  ;;  %v1834_v34 = vpop.f32.mrb[46].mxu0  ;;  %v1833_v55 = vadd.f32 %v1832_v27, %v6709_v54 }
 0x43a   :  { %v3522_v40 = vmul.f32 -1.442695, %v1790_v31  ;;  %v1794_v43 = vpop.f32.mrb[31].mxu1  ;;  %v1835_v24 = vpop.f32.mrb[47].mxu0 }
 0x43b   :  { %v3523_v48 = vmul.f32 -1.442695, %v1792_v30  ;;  %v3524_v58 = vmul.f32 -1.442695, %v1833_v55 }
 0x43c   :  { %3905 = vpow2.f32 %v3522_v40 }
 0x43d   :  { %3907 = vpow2.f32 %v3523_v48 }
 0x43e   :  { %3909 = vpow2.f32 %v3524_v58 }
 0x43f   :  { %3911 = vtanh.f32 %v1831_v60 }
 0x446   :  { %v3906_v61 = vpop.eup %3905 }
 0x447   :  { %v3908_v62 = vpop.eup %3907  ;;  %v1840_v2 = vadd.f32 1.0, %v3906_v61 }
 0x448   :  { %v1846_v3 = vadd.f32 1.0, %v3908_v62  ;;  %v3910_v6 = vpop.eup %3909 }
 0x449   :  { %3913 = vrcp.f32 %v1840_v2  ;;  %v3912_v7 = vpop.eup %3911  ;;  %v1853_v41 = vadd.f32 1.0, %v3910_v6 }
 0x44a   :  { %3915 = vrcp.f32 %v1846_v3 }
 0x44b   :  { %3917 = vrcp.f32 %v1853_v41 }
 0x453   :  { %v3914_v8 = vpop.eup %3913 }
 0x454   :  { %v3916_v9 = vpop.eup %3915  ;;  %v1857_v10 = vmul.f32 %v3914_v8, %v3912_v7 }
 0x455   :  { %v1856_v45 = vmul.f32 %v3916_v9, %v6711_v42  ;;  %v3918_v33 = vpop.eup %3917 }
 0x457   :  { %v1902_v46 = vpop.f32.mrb[32].mxu1  ;;  %v1943_v52 = vpop.f32.mrb[48].mxu0  ;;  %v5223_v53 = vadd.f32 %v1857_v10, %v1856_v45 }
 0x458   :  { %v1950_v57 = vadd.f32 %v1902_v46, %v6712_v56  ;;  %v1952_v1 = vadd.f32 %v1943_v52, %v6713_v63  ;;  %v1904_v4 = vpop.f32.mrb[33].mxu1  ;;  %v1945_v5 = vpop.f32.mrb[49].mxu0  ;;  %v5255_v46 = vld [vmem:[#allocation6 + $0x88] ss:$16 sps:$4 sm:$0xff]   ;;  %v5258_v52 = vld [vmem:[#allocation6 + $0xa4] ss:$16 sps:$4 sm:$0xff]  }
 0x459   :  { %v1951_v12 = vadd.f32 %v1904_v4, %v6714_v11  ;;  %v1953_v16 = vadd.f32 %v1945_v5, %v6715_v15  ;;  %v1906_v17 = vpop.f32.mrb[34].mxu1  ;;  %v1947_v51 = vpop.f32.mrb[50].mxu0  ;;  %3919 = vtanh.f32 %v5223_v53  ;;  %v5261_v56 = vld [vmem:[#allocation6 + $0xac] ss:$16 sps:$4 sm:$0xff]   ;;  %v5267_v63 = vld [vmem:[#allocation6 + $0xa8] ss:$16 sps:$4 sm:$0xff]  }
 0x45a   :  { %v3525_v31 = vmul.f32 -1.442695, %v1950_v57  ;;  %v1907_v0 = vpop.f32.mrb[35].mxu1  ;;  %v1948_v27 = vpop.f32.mrb[51].mxu0  ;;  %v5264_v57 = vld [vmem:[#allocation6 + $0xa0] ss:$16 sps:$4 sm:$0xff]  }
 0x45b   :  { %v3526_v30 = vmul.f32 -1.442695, %v1951_v12  ;;  %v3527_v40 = vmul.f32 -1.442695, %v1953_v16  ;;  %v5273_v4 = vld [vmem:[#allocation6 + $0xcc] ss:$16 sps:$4 sm:$0xff]  }
 0x45c   :  { %3921 = vpow2.f32 %v3525_v31  ;;  %v5276_v5 = vld [vmem:[#allocation6 + $0xc0] ss:$16 sps:$4 sm:$0xff]   ;;  %v5279_v11 = vld [vmem:[#allocation6 + $0xc8] ss:$16 sps:$4 sm:$0xff]   ;;  %v5282_v12 = vld [vmem:[#allocation6 + $0xe4] ss:$16 sps:$4 sm:$0xff]  }
 0x45d   :  { %3923 = vpow2.f32 %v3526_v30  ;;  %v5285_v15 = vld [vmem:[#allocation6 + $0xec] ss:$16 sps:$4 sm:$0xff]   ;;  %v5288_v16 = vld [vmem:[#allocation6 + $0xe0] ss:$16 sps:$4 sm:$0xff]   ;;  %v5291_v17 = vld [vmem:[#allocation6 + $0xe8] ss:$16 sps:$4 sm:$0xff]  }
 0x45e   :  { %3925 = vpow2.f32 %v3527_v40  ;;  %v5294_v51 = vld [vmem:[#allocation8 + $0x4] ss:$16 sps:$4 sm:$0xff]   ;;  %v5297_v31 = vld [vmem:[#allocation8 + $0xc] ss:$16 sps:$4 sm:$0xff]   ;;  %v5300_v0 = vld [vmem:[#allocation8] ss:$16 sps:$4 sm:$0xff]  }
 0x45f   :  { %3927 = vtanh.f32 %v1952_v1  ;;  %v5270_v1 = vld [vmem:[#allocation6 + $0xc4] ss:$16 sps:$4 sm:$0xff]   ;;  %v5303_v27 = vld [vmem:[#allocation8 + $0x8] ss:$16 sps:$4 sm:$0xff]  }
 0x460   :  { %v5306_v30 = vld [vmem:[#allocation8 + $0x24] ss:$16 sps:$4 sm:$0xff]   ;;  %v5315_v40 = vld [vmem:[#allocation8 + $0x28] ss:$16 sps:$4 sm:$0xff]  }
 0x463   :  { %v3920_v34 = vpop.eup %3919 }
 0x464   :  { %v1860_v43 = vmul.f32 %v3920_v34, %v3918_v33  ;;  %v5309_v33 = vld [vmem:[#allocation8 + $0x2c] ss:$16 sps:$4 sm:$0xff]   ;;  %v5312_v34 = vld [vmem:[#allocation8 + $0x20] ss:$16 sps:$4 sm:$0xff]  }
 0x466   :  { %v3922_v24 = vpop.eup %3921  ;;  %v1979_v48 = vpack.c.bf16 %v1860_v43, %v1860_v43  ;;  %v5318_v43 = vld [vmem:[#allocation8 + $0x44] ss:$16 sps:$4 sm:$0xff]  }
 0x467   :  { %v3924_v55 = vpop.eup %3923  ;;  %v1957_v58 = vadd.f32 1.0, %v3922_v24  ;;  %v5321_v24 = vld [vmem:[#allocation8 + $0x4c] ss:$16 sps:$4 sm:$0xff]  }
 0x468   :  { %v1963_v60 = vadd.f32 1.0, %v3924_v55  ;;  %2012 = vmatprep.mubr.bf16.mxu1 %v1979_v48  ;;  %2053 = vmatprep.mubr.bf16.mxu0 %v1979_v48  ;;  %v3926_v61 = vpop.eup %3925  ;;  %v5324_v48 = vld [vmem:[#allocation8 + $0x40] ss:$16 sps:$4 sm:$0xff]   ;;  %v5327_v55 = vld [vmem:[#allocation8 + $0x48] ss:$16 sps:$4 sm:$0xff]  }
 0x469   :  { %3929 = vrcp.f32 %v1957_v58  ;;  %v3928_v62 = vpop.eup %3927  ;;  %v1970_v7 = vadd.f32 1.0, %v3926_v61  ;;  %6716 = vst [vmem:[#allocation25_spill] sm:$0xff] %v5324_v48  ;;  %6717 = vst [vmem:[#allocation26_spill] sm:$0xff] %v5327_v55  ;;  %v5330_v58 = vld [vmem:[#allocation8 + $0x64] ss:$16 sps:$4 sm:$0xff]  }
 0x46a   :  { %3931 = vrcp.f32 %v1963_v60  ;;  %6718 = vst [vmem:[#allocation27_spill] sm:$0xff] %v5330_v58  ;;  %v5333_v60 = vld [vmem:[#allocation8 + $0x6c] ss:$16 sps:$4 sm:$0xff]   ;;  %v5336_v61 = vld [vmem:[#allocation8 + $0x60] ss:$16 sps:$4 sm:$0xff]  }
 0x46b   :  { %3933 = vrcp.f32 %v1970_v7  ;;  %6719 = vst [vmem:[#allocation28_spill] sm:$0xff] %v5333_v60  ;;  %6720 = vst [vmem:[#allocation29_spill] sm:$0xff] %v5336_v61  ;;  %v5351_v7 = vld [vmem:[#allocation8 + $0x88] ss:$16 sps:$4 sm:$0xff]  }
 0x46c   :  { %6725 = vst [vmem:[#allocation34_spill] sm:$0xff] %v5351_v7 }
 0x473   :  { %v3930_v2 = vpop.eup %3929 }
 0x474   :  { %v3932_v3 = vpop.eup %3931  ;;  %v1974_v6 = vmul.f32 %v3930_v2, %v3928_v62  ;;  %v5339_v62 = vld [vmem:[#allocation8 + $0x68] ss:$16 sps:$4 sm:$0xff]   ;;  %v5342_v2 = vld [vmem:[#allocation8 + $0x84] ss:$16 sps:$4 sm:$0xff]  }
 0x475   :  { %v1973_v8 = vmul.f32 %v3932_v3, %v5081_v22  ;;  %v3934_v10 = vpop.eup %3933  ;;  %v5252_v22 = vld [vmem:[#allocation6 + $0x80] ss:$16 sps:$4 sm:$0xff]   ;;  %6721 = vst [vmem:[#allocation30_spill] sm:$0xff] %v5339_v62  ;;  %6722 = vst [vmem:[#allocation31_spill] sm:$0xff] %v5342_v2  ;;  %v5345_v3 = vld [vmem:[#allocation8 + $0x8c] ss:$16 sps:$4 sm:$0xff]  }
 0x476   :  { %6723 = vst [vmem:[#allocation32_spill] sm:$0xff] %v5345_v3 }
 0x477   :  { %v5231_v9 = vadd.f32 %v1974_v6, %v1973_v8  ;;  %v5348_v6 = vld [vmem:[#allocation8 + $0x80] ss:$16 sps:$4 sm:$0xff]   ;;  %v5354_v8 = vld [vmem:[#allocation8 + $0xa4] ss:$16 sps:$4 sm:$0xff]  }
 0x478   :  { %6724 = vst [vmem:[#allocation33_spill] sm:$0xff] %v5348_v6  ;;  %6726 = vst [vmem:[#allocation35_spill] sm:$0xff] %v5354_v8 }
 0x479   :  { %3935 = vtanh.f32 %v5231_v9 }
 0x483   :  { %v3936_v41 = vpop.eup %3935 }
 0x484   :  { %v1977_v42 = vmul.f32 %v3936_v41, %v3934_v10  ;;  %v5357_v10 = vld [vmem:[#allocation8 + $0xac] ss:$16 sps:$4 sm:$0xff]   ;;  %v5360_v41 = vld [vmem:[#allocation8 + $0xa0] ss:$16 sps:$4 sm:$0xff]  }
 0x485   :  { %6727 = vst [vmem:[#allocation13_spill] sm:$0xff] %v5357_v10  ;;  %6728 = vst [vmem:[#allocation14_spill] sm:$0xff] %v5360_v41 }
 0x486   :  { %v1978_v45 = vpack.c.bf16 %v1977_v42, %v1977_v42  ;;  %v5363_v42 = vld [vmem:[#allocation8 + $0xa8] ss:$16 sps:$4 sm:$0xff]  }
 0x487   :  { %6729 = vst [vmem:[#allocation16_spill] sm:$0xff] %v5363_v42 }
 0x488   :  { %2013 = vmatmul.mubr.bf16.vlgmr.msra.gmra.mrb[36].mxu1 %v1978_v45  ;;  %2054 = vmatmul.mubr.bf16.vlgmr.msra.gmra.mrb[52].mxu0 %v1978_v45 }
 0x489   :  { %2094 = vmatpush1.bf16.msra.mxu1 %v5084_v39  ;;  %2135 = vmatpush1.bf16.msra.mxu0 %v5087_v32 }
 0x48a   :  { %2095 = vmatprep.subr.bf16.mxu1 %v5090_v50  ;;  %2136 = vmatprep.subr.bf16.mxu0 %v5093_v13 }
 0x48b   :  { %2125 = vmatprep.mubr.bf16.mxu1 %v6594_v19  ;;  %2166 = vmatprep.mubr.bf16.mxu0 %v6594_v19 }
 0x48d   :  { %2096 = vmatpush1.bf16.msra.mxu1 %v5098_v36  ;;  %2137 = vmatpush1.bf16.msra.mxu0 %v5101_v25 }
 0x48e   :  { %2097 = vmatprep.subr.bf16.mxu1 %v5104_v47  ;;  %2138 = vmatprep.subr.bf16.mxu0 %v5107_v35 }
 0x491   :  { %2098 = vmatpush1.bf16.msra.mxu1 %v5110_v49  ;;  %2139 = vmatpush1.bf16.msra.mxu0 %v5113_v38 }
 0x492   :  { %2099 = vmatprep.subr.bf16.mxu1 %v5116_v18  ;;  %2140 = vmatprep.subr.bf16.mxu0 %v5119_v28 }
 0x495   :  { %2100 = vmatpush1.bf16.msra.mxu1 %v5122_v21  ;;  %2141 = vmatpush1.bf16.msra.mxu0 %v5125_v14 }
 0x496   :  { %2101 = vmatprep.subr.bf16.mxu1 %v5128_v44  ;;  %2142 = vmatprep.subr.bf16.mxu0 %v5131_v37 }
 0x499   :  { %2102 = vmatpush1.bf16.msra.mxu1 %v5252_v22  ;;  %2143 = vmatpush1.bf16.msra.mxu0 %v5255_v46 }
 0x49a   :  { %2103 = vmatprep.subr.bf16.mxu1 %v5258_v52  ;;  %2144 = vmatprep.subr.bf16.mxu0 %v5261_v56 }
 0x49d   :  { %2104 = vmatpush1.bf16.msra.mxu1 %v5264_v57  ;;  %2145 = vmatpush1.bf16.msra.mxu0 %v5267_v63 }
 0x49e   :  { %2105 = vmatprep.subr.bf16.mxu1 %v5270_v1  ;;  %2146 = vmatprep.subr.bf16.mxu0 %v5273_v4 }
 0x4a1   :  { %2106 = vmatpush1.bf16.msra.mxu1 %v5276_v5  ;;  %2147 = vmatpush1.bf16.msra.mxu0 %v5279_v11 }
 0x4a2   :  { %2107 = vmatprep.subr.bf16.mxu1 %v5282_v12  ;;  %2148 = vmatprep.subr.bf16.mxu0 %v5285_v15 }
 0x4a5   :  { %2108 = vmatpush1.bf16.msra.mxu1 %v5288_v16  ;;  %2149 = vmatpush1.bf16.msra.mxu0 %v5291_v17 }
 0x4a6   :  { %2205 = vmatprep.subr.bf16.mxu1 %v5294_v51  ;;  %2246 = vmatprep.subr.bf16.mxu0 %v5297_v31 }
 0x4a8   :  { %2126 = vmatmul.mubr.bf16.vlgmr.msra.gmra.mrb[40].mxu1 %v1978_v45  ;;  %2167 = vmatmul.mubr.bf16.vlgmr.msra.gmra.mrb[56].mxu0 %v1978_v45  ;;  %v5366_v45 = vld [vmem:[#allocation8 + $0xc4] ss:$16 sps:$4 sm:$0xff]  }
 0x4a9   :  { %2206 = vmatpush1.bf16.msra.mxu1 %v5300_v0  ;;  %2247 = vmatpush1.bf16.msra.mxu0 %v5303_v27  ;;  %6730 = vst [vmem:[#allocation17_spill] sm:$0xff] %v5366_v45 }
 0x4aa   :  { %2207 = vmatprep.subr.bf16.mxu1 %v5306_v30  ;;  %2248 = vmatprep.subr.bf16.mxu0 %v5309_v33 }
 0x4ad   :  { %2208 = vmatpush1.bf16.msra.mxu1 %v5312_v34  ;;  %2249 = vmatpush1.bf16.msra.mxu0 %v5315_v40 }
 0x4ae   :  { %2209 = vmatprep.subr.bf16.mxu1 %v5318_v43  ;;  %2250 = vmatprep.subr.bf16.mxu0 %v5321_v24 }
 0x4b1   :  { %2210 = vmatpush1.bf16.msra.mxu1 %v5324_v48  ;;  %2251 = vmatpush1.bf16.msra.mxu0 %v5327_v55 }
 0x4b2   :  { %2211 = vmatprep.subr.bf16.mxu1 %v5330_v58  ;;  %2252 = vmatprep.subr.bf16.mxu0 %v5333_v60 }
 0x4b5   :  { %2212 = vmatpush1.bf16.msra.mxu1 %v5336_v61  ;;  %2253 = vmatpush1.bf16.msra.mxu0 %v5339_v62 }
 0x4b6   :  { %2213 = vmatprep.subr.bf16.mxu1 %v5342_v2  ;;  %2254 = vmatprep.subr.bf16.mxu0 %v5345_v3 }
 0x4b9   :  { %2214 = vmatpush1.bf16.msra.mxu1 %v5348_v6  ;;  %2255 = vmatpush1.bf16.msra.mxu0 %v5351_v7  ;;  %v5369_v7 = vld [vmem:[#allocation8 + $0xcc] ss:$16 sps:$4 sm:$0xff]  }
 0x4ba   :  { %2215 = vmatprep.subr.bf16.mxu1 %v5354_v8  ;;  %2256 = vmatprep.subr.bf16.mxu0 %v5357_v10  ;;  %6731 = vst [vmem:[#allocation15_spill] sm:$0xff] %v5369_v7  ;;  %v5372_v8 = vld [vmem:[#allocation8 + $0xc0] ss:$16 sps:$4 sm:$0xff]   ;;  %v5375_v10 = vld [vmem:[#allocation8 + $0xc8] ss:$16 sps:$4 sm:$0xff]  }
 0x4bb   :  { %6732 = vst [vmem:[#allocation74_spill] sm:$0xff] %v5372_v8  ;;  %6733 = vst [vmem:[#allocation75_spill] sm:$0xff] %v5375_v10 }
 0x4bd   :  { %2216 = vmatpush1.bf16.msra.mxu1 %v5360_v41  ;;  %2257 = vmatpush1.bf16.msra.mxu0 %v5363_v42  ;;  %v5378_v41 = vld [vmem:[#allocation8 + $0xe4] ss:$16 sps:$4 sm:$0xff]   ;;  %v5381_v42 = vld [vmem:[#allocation8 + $0xec] ss:$16 sps:$4 sm:$0xff]  }
 0x4be   :  { %2217 = vmatprep.subr.bf16.mxu1 %v5366_v45  ;;  %2258 = vmatprep.subr.bf16.mxu0 %v5369_v7  ;;  %6734 = vst [vmem:[#allocation76_spill] sm:$0xff] %v5378_v41  ;;  %6735 = vst [vmem:[#allocation77_spill] sm:$0xff] %v5381_v42  ;;  %v5384_v45 = vld [vmem:[#allocation8 + $0xe0] ss:$16 sps:$4 sm:$0xff]   ;;  %v5387_v7 = vld [vmem:[#allocation8 + $0xe8] ss:$16 sps:$4 sm:$0xff]  }
 0x4bf   :  { %6736 = vst [vmem:[#allocation36_spill] sm:$0xff] %v5384_v45  ;;  %6737 = vst [vmem:[#allocation37_spill] sm:$0xff] %v5387_v7 }
 0x4c1   :  { %2218 = vmatpush1.bf16.msra.mxu1 %v5372_v8  ;;  %2259 = vmatpush1.bf16.msra.mxu0 %v5375_v10  ;;  %v5390_v8 = vld [vmem:[#allocation8 + $0x104] ss:$16 sps:$4 sm:$0xff]   ;;  %v5393_v10 = vld [vmem:[#allocation8 + $0x10c] ss:$16 sps:$4 sm:$0xff]  }
 0x4c2   :  { %2219 = vmatprep.subr.bf16.mxu1 %v5378_v41  ;;  %2260 = vmatprep.subr.bf16.mxu0 %v5381_v42  ;;  %6738 = vst [vmem:[#allocation38_spill] sm:$0xff] %v5390_v8  ;;  %6739 = vst [vmem:[#allocation39_spill] sm:$0xff] %v5393_v10  ;;  %v5396_v41 = vld [vmem:[#allocation8 + $0x100] ss:$16 sps:$4 sm:$0xff]   ;;  %v5399_v42 = vld [vmem:[#allocation8 + $0x108] ss:$16 sps:$4 sm:$0xff]  }
 0x4c3   :  { %6740 = vst [vmem:[#allocation40_spill] sm:$0xff] %v5396_v41  ;;  %6741 = vst [vmem:[#allocation41_spill] sm:$0xff] %v5399_v42 }
 0x4c5   :  { %2220 = vmatpush1.bf16.msra.mxu1 %v5384_v45  ;;  %2261 = vmatpush1.bf16.msra.mxu0 %v5387_v7  ;;  %v5402_v45 = vld [vmem:[#allocation8 + $0x124] ss:$16 sps:$4 sm:$0xff]   ;;  %v5405_v7 = vld [vmem:[#allocation8 + $0x12c] ss:$16 sps:$4 sm:$0xff]  }
 0x4c6   :  { %2221 = vmatprep.subr.bf16.mxu1 %v5390_v8  ;;  %2262 = vmatprep.subr.bf16.mxu0 %v5393_v10  ;;  %6742 = vst [vmem:[#allocation42_spill] sm:$0xff] %v5402_v45  ;;  %6743 = vst [vmem:[#allocation43_spill] sm:$0xff] %v5405_v7  ;;  %v5408_v8 = vld [vmem:[#allocation8 + $0x120] ss:$16 sps:$4 sm:$0xff]   ;;  %v5411_v10 = vld [vmem:[#allocation8 + $0x128] ss:$16 sps:$4 sm:$0xff]  }
 0x4c7   :  { %6744 = vst [vmem:[#allocation44_spill] sm:$0xff] %v5408_v8  ;;  %6745 = vst [vmem:[#allocation45_spill] sm:$0xff] %v5411_v10 }
 0x4c9   :  { %2222 = vmatpush1.bf16.msra.mxu1 %v5396_v41  ;;  %2263 = vmatpush1.bf16.msra.mxu0 %v5399_v42  ;;  %v5414_v41 = vld [vmem:[#allocation8 + $0x144] ss:$16 sps:$4 sm:$0xff]   ;;  %v5417_v42 = vld [vmem:[#allocation8 + $0x14c] ss:$16 sps:$4 sm:$0xff]  }
 0x4ca   :  { %2223 = vmatprep.subr.bf16.mxu1 %v5402_v45  ;;  %2264 = vmatprep.subr.bf16.mxu0 %v5405_v7  ;;  %6746 = vst [vmem:[#allocation46_spill] sm:$0xff] %v5414_v41  ;;  %6747 = vst [vmem:[#allocation47_spill] sm:$0xff] %v5417_v42  ;;  %v5420_v45 = vld [vmem:[#allocation8 + $0x140] ss:$16 sps:$4 sm:$0xff]   ;;  %v5423_v7 = vld [vmem:[#allocation8 + $0x148] ss:$16 sps:$4 sm:$0xff]  }
 0x4cb   :  { %6748 = vst [vmem:[#allocation48_spill] sm:$0xff] %v5420_v45  ;;  %6749 = vst [vmem:[#allocation49_spill] sm:$0xff] %v5423_v7 }
 0x4cd   :  { %2224 = vmatpush1.bf16.msra.mxu1 %v5408_v8  ;;  %2265 = vmatpush1.bf16.msra.mxu0 %v5411_v10  ;;  %v5426_v8 = vld [vmem:[#allocation8 + $0x164] ss:$16 sps:$4 sm:$0xff]   ;;  %v5429_v10 = vld [vmem:[#allocation8 + $0x16c] ss:$16 sps:$4 sm:$0xff]  }
 0x4ce   :  { %2225 = vmatprep.subr.bf16.mxu1 %v5414_v41  ;;  %2266 = vmatprep.subr.bf16.mxu0 %v5417_v42  ;;  %6750 = vst [vmem:[#allocation50_spill] sm:$0xff] %v5426_v8  ;;  %6751 = vst [vmem:[#allocation51_spill] sm:$0xff] %v5429_v10  ;;  %v5432_v41 = vld [vmem:[#allocation8 + $0x160] ss:$16 sps:$4 sm:$0xff]   ;;  %v5435_v42 = vld [vmem:[#allocation8 + $0x168] ss:$16 sps:$4 sm:$0xff]  }
 0x4cf   :  { %6752 = vst [vmem:[#allocation52_spill] sm:$0xff] %v5432_v41  ;;  %6753 = vst [vmem:[#allocation53_spill] sm:$0xff] %v5435_v42 }
 0x4d1   :  { %2226 = vmatpush1.bf16.msra.mxu1 %v5420_v45  ;;  %2267 = vmatpush1.bf16.msra.mxu0 %v5423_v7  ;;  %v5438_v45 = vld [vmem:[#allocation8 + $0x184] ss:$16 sps:$4 sm:$0xff]   ;;  %v5441_v7 = vld [vmem:[#allocation8 + $0x18c] ss:$16 sps:$4 sm:$0xff]  }
 0x4d2   :  { %2227 = vmatprep.subr.bf16.mxu1 %v5426_v8  ;;  %2268 = vmatprep.subr.bf16.mxu0 %v5429_v10  ;;  %6754 = vst [vmem:[#allocation54_spill] sm:$0xff] %v5438_v45  ;;  %6755 = vst [vmem:[#allocation55_spill] sm:$0xff] %v5441_v7  ;;  %v5444_v8 = vld [vmem:[#allocation8 + $0x180] ss:$16 sps:$4 sm:$0xff]   ;;  %v5447_v10 = vld [vmem:[#allocation8 + $0x188] ss:$16 sps:$4 sm:$0xff]  }
 0x4d3   :  { %6756 = vst [vmem:[#allocation56_spill] sm:$0xff] %v5444_v8  ;;  %6757 = vst [vmem:[#allocation57_spill] sm:$0xff] %v5447_v10 }
 0x4d5   :  { %2228 = vmatpush1.bf16.msra.mxu1 %v5432_v41  ;;  %2269 = vmatpush1.bf16.msra.mxu0 %v5435_v42  ;;  %v5450_v41 = vld [vmem:[#allocation8 + $0x1a4] ss:$16 sps:$4 sm:$0xff]   ;;  %v5453_v42 = vld [vmem:[#allocation8 + $0x1ac] ss:$16 sps:$4 sm:$0xff]  }
 0x4d6   :  { %2229 = vmatprep.subr.bf16.mxu1 %v5438_v45  ;;  %2270 = vmatprep.subr.bf16.mxu0 %v5441_v7  ;;  %6758 = vst [vmem:[#allocation58_spill] sm:$0xff] %v5450_v41  ;;  %6759 = vst [vmem:[#allocation59_spill] sm:$0xff] %v5453_v42  ;;  %v5456_v45 = vld [vmem:[#allocation8 + $0x1a0] ss:$16 sps:$4 sm:$0xff]   ;;  %v5459_v7 = vld [vmem:[#allocation8 + $0x1a8] ss:$16 sps:$4 sm:$0xff]  }
 0x4d7   :  { %6760 = vst [vmem:[#allocation60_spill] sm:$0xff] %v5456_v45  ;;  %6761 = vst [vmem:[#allocation61_spill] sm:$0xff] %v5459_v7 }
 0x4d9   :  { %2230 = vmatpush1.bf16.msra.mxu1 %v5444_v8  ;;  %2271 = vmatpush1.bf16.msra.mxu0 %v5447_v10  ;;  %v5462_v8 = vld [vmem:[#allocation8 + $0x1c4] ss:$16 sps:$4 sm:$0xff]   ;;  %v5465_v10 = vld [vmem:[#allocation8 + $0x1cc] ss:$16 sps:$4 sm:$0xff]  }
 0x4da   :  { %2231 = vmatprep.subr.bf16.mxu1 %v5450_v41  ;;  %2272 = vmatprep.subr.bf16.mxu0 %v5453_v42  ;;  %6762 = vst [vmem:[#allocation62_spill] sm:$0xff] %v5462_v8  ;;  %6763 = vst [vmem:[#allocation63_spill] sm:$0xff] %v5465_v10  ;;  %v5468_v41 = vld [vmem:[#allocation8 + $0x1c0] ss:$16 sps:$4 sm:$0xff]   ;;  %v5471_v42 = vld [vmem:[#allocation8 + $0x1c8] ss:$16 sps:$4 sm:$0xff]  }
 0x4db   :  { %6764 = vst [vmem:[#allocation64_spill] sm:$0xff] %v5468_v41  ;;  %6765 = vst [vmem:[#allocation65_spill] sm:$0xff] %v5471_v42 }
 0x4dd   :  { %2232 = vmatpush1.bf16.msra.mxu1 %v5456_v45  ;;  %2273 = vmatpush1.bf16.msra.mxu0 %v5459_v7  ;;  %v5474_v45 = vld [vmem:[#allocation8 + $0x1e4] ss:$16 sps:$4 sm:$0xff]   ;;  %v5477_v7 = vld [vmem:[#allocation8 + $0x1ec] ss:$16 sps:$4 sm:$0xff]  }
 0x4de   :  { %2233 = vmatprep.subr.bf16.mxu1 %v5462_v8  ;;  %2274 = vmatprep.subr.bf16.mxu0 %v5465_v10  ;;  %6766 = vst [vmem:[#allocation66_spill] sm:$0xff] %v5474_v45  ;;  %6767 = vst [vmem:[#allocation67_spill] sm:$0xff] %v5477_v7  ;;  %v5480_v8 = vld [vmem:[#allocation8 + $0x1e0] ss:$16 sps:$4 sm:$0xff]   ;;  %v5483_v10 = vld [vmem:[#allocation8 + $0x1e8] ss:$16 sps:$4 sm:$0xff]  }
 0x4df   :  { %6768 = vst [vmem:[#allocation68_spill] sm:$0xff] %v5480_v8  ;;  %6769 = vst [vmem:[#allocation69_spill] sm:$0xff] %v5483_v10 }
 0x4e1   :  { %2234 = vmatpush1.bf16.msra.mxu1 %v5468_v41  ;;  %2275 = vmatpush1.bf16.msra.mxu0 %v5471_v42 }
 0x4e2   :  { %2235 = vmatprep.subr.bf16.mxu1 %v5474_v45  ;;  %2276 = vmatprep.subr.bf16.mxu0 %v5477_v7 }
 0x4e5   :  { %2236 = vmatpush1.bf16.msra.mxu1 %v5480_v8  ;;  %2277 = vmatpush1.bf16.msra.mxu0 %v5483_v10 }
 0x4e6   :  { %2318 = vmatprep.subr.bf16.mxu1 %v5212_v23  ;;  %2359 = vmatprep.subr.bf16.mxu0 %v5215_v20 }
 0x55b   :  { %v2014_v42 = vpop.f32.mrb[36].mxu1  ;;  %v2055_v41 = vpop.f32.mrb[52].mxu0 }
 0x55c   :  { %v2015_v45 = vadd.f32 %v2014_v42, %v6707_v26  ;;  %v2016_v6 = vpop.f32.mrb[37].mxu1  ;;  %v2057_v3 = vpop.f32.mrb[53].mxu0  ;;  %v2056_v20 = vadd.f32 %v2055_v41, %v6710_v59  ;;  %v6770_v41 = vld [vmem:[#allocation82_spill] sm:$0xff]  ;;  %v6773_v59 = vld [vmem:[#allocation85_spill] sm:$0xff] }
 0x55d   :  { %v2017_v7 = vadd.f32 %v2016_v6, %v6708_v29  ;;  %v2018_v2 = vpop.f32.mrb[38].mxu1  ;;  %v2059_v62 = vpop.f32.mrb[54].mxu0  ;;  %v2058_v23 = vadd.f32 %v2057_v3, %v6709_v54 }
 0x55e   :  { %v3528_v61 = vmul.f32 -1.442695, %v2015_v45  ;;  %v2019_v8 = vpop.f32.mrb[39].mxu1  ;;  %v2060_v60 = vpop.f32.mrb[55].mxu0 }
 0x55f   :  { %v3529_v58 = vmul.f32 -1.442695, %v2017_v7  ;;  %v3530_v10 = vmul.f32 -1.442695, %v2058_v23 }
 0x560   :  { %3937 = vpow2.f32 %v3528_v61 }
 0x561   :  { %3939 = vpow2.f32 %v3529_v58 }
 0x562   :  { %3941 = vpow2.f32 %v3530_v10  ;;  %v6771_v10 = vld [vmem:[#allocation83_spill] sm:$0xff] }
 0x563   :  { %3943 = vtanh.f32 %v2056_v20 }
 0x56a   :  { %v3938_v55 = vpop.eup %3937 }
 0x56b   :  { %v3940_v48 = vpop.eup %3939  ;;  %v2065_v42 = vadd.f32 1.0, %v3938_v55 }
 0x56c   :  { %v2071_v26 = vadd.f32 1.0, %v3940_v48  ;;  %v3942_v62 = vpop.eup %3941 }
 0x56d   :  { %3945 = vrcp.f32 %v2065_v42  ;;  %v3944_v2 = vpop.eup %3943  ;;  %v2078_v61 = vadd.f32 1.0, %v3942_v62 }
 0x56e   :  { %3947 = vrcp.f32 %v2071_v26  ;;  %v6772_v26 = vld [vmem:[#allocation84_spill] sm:$0xff] }
 0x56f   :  { %3949 = vrcp.f32 %v2078_v61 }
 0x577   :  { %v3946_v6 = vpop.eup %3945 }
 0x578   :  { %v3948_v60 = vpop.eup %3947  ;;  %v2082_v7 = vmul.f32 %v3946_v6, %v3944_v2 }
 0x579   :  { %v2081_v58 = vmul.f32 %v3948_v60, %v5223_v53 }
 0x57b   :  { %v2127_v3 = vpop.f32.mrb[40].mxu1  ;;  %v2168_v23 = vpop.f32.mrb[56].mxu0  ;;  %v5493_v8 = vadd.f32 %v2082_v7, %v2081_v58 }
 0x57c   :  { %v2175_v55 = vadd.f32 %v2127_v3, %v6770_v41  ;;  %v2177_v20 = vadd.f32 %v2168_v23, %v6771_v10  ;;  %v2129_v48 = vpop.f32.mrb[41].mxu1  ;;  %v2170_v45 = vpop.f32.mrb[57].mxu0 }
 0x57d   :  { %v2176_v42 = vadd.f32 %v2129_v48, %v6772_v26  ;;  %v2178_v54 = vadd.f32 %v2170_v45, %v6773_v59  ;;  %v2131_v29 = vpop.f32.mrb[42].mxu1  ;;  %v2172_v2 = vpop.f32.mrb[58].mxu0  ;;  %3951 = vtanh.f32 %v5493_v8 }
 0x57e   :  { %v3531_v53 = vmul.f32 -1.442695, %v2175_v55  ;;  %v2132_v62 = vpop.f32.mrb[43].mxu1  ;;  %v2173_v6 = vpop.f32.mrb[59].mxu0 }
 0x57f   :  { %v3532_v60 = vmul.f32 -1.442695, %v2176_v42  ;;  %v3950_v7 = vpop.eup %3949  ;;  %v3533_v58 = vmul.f32 -1.442695, %v2178_v54 }
 0x580   :  { %3953 = vpow2.f32 %v3531_v53 }
 0x581   :  { %3955 = vpow2.f32 %v3532_v60 }
 0x582   :  { %3957 = vpow2.f32 %v3533_v58  ;;  %v6793_v58 = vld [vmem:[#allocation77_spill] sm:$0xff] }
 0x583   :  { %3959 = vtanh.f32 %v2177_v20 }
 0x587   :  { %v3952_v61 = vpop.eup %3951 }
 0x588   :  { %v2085_v3 = vmul.f32 %v3952_v61, %v3950_v7  ;;  %v6791_v7 = vld [vmem:[#allocation75_spill] sm:$0xff]  ;;  %v6792_v61 = vld [vmem:[#allocation76_spill] sm:$0xff] }
 0x58a   :  { %v3954_v23 = vpop.eup %3953  ;;  %v2204_v41 = vpack.c.bf16 %v2085_v3, %v2085_v3  ;;  %v6794_v3 = vld [vmem:[#allocation36_spill] sm:$0xff] }
 0x58b   :  { %v3956_v10 = vpop.eup %3955  ;;  %v2182_v48 = vadd.f32 1.0, %v3954_v23  ;;  %v6795_v23 = vld [vmem:[#allocation37_spill] sm:$0xff] }
 0x58c   :  { %v2188_v29 = vadd.f32 1.0, %v3956_v10  ;;  %2237 = vmatprep.mubr.bf16.mxu1 %v2204_v41  ;;  %2278 = vmatprep.mubr.bf16.mxu0 %v2204_v41  ;;  %v3958_v59 = vpop.eup %3957  ;;  %v6796_v41 = vld [vmem:[#allocation38_spill] sm:$0xff]  ;;  %v6797_v10 = vld [vmem:[#allocation39_spill] sm:$0xff] }
 0x58d   :  { %3961 = vrcp.f32 %v2182_v48  ;;  %v3960_v55 = vpop.eup %3959  ;;  %v2195_v2 = vadd.f32 1.0, %v3958_v59  ;;  %v6798_v48 = vld [vmem:[#allocation40_spill] sm:$0xff]  ;;  %v6800_v59 = vld [vmem:[#allocation42_spill] sm:$0xff] }
 0x58e   :  { %3963 = vrcp.f32 %v2188_v29  ;;  %v6799_v29 = vld [vmem:[#allocation41_spill] sm:$0xff] }
 0x58f   :  { %3965 = vrcp.f32 %v2195_v2  ;;  %v6805_v2 = vld [vmem:[#allocation47_spill] sm:$0xff] }
 0x597   :  { %v3962_v45 = vpop.eup %3961 }
 0x598   :  { %v3964_v26 = vpop.eup %3963  ;;  %v2199_v42 = vmul.f32 %v3962_v45, %v3960_v55  ;;  %v6801_v55 = vld [vmem:[#allocation43_spill] sm:$0xff]  ;;  %v6802_v45 = vld [vmem:[#allocation44_spill] sm:$0xff] }
 0x599   :  { %v2198_v54 = vmul.f32 %v3964_v26, %v5231_v9  ;;  %v3966_v62 = vpop.eup %3965  ;;  %v6790_v9 = vld [vmem:[#allocation74_spill] sm:$0xff]  ;;  %v6803_v26 = vld [vmem:[#allocation45_spill] sm:$0xff] }
 0x59b   :  { %v5501_v53 = vadd.f32 %v2199_v42, %v2198_v54  ;;  %v6804_v42 = vld [vmem:[#allocation46_spill] sm:$0xff]  ;;  %v6806_v54 = vld [vmem:[#allocation48_spill] sm:$0xff] }
 0x59d   :  { %3967 = vtanh.f32 %v5501_v53 }
 0x5a7   :  { %v3968_v20 = vpop.eup %3967 }
 0x5a8   :  { %v2202_v6 = vmul.f32 %v3968_v20, %v3966_v62  ;;  %v6807_v62 = vld [vmem:[#allocation49_spill] sm:$0xff]  ;;  %v6808_v20 = vld [vmem:[#allocation50_spill] sm:$0xff] }
 0x5aa   :  { %v2203_v60 = vpack.c.bf16 %v2202_v6, %v2202_v6  ;;  %v6809_v6 = vld [vmem:[#allocation51_spill] sm:$0xff] }
 0x5ac   :  { %2238 = vmatmul.mubr.bf16.vlgmr.msra.gmra.mrb[44].mxu1 %v2203_v60  ;;  %2279 = vmatmul.mubr.bf16.vlgmr.msra.gmra.mrb[60].mxu0 %v2203_v60 }
 0x5ad   :  { %2319 = vmatpush1.bf16.msra.mxu1 %v5084_v39  ;;  %2360 = vmatpush1.bf16.msra.mxu0 %v5087_v32  ;;  %v6774_v39 = vld [vmem:[#allocation25_spill] sm:$0xff]  ;;  %v6775_v32 = vld [vmem:[#allocation26_spill] sm:$0xff] }
 0x5ae   :  { %2320 = vmatprep.subr.bf16.mxu1 %v5090_v50  ;;  %2361 = vmatprep.subr.bf16.mxu0 %v5093_v13  ;;  %v6776_v50 = vld [vmem:[#allocation27_spill] sm:$0xff]  ;;  %v6777_v13 = vld [vmem:[#allocation28_spill] sm:$0xff] }
 0x5af   :  { %2350 = vmatprep.mubr.bf16.mxu1 %v6594_v19  ;;  %2391 = vmatprep.mubr.bf16.mxu0 %v6594_v19 }
 0x5b1   :  { %2321 = vmatpush1.bf16.msra.mxu1 %v5098_v36  ;;  %2362 = vmatpush1.bf16.msra.mxu0 %v5101_v25  ;;  %v6778_v36 = vld [vmem:[#allocation29_spill] sm:$0xff]  ;;  %v6779_v25 = vld [vmem:[#allocation30_spill] sm:$0xff] }
 0x5b2   :  { %2322 = vmatprep.subr.bf16.mxu1 %v5104_v47  ;;  %2363 = vmatprep.subr.bf16.mxu0 %v5107_v35  ;;  %v6780_v47 = vld [vmem:[#allocation31_spill] sm:$0xff]  ;;  %v6781_v35 = vld [vmem:[#allocation32_spill] sm:$0xff] }
 0x5b5   :  { %2323 = vmatpush1.bf16.msra.mxu1 %v5110_v49  ;;  %2364 = vmatpush1.bf16.msra.mxu0 %v5113_v38  ;;  %v6782_v49 = vld [vmem:[#allocation33_spill] sm:$0xff]  ;;  %v6783_v38 = vld [vmem:[#allocation34_spill] sm:$0xff] }
 0x5b6   :  { %2324 = vmatprep.subr.bf16.mxu1 %v5116_v18  ;;  %2365 = vmatprep.subr.bf16.mxu0 %v5119_v28  ;;  %v6784_v18 = vld [vmem:[#allocation35_spill] sm:$0xff]  ;;  %v6785_v28 = vld [vmem:[#allocation13_spill] sm:$0xff] }
 0x5b9   :  { %2325 = vmatpush1.bf16.msra.mxu1 %v5122_v21  ;;  %2366 = vmatpush1.bf16.msra.mxu0 %v5125_v14  ;;  %v6786_v21 = vld [vmem:[#allocation14_spill] sm:$0xff]  ;;  %v6787_v14 = vld [vmem:[#allocation16_spill] sm:$0xff] }
 0x5ba   :  { %2326 = vmatprep.subr.bf16.mxu1 %v5128_v44  ;;  %2367 = vmatprep.subr.bf16.mxu0 %v5131_v37  ;;  %v6788_v44 = vld [vmem:[#allocation17_spill] sm:$0xff]  ;;  %v6789_v37 = vld [vmem:[#allocation15_spill] sm:$0xff] }
 0x5bd   :  { %2327 = vmatpush1.bf16.msra.mxu1 %v5252_v22  ;;  %2368 = vmatpush1.bf16.msra.mxu0 %v5255_v46 }
 0x5be   :  { %2328 = vmatprep.subr.bf16.mxu1 %v5258_v52  ;;  %2369 = vmatprep.subr.bf16.mxu0 %v5261_v56 }
 0x5c1   :  { %2329 = vmatpush1.bf16.msra.mxu1 %v5264_v57  ;;  %2370 = vmatpush1.bf16.msra.mxu0 %v5267_v63 }
 0x5c2   :  { %2330 = vmatprep.subr.bf16.mxu1 %v5270_v1  ;;  %2371 = vmatprep.subr.bf16.mxu0 %v5273_v4 }
 0x5c5   :  { %2331 = vmatpush1.bf16.msra.mxu1 %v5276_v5  ;;  %2372 = vmatpush1.bf16.msra.mxu0 %v5279_v11 }
 0x5c6   :  { %2332 = vmatprep.subr.bf16.mxu1 %v5282_v12  ;;  %2373 = vmatprep.subr.bf16.mxu0 %v5285_v15 }
 0x5c9   :  { %2333 = vmatpush1.bf16.msra.mxu1 %v5288_v16  ;;  %2374 = vmatpush1.bf16.msra.mxu0 %v5291_v17 }
 0x5ca   :  { %2430 = vmatprep.subr.bf16.mxu1 %v5294_v51  ;;  %2471 = vmatprep.subr.bf16.mxu0 %v5297_v31 }
 0x5cc   :  { %2351 = vmatmul.mubr.bf16.vlgmr.msra.gmra.mrb[48].mxu1 %v2203_v60  ;;  %2392 = vmatmul.mubr.bf16.vlgmr.msra.gmra.mrb[64].mxu0 %v2203_v60  ;;  %v6810_v60 = vld [vmem:[#allocation52_spill] sm:$0xff] }
 0x5cd   :  { %2431 = vmatpush1.bf16.msra.mxu1 %v5300_v0  ;;  %2472 = vmatpush1.bf16.msra.mxu0 %v5303_v27 }
 0x5ce   :  { %2432 = vmatprep.subr.bf16.mxu1 %v5306_v30  ;;  %2473 = vmatprep.subr.bf16.mxu0 %v5309_v33 }
 0x5d1   :  { %2433 = vmatpush1.bf16.msra.mxu1 %v5312_v34  ;;  %2474 = vmatpush1.bf16.msra.mxu0 %v5315_v40 }
 0x5d2   :  { %2434 = vmatprep.subr.bf16.mxu1 %v5318_v43  ;;  %2475 = vmatprep.subr.bf16.mxu0 %v5321_v24 }
 0x5d5   :  { %2435 = vmatpush1.bf16.msra.mxu1 %v6774_v39  ;;  %2476 = vmatpush1.bf16.msra.mxu0 %v6775_v32 }
 0x5d6   :  { %2436 = vmatprep.subr.bf16.mxu1 %v6776_v50  ;;  %2477 = vmatprep.subr.bf16.mxu0 %v6777_v13 }
 0x5d9   :  { %2437 = vmatpush1.bf16.msra.mxu1 %v6778_v36  ;;  %2478 = vmatpush1.bf16.msra.mxu0 %v6779_v25 }
 0x5da   :  { %2438 = vmatprep.subr.bf16.mxu1 %v6780_v47  ;;  %2479 = vmatprep.subr.bf16.mxu0 %v6781_v35 }
 0x5dd   :  { %2439 = vmatpush1.bf16.msra.mxu1 %v6782_v49  ;;  %2480 = vmatpush1.bf16.msra.mxu0 %v6783_v38 }
 0x5de   :  { %2440 = vmatprep.subr.bf16.mxu1 %v6784_v18  ;;  %2481 = vmatprep.subr.bf16.mxu0 %v6785_v28 }
 0x5e1   :  { %2441 = vmatpush1.bf16.msra.mxu1 %v6786_v21  ;;  %2482 = vmatpush1.bf16.msra.mxu0 %v6787_v14 }
 0x5e2   :  { %2442 = vmatprep.subr.bf16.mxu1 %v6788_v44  ;;  %2483 = vmatprep.subr.bf16.mxu0 %v6789_v37 }
 0x5e5   :  { %2443 = vmatpush1.bf16.msra.mxu1 %v6790_v9  ;;  %2484 = vmatpush1.bf16.msra.mxu0 %v6791_v7 }
 0x5e6   :  { %2444 = vmatprep.subr.bf16.mxu1 %v6792_v61  ;;  %2485 = vmatprep.subr.bf16.mxu0 %v6793_v58 }
 0x5e9   :  { %2445 = vmatpush1.bf16.msra.mxu1 %v6794_v3  ;;  %2486 = vmatpush1.bf16.msra.mxu0 %v6795_v23 }
 0x5ea   :  { %2446 = vmatprep.subr.bf16.mxu1 %v6796_v41  ;;  %2487 = vmatprep.subr.bf16.mxu0 %v6797_v10  ;;  %v6831_v10 = vld [vmem:[#allocation19_spill] sm:$0xff] }
 0x5ed   :  { %2447 = vmatpush1.bf16.msra.mxu1 %v6798_v48  ;;  %2488 = vmatpush1.bf16.msra.mxu0 %v6799_v29  ;;  %v6830_v29 = vld [vmem:[#allocation18_spill] sm:$0xff] }
 0x5ee   :  { %2448 = vmatprep.subr.bf16.mxu1 %v6800_v59  ;;  %2489 = vmatprep.subr.bf16.mxu0 %v6801_v55  ;;  %v6811_v59 = vld [vmem:[#allocation53_spill] sm:$0xff]  ;;  %v6812_v55 = vld [vmem:[#allocation54_spill] sm:$0xff] }
 0x5f1   :  { %2449 = vmatpush1.bf16.msra.mxu1 %v6802_v45  ;;  %2490 = vmatpush1.bf16.msra.mxu0 %v6803_v26  ;;  %v6813_v45 = vld [vmem:[#allocation55_spill] sm:$0xff]  ;;  %v6814_v26 = vld [vmem:[#allocation56_spill] sm:$0xff] }
 0x5f2   :  { %2450 = vmatprep.subr.bf16.mxu1 %v6804_v42  ;;  %2491 = vmatprep.subr.bf16.mxu0 %v6805_v2  ;;  %v6815_v42 = vld [vmem:[#allocation57_spill] sm:$0xff]  ;;  %v6816_v2 = vld [vmem:[#allocation58_spill] sm:$0xff] }
 0x5f5   :  { %2451 = vmatpush1.bf16.msra.mxu1 %v6806_v54  ;;  %2492 = vmatpush1.bf16.msra.mxu0 %v6807_v62  ;;  %v6817_v54 = vld [vmem:[#allocation59_spill] sm:$0xff]  ;;  %v6818_v62 = vld [vmem:[#allocation60_spill] sm:$0xff] }
 0x5f6   :  { %2452 = vmatprep.subr.bf16.mxu1 %v6808_v20  ;;  %2493 = vmatprep.subr.bf16.mxu0 %v6809_v6  ;;  %v6819_v20 = vld [vmem:[#allocation61_spill] sm:$0xff]  ;;  %v6820_v6 = vld [vmem:[#allocation62_spill] sm:$0xff] }
 0x5f9   :  { %2453 = vmatpush1.bf16.msra.mxu1 %v6810_v60  ;;  %2494 = vmatpush1.bf16.msra.mxu0 %v6811_v59  ;;  %v6821_v60 = vld [vmem:[#allocation63_spill] sm:$0xff]  ;;  %v6822_v59 = vld [vmem:[#allocation64_spill] sm:$0xff] }
 0x5fa   :  { %2454 = vmatprep.subr.bf16.mxu1 %v6812_v55  ;;  %2495 = vmatprep.subr.bf16.mxu0 %v6813_v45  ;;  %v6823_v55 = vld [vmem:[#allocation65_spill] sm:$0xff]  ;;  %v6824_v45 = vld [vmem:[#allocation66_spill] sm:$0xff] }
 0x5fd   :  { %2455 = vmatpush1.bf16.msra.mxu1 %v6814_v26  ;;  %2496 = vmatpush1.bf16.msra.mxu0 %v6815_v42  ;;  %v6825_v26 = vld [vmem:[#allocation67_spill] sm:$0xff]  ;;  %v6826_v42 = vld [vmem:[#allocation68_spill] sm:$0xff] }
 0x5fe   :  { %2456 = vmatprep.subr.bf16.mxu1 %v6816_v2  ;;  %2497 = vmatprep.subr.bf16.mxu0 %v6817_v54  ;;  %v6827_v2 = vld [vmem:[#allocation69_spill] sm:$0xff]  ;;  %v6828_v54 = vld [vmem:[#allocation23_spill] sm:$0xff] }
 0x601   :  { %2457 = vmatpush1.bf16.msra.mxu1 %v6818_v62  ;;  %2498 = vmatpush1.bf16.msra.mxu0 %v6819_v20  ;;  %v6829_v62 = vld [vmem:[#allocation24_spill] sm:$0xff] }
 0x602   :  { %2458 = vmatprep.subr.bf16.mxu1 %v6820_v6  ;;  %2499 = vmatprep.subr.bf16.mxu0 %v6821_v60 }
 0x605   :  { %2459 = vmatpush1.bf16.msra.mxu1 %v6822_v59  ;;  %2500 = vmatpush1.bf16.msra.mxu0 %v6823_v55 }
 0x606   :  { %2460 = vmatprep.subr.bf16.mxu1 %v6824_v45  ;;  %2501 = vmatprep.subr.bf16.mxu0 %v6825_v26 }
 0x609   :  { %2461 = vmatpush1.bf16.msra.mxu1 %v6826_v42  ;;  %2502 = vmatpush1.bf16.msra.mxu0 %v6827_v2  ;;  %v6832_v2 = vld [vmem:[#allocation20_spill] sm:$0xff] }
 0x60a   :  { %2543 = vmatprep.subr.bf16.mxu1 %v6828_v54  ;;  %2584 = vmatprep.subr.bf16.mxu0 %v6829_v62  ;;  %v6833_v62 = vld [vmem:[#allocation21_spill] sm:$0xff] }
 0x67f   :  { %v2239_v20 = vpop.f32.mrb[44].mxu1  ;;  %v2280_v6 = vpop.f32.mrb[60].mxu0 }
 0x680   :  { %v2240_v60 = vadd.f32 %v2239_v20, %v6830_v29  ;;  %v2241_v48 = vpop.f32.mrb[45].mxu1  ;;  %v2282_v59 = vpop.f32.mrb[61].mxu0  ;;  %v2281_v61 = vadd.f32 %v2280_v6, %v6833_v62  ;;  %v6834_v6 = vld [vmem:[#allocation86_spill] sm:$0xff]  ;;  %v6837_v62 = vld [vmem:[#allocation89_spill] sm:$0xff] }
 0x681   :  { %v2242_v55 = vadd.f32 %v2241_v48, %v6831_v10  ;;  %v2243_v41 = vpop.f32.mrb[46].mxu1  ;;  %v2284_v45 = vpop.f32.mrb[62].mxu0  ;;  %v2283_v54 = vadd.f32 %v2282_v59, %v6832_v2 }
 0x682   :  { %v3534_v23 = vmul.f32 -1.442695, %v2240_v60  ;;  %v2244_v26 = vpop.f32.mrb[47].mxu1  ;;  %v2285_v3 = vpop.f32.mrb[63].mxu0 }
 0x683   :  { %v3535_v42 = vmul.f32 -1.442695, %v2242_v55  ;;  %v3536_v58 = vmul.f32 -1.442695, %v2283_v54 }
 0x684   :  { %3969 = vpow2.f32 %v3534_v23 }
 0x685   :  { %3971 = vpow2.f32 %v3535_v42 }
 0x686   :  { %3973 = vpow2.f32 %v3536_v58  ;;  %v6835_v58 = vld [vmem:[#allocation87_spill] sm:$0xff] }
 0x687   :  { %3975 = vtanh.f32 %v2281_v61 }
 0x68e   :  { %v3970_v7 = vpop.eup %3969 }
 0x68f   :  { %v3972_v9 = vpop.eup %3971  ;;  %v2290_v20 = vadd.f32 1.0, %v3970_v7 }
 0x690   :  { %v2296_v29 = vadd.f32 1.0, %v3972_v9  ;;  %v3974_v41 = vpop.eup %3973 }
 0x691   :  { %3977 = vrcp.f32 %v2290_v20  ;;  %v3976_v48 = vpop.eup %3975  ;;  %v2303_v23 = vadd.f32 1.0, %v3974_v41 }
 0x692   :  { %3979 = vrcp.f32 %v2296_v29  ;;  %v6836_v29 = vld [vmem:[#allocation88_spill] sm:$0xff] }
 0x693   :  { %3981 = vrcp.f32 %v2303_v23 }
 0x69b   :  { %v3978_v45 = vpop.eup %3977 }
 0x69c   :  { %v3980_v3 = vpop.eup %3979  ;;  %v2307_v55 = vmul.f32 %v3978_v45, %v3976_v48 }
 0x69d   :  { %v2306_v26 = vmul.f32 %v3980_v3, %v5493_v8 }
 0x69f   :  { %v2352_v59 = vpop.f32.mrb[48].mxu1  ;;  %v2393_v42 = vpop.f32.mrb[64].mxu0  ;;  %v5607_v60 = vadd.f32 %v2307_v55, %v2306_v26 }
 0x6a0   :  { %v2400_v7 = vadd.f32 %v2352_v59, %v6834_v6  ;;  %v2402_v61 = vadd.f32 %v2393_v42, %v6835_v58  ;;  %v2354_v9 = vpop.f32.mrb[49].mxu1  ;;  %v2395_v54 = vpop.f32.mrb[65].mxu0 }
 0x6a1   :  { %v2401_v20 = vadd.f32 %v2354_v9, %v6836_v29  ;;  %v2403_v2 = vadd.f32 %v2395_v54, %v6837_v62  ;;  %v2356_v10 = vpop.f32.mrb[50].mxu1  ;;  %v2397_v48 = vpop.f32.mrb[66].mxu0  ;;  %3983 = vtanh.f32 %v5607_v60 }
 0x6a2   :  { %v3537_v8 = vmul.f32 -1.442695, %v2400_v7  ;;  %v2357_v41 = vpop.f32.mrb[51].mxu1  ;;  %v2398_v45 = vpop.f32.mrb[67].mxu0 }
 0x6a3   :  { %v3538_v3 = vmul.f32 -1.442695, %v2401_v20  ;;  %v3982_v55 = vpop.eup %3981  ;;  %v3539_v26 = vmul.f32 -1.442695, %v2403_v2 }
 0x6a4   :  { %3985 = vpow2.f32 %v3537_v8 }
 0x6a5   :  { %3987 = vpow2.f32 %v3538_v3 }
 0x6a6   :  { %3989 = vpow2.f32 %v3539_v26  ;;  %v5627_v26 = vld [vmem:[#allocation6 + $0x2c] ss:$16 sps:$4 sm:$0xff]  }
 0x6a7   :  { %3991 = vtanh.f32 %v2402_v61 }
 0x6ab   :  { %v3984_v23 = vpop.eup %3983 }
 0x6ac   :  { %v2310_v59 = vmul.f32 %v3984_v23, %v3982_v55  ;;  %v5618_v55 = vld [vmem:[#allocation6] ss:$16 sps:$4 sm:$0xff]   ;;  %v5621_v23 = vld [vmem:[#allocation6 + $0x8] ss:$16 sps:$4 sm:$0xff]  }
 0x6ae   :  { %v3986_v42 = vpop.eup %3985  ;;  %v2429_v6 = vpack.c.bf16 %v2310_v59, %v2310_v59  ;;  %v5632_v59 = vld [vmem:[#allocation6 + $0x20] ss:$16 sps:$4 sm:$0xff]  }
 0x6af   :  { %v3988_v58 = vpop.eup %3987  ;;  %v2407_v9 = vadd.f32 1.0, %v3986_v42  ;;  %v5635_v42 = vld [vmem:[#allocation6 + $0x28] ss:$16 sps:$4 sm:$0xff]  }
 0x6b0   :  { %v2413_v10 = vadd.f32 1.0, %v3988_v58  ;;  %2462 = vmatprep.mubr.bf16.mxu1 %v2429_v6  ;;  %2503 = vmatprep.mubr.bf16.mxu0 %v2429_v6  ;;  %v3990_v62 = vpop.eup %3989  ;;  %v5638_v6 = vld [vmem:[#allocation6 + $0x44] ss:$16 sps:$4 sm:$0xff]   ;;  %v5641_v58 = vld [vmem:[#allocation6 + $0x4c] ss:$16 sps:$4 sm:$0xff]  }
 0x6b1   :  { %3993 = vrcp.f32 %v2407_v9  ;;  %v3992_v7 = vpop.eup %3991  ;;  %v2420_v48 = vadd.f32 1.0, %v3990_v62  ;;  %v5644_v9 = vld [vmem:[#allocation6 + $0x40] ss:$16 sps:$4 sm:$0xff]   ;;  %v5650_v62 = vld [vmem:[#allocation6 + $0x64] ss:$16 sps:$4 sm:$0xff]  }
 0x6b2   :  { %3995 = vrcp.f32 %v2413_v10  ;;  %v5647_v10 = vld [vmem:[#allocation6 + $0x48] ss:$16 sps:$4 sm:$0xff]  }
 0x6b3   :  { %3997 = vrcp.f32 %v2420_v48  ;;  %v5665_v48 = vld [vmem:[#allocation6 + $0x8c] ss:$16 sps:$4 sm:$0xff]  }
 0x6bb   :  { %v3994_v54 = vpop.eup %3993 }
 0x6bc   :  { %v3996_v29 = vpop.eup %3995  ;;  %v2424_v20 = vmul.f32 %v3994_v54, %v3992_v7  ;;  %v5653_v7 = vld [vmem:[#allocation6 + $0x6c] ss:$16 sps:$4 sm:$0xff]   ;;  %v5656_v54 = vld [vmem:[#allocation6 + $0x60] ss:$16 sps:$4 sm:$0xff]  }
 0x6bd   :  { %v2423_v2 = vmul.f32 %v3996_v29, %v5501_v53  ;;  %v3998_v41 = vpop.eup %3997  ;;  %v5624_v53 = vld [vmem:[#allocation6 + $0x24] ss:$16 sps:$4 sm:$0xff]   ;;  %v5659_v29 = vld [vmem:[#allocation6 + $0x68] ss:$16 sps:$4 sm:$0xff]  }
 0x6bf   :  { %v5615_v8 = vadd.f32 %v2424_v20, %v2423_v2  ;;  %v5662_v20 = vld [vmem:[#allocation6 + $0x84] ss:$16 sps:$4 sm:$0xff]  }
 0x6c1   :  { %3999 = vtanh.f32 %v5615_v8 }
 0x6cb   :  { %v4000_v61 = vpop.eup %3999 }
 0x6cc   :  { %v2427_v45 = vmul.f32 %v4000_v61, %v3998_v41  ;;  %v6876_v61 = vld [vmem:[#allocation18_spill] sm:$0xff] }
 0x6ce   :  { %v2428_v3 = vpack.c.bf16 %v2427_v45, %v2427_v45 }
 0x6d0   :  { %2463 = vmatmul.mubr.bf16.vlgmr.msra.gmra.mrb[52].mxu1 %v2428_v3  ;;  %2504 = vmatmul.mubr.bf16.vlgmr.msra.gmra.mrb[68].mxu0 %v2428_v3 }
 0x6d1   :  { %2544 = vmatpush1.bf16.msra.mxu1 %v5618_v55  ;;  %2585 = vmatpush1.bf16.msra.mxu0 %v5621_v23 }
 0x6d2   :  { %2545 = vmatprep.subr.bf16.mxu1 %v5624_v53  ;;  %2586 = vmatprep.subr.bf16.mxu0 %v5627_v26 }
 0x6d3   :  { %2575 = vmatprep.mubr.bf16.mxu1 %v6594_v19  ;;  %2616 = vmatprep.mubr.bf16.mxu0 %v6594_v19 }
 0x6d5   :  { %2546 = vmatpush1.bf16.msra.mxu1 %v5632_v59  ;;  %2587 = vmatpush1.bf16.msra.mxu0 %v5635_v42 }
 0x6d6   :  { %2547 = vmatprep.subr.bf16.mxu1 %v5638_v6  ;;  %2588 = vmatprep.subr.bf16.mxu0 %v5641_v58 }
 0x6d9   :  { %2548 = vmatpush1.bf16.msra.mxu1 %v5644_v9  ;;  %2589 = vmatpush1.bf16.msra.mxu0 %v5647_v10 }
 0x6da   :  { %2549 = vmatprep.subr.bf16.mxu1 %v5650_v62  ;;  %2590 = vmatprep.subr.bf16.mxu0 %v5653_v7 }
 0x6dd   :  { %2550 = vmatpush1.bf16.msra.mxu1 %v5656_v54  ;;  %2591 = vmatpush1.bf16.msra.mxu0 %v5659_v29 }
 0x6de   :  { %2551 = vmatprep.subr.bf16.mxu1 %v5662_v20  ;;  %2592 = vmatprep.subr.bf16.mxu0 %v5665_v48 }
 0x6e1   :  { %2552 = vmatpush1.bf16.msra.mxu1 %v5252_v22  ;;  %2593 = vmatpush1.bf16.msra.mxu0 %v5255_v46  ;;  %v6838_v22 = vld [vmem:[#allocation74_spill] sm:$0xff]  ;;  %v6839_v46 = vld [vmem:[#allocation75_spill] sm:$0xff] }
 0x6e2   :  { %2553 = vmatprep.subr.bf16.mxu1 %v5258_v52  ;;  %2594 = vmatprep.subr.bf16.mxu0 %v5261_v56  ;;  %v6840_v52 = vld [vmem:[#allocation76_spill] sm:$0xff]  ;;  %v6841_v56 = vld [vmem:[#allocation77_spill] sm:$0xff] }
 0x6e5   :  { %2554 = vmatpush1.bf16.msra.mxu1 %v5264_v57  ;;  %2595 = vmatpush1.bf16.msra.mxu0 %v5267_v63  ;;  %v6842_v57 = vld [vmem:[#allocation36_spill] sm:$0xff]  ;;  %v6843_v63 = vld [vmem:[#allocation37_spill] sm:$0xff] }
 0x6e6   :  { %2555 = vmatprep.subr.bf16.mxu1 %v5270_v1  ;;  %2596 = vmatprep.subr.bf16.mxu0 %v5273_v4  ;;  %v6844_v1 = vld [vmem:[#allocation38_spill] sm:$0xff]  ;;  %v6845_v4 = vld [vmem:[#allocation39_spill] sm:$0xff] }
 0x6e9   :  { %2556 = vmatpush1.bf16.msra.mxu1 %v5276_v5  ;;  %2597 = vmatpush1.bf16.msra.mxu0 %v5279_v11  ;;  %v6846_v5 = vld [vmem:[#allocation40_spill] sm:$0xff]  ;;  %v6847_v11 = vld [vmem:[#allocation41_spill] sm:$0xff] }
 0x6ea   :  { %2557 = vmatprep.subr.bf16.mxu1 %v5282_v12  ;;  %2598 = vmatprep.subr.bf16.mxu0 %v5285_v15  ;;  %v6848_v12 = vld [vmem:[#allocation42_spill] sm:$0xff]  ;;  %v6849_v15 = vld [vmem:[#allocation43_spill] sm:$0xff] }
 0x6ed   :  { %2558 = vmatpush1.bf16.msra.mxu1 %v5288_v16  ;;  %2599 = vmatpush1.bf16.msra.mxu0 %v5291_v17  ;;  %v6850_v16 = vld [vmem:[#allocation44_spill] sm:$0xff]  ;;  %v6851_v17 = vld [vmem:[#allocation45_spill] sm:$0xff] }
 0x6ee   :  { %2655 = vmatprep.subr.bf16.mxu1 %v5294_v51  ;;  %2696 = vmatprep.subr.bf16.mxu0 %v5297_v31  ;;  %v6852_v51 = vld [vmem:[#allocation46_spill] sm:$0xff]  ;;  %v6853_v31 = vld [vmem:[#allocation47_spill] sm:$0xff] }
 0x6f0   :  { %2576 = vmatmul.mubr.bf16.vlgmr.msra.gmra.mrb[56].mxu1 %v2428_v3  ;;  %2617 = vmatmul.mubr.bf16.vlgmr.msra.gmra.mrb[72].mxu0 %v2428_v3 }
 0x6f1   :  { %2656 = vmatpush1.bf16.msra.mxu1 %v5300_v0  ;;  %2697 = vmatpush1.bf16.msra.mxu0 %v5303_v27  ;;  %v6854_v0 = vld [vmem:[#allocation48_spill] sm:$0xff]  ;;  %v6855_v27 = vld [vmem:[#allocation49_spill] sm:$0xff] }
 0x6f2   :  { %2657 = vmatprep.subr.bf16.mxu1 %v5306_v30  ;;  %2698 = vmatprep.subr.bf16.mxu0 %v5309_v33  ;;  %v6856_v30 = vld [vmem:[#allocation50_spill] sm:$0xff]  ;;  %v6857_v33 = vld [vmem:[#allocation51_spill] sm:$0xff] }
 0x6f5   :  { %2658 = vmatpush1.bf16.msra.mxu1 %v5312_v34  ;;  %2699 = vmatpush1.bf16.msra.mxu0 %v5315_v40  ;;  %v6858_v34 = vld [vmem:[#allocation52_spill] sm:$0xff]  ;;  %v6859_v40 = vld [vmem:[#allocation53_spill] sm:$0xff] }
 0x6f6   :  { %2659 = vmatprep.subr.bf16.mxu1 %v5318_v43  ;;  %2700 = vmatprep.subr.bf16.mxu0 %v5321_v24  ;;  %v6860_v43 = vld [vmem:[#allocation54_spill] sm:$0xff]  ;;  %v6861_v24 = vld [vmem:[#allocation55_spill] sm:$0xff] }
 0x6f9   :  { %2660 = vmatpush1.bf16.msra.mxu1 %v6774_v39  ;;  %2701 = vmatpush1.bf16.msra.mxu0 %v6775_v32  ;;  %v6862_v39 = vld [vmem:[#allocation56_spill] sm:$0xff]  ;;  %v6863_v32 = vld [vmem:[#allocation57_spill] sm:$0xff] }
 0x6fa   :  { %2661 = vmatprep.subr.bf16.mxu1 %v6776_v50  ;;  %2702 = vmatprep.subr.bf16.mxu0 %v6777_v13  ;;  %v6864_v50 = vld [vmem:[#allocation58_spill] sm:$0xff]  ;;  %v6865_v13 = vld [vmem:[#allocation59_spill] sm:$0xff] }
 0x6fd   :  { %2662 = vmatpush1.bf16.msra.mxu1 %v6778_v36  ;;  %2703 = vmatpush1.bf16.msra.mxu0 %v6779_v25  ;;  %v6866_v36 = vld [vmem:[#allocation60_spill] sm:$0xff]  ;;  %v6867_v25 = vld [vmem:[#allocation61_spill] sm:$0xff] }
 0x6fe   :  { %2663 = vmatprep.subr.bf16.mxu1 %v6780_v47  ;;  %2704 = vmatprep.subr.bf16.mxu0 %v6781_v35  ;;  %v6868_v47 = vld [vmem:[#allocation62_spill] sm:$0xff]  ;;  %v6869_v35 = vld [vmem:[#allocation63_spill] sm:$0xff] }
 0x701   :  { %2664 = vmatpush1.bf16.msra.mxu1 %v6782_v49  ;;  %2705 = vmatpush1.bf16.msra.mxu0 %v6783_v38  ;;  %v6870_v49 = vld [vmem:[#allocation64_spill] sm:$0xff]  ;;  %v6871_v38 = vld [vmem:[#allocation65_spill] sm:$0xff] }
 0x702   :  { %2665 = vmatprep.subr.bf16.mxu1 %v6784_v18  ;;  %2706 = vmatprep.subr.bf16.mxu0 %v6785_v28  ;;  %v6872_v18 = vld [vmem:[#allocation66_spill] sm:$0xff]  ;;  %v6873_v28 = vld [vmem:[#allocation67_spill] sm:$0xff] }
 0x705   :  { %2666 = vmatpush1.bf16.msra.mxu1 %v6786_v21  ;;  %2707 = vmatpush1.bf16.msra.mxu0 %v6787_v14  ;;  %v6874_v21 = vld [vmem:[#allocation68_spill] sm:$0xff]  ;;  %v6875_v14 = vld [vmem:[#allocation69_spill] sm:$0xff] }
 0x706   :  { %2667 = vmatprep.subr.bf16.mxu1 %v6788_v44  ;;  %2708 = vmatprep.subr.bf16.mxu0 %v6789_v37  ;;  %v5746_v44 = vld [vmem:[#allocation6 + $0x4] ss:$16 sps:$4 sm:$0xff]   ;;  %v5749_v37 = vld [vmem:[#allocation6 + $0xc] ss:$16 sps:$4 sm:$0xff]  }
 0x709   :  { %2668 = vmatpush1.bf16.msra.mxu1 %v6838_v22  ;;  %2709 = vmatpush1.bf16.msra.mxu0 %v6839_v46  ;;  %v6877_v46 = vld [vmem:[#allocation19_spill] sm:$0xff] }
 0x70a   :  { %2669 = vmatprep.subr.bf16.mxu1 %v6840_v52  ;;  %2710 = vmatprep.subr.bf16.mxu0 %v6841_v56 }
 0x70d   :  { %2670 = vmatpush1.bf16.msra.mxu1 %v6842_v57  ;;  %2711 = vmatpush1.bf16.msra.mxu0 %v6843_v63 }
 0x70e   :  { %2671 = vmatprep.subr.bf16.mxu1 %v6844_v1  ;;  %2712 = vmatprep.subr.bf16.mxu0 %v6845_v4 }
 0x711   :  { %2672 = vmatpush1.bf16.msra.mxu1 %v6846_v5  ;;  %2713 = vmatpush1.bf16.msra.mxu0 %v6847_v11  ;;  %v6878_v11 = vld [vmem:[#allocation20_spill] sm:$0xff] }
 0x712   :  { %2673 = vmatprep.subr.bf16.mxu1 %v6848_v12  ;;  %2714 = vmatprep.subr.bf16.mxu0 %v6849_v15 }
 0x715   :  { %2674 = vmatpush1.bf16.msra.mxu1 %v6850_v16  ;;  %2715 = vmatpush1.bf16.msra.mxu0 %v6851_v17  ;;  %v6879_v16 = vld [vmem:[#allocation21_spill] sm:$0xff] }
 0x716   :  { %2675 = vmatprep.subr.bf16.mxu1 %v6852_v51  ;;  %2716 = vmatprep.subr.bf16.mxu0 %v6853_v31 }
 0x719   :  { %2676 = vmatpush1.bf16.msra.mxu1 %v6854_v0  ;;  %2717 = vmatpush1.bf16.msra.mxu0 %v6855_v27 }
 0x71a   :  { %2677 = vmatprep.subr.bf16.mxu1 %v6856_v30  ;;  %2718 = vmatprep.subr.bf16.mxu0 %v6857_v33 }
 0x71d   :  { %2678 = vmatpush1.bf16.msra.mxu1 %v6858_v34  ;;  %2719 = vmatpush1.bf16.msra.mxu0 %v6859_v40 }
 0x71e   :  { %2679 = vmatprep.subr.bf16.mxu1 %v6860_v43  ;;  %2720 = vmatprep.subr.bf16.mxu0 %v6861_v24 }
 0x721   :  { %2680 = vmatpush1.bf16.msra.mxu1 %v6862_v39  ;;  %2721 = vmatpush1.bf16.msra.mxu0 %v6863_v32 }
 0x722   :  { %2681 = vmatprep.subr.bf16.mxu1 %v6864_v50  ;;  %2722 = vmatprep.subr.bf16.mxu0 %v6865_v13 }
 0x725   :  { %2682 = vmatpush1.bf16.msra.mxu1 %v6866_v36  ;;  %2723 = vmatpush1.bf16.msra.mxu0 %v6867_v25  ;;  %v6880_v36 = vld [vmem:[#allocation90_spill] sm:$0xff] }
 0x726   :  { %2683 = vmatprep.subr.bf16.mxu1 %v6868_v47  ;;  %2724 = vmatprep.subr.bf16.mxu0 %v6869_v35  ;;  %v6881_v47 = vld [vmem:[#allocation91_spill] sm:$0xff] }
 0x729   :  { %2684 = vmatpush1.bf16.msra.mxu1 %v6870_v49  ;;  %2725 = vmatpush1.bf16.msra.mxu0 %v6871_v38 }
 0x72a   :  { %2685 = vmatprep.subr.bf16.mxu1 %v6872_v18  ;;  %2726 = vmatprep.subr.bf16.mxu0 %v6873_v28  ;;  %v6882_v18 = vld [vmem:[#allocation92_spill] sm:$0xff] }
 0x72d   :  { %2686 = vmatpush1.bf16.msra.mxu1 %v6874_v21  ;;  %2727 = vmatpush1.bf16.msra.mxu0 %v6875_v14  ;;  %v6883_v21 = vld [vmem:[#allocation93_spill] sm:$0xff] }
 0x72e   :  { %2768 = vmatprep.subr.bf16.mxu1 %v5746_v44  ;;  %2809 = vmatprep.subr.bf16.mxu0 %v5749_v37 }
 0x7a3   :  { %v2464_v2 = vpop.f32.mrb[52].mxu1  ;;  %v2505_v41 = vpop.f32.mrb[68].mxu0 }
 0x7a4   :  { %v2465_v45 = vadd.f32 %v2464_v2, %v6876_v61  ;;  %v2466_v3 = vpop.f32.mrb[53].mxu1  ;;  %v2507_v22 = vpop.f32.mrb[69].mxu0  ;;  %v2506_v17 = vadd.f32 %v2505_v41, %v6879_v16 }
 0x7a5   :  { %v2467_v52 = vadd.f32 %v2466_v3, %v6877_v46  ;;  %v2468_v56 = vpop.f32.mrb[54].mxu1  ;;  %v2509_v57 = vpop.f32.mrb[70].mxu0  ;;  %v2508_v12 = vadd.f32 %v2507_v22, %v6878_v11 }
 0x7a6   :  { %v3540_v63 = vmul.f32 -1.442695, %v2465_v45  ;;  %v2469_v1 = vpop.f32.mrb[55].mxu1  ;;  %v2510_v4 = vpop.f32.mrb[71].mxu0 }
 0x7a7   :  { %v3541_v5 = vmul.f32 -1.442695, %v2467_v52  ;;  %v3542_v15 = vmul.f32 -1.442695, %v2508_v12 }
 0x7a8   :  { %4001 = vpow2.f32 %v3540_v63 }
 0x7a9   :  { %4003 = vpow2.f32 %v3541_v5 }
 0x7aa   :  { %4005 = vpow2.f32 %v3542_v15 }
 0x7ab   :  { %4007 = vtanh.f32 %v2506_v17 }
 0x7b2   :  { %v4002_v51 = vpop.eup %4001 }
 0x7b3   :  { %v4004_v31 = vpop.eup %4003  ;;  %v2515_v0 = vadd.f32 1.0, %v4002_v51 }
 0x7b4   :  { %v2521_v27 = vadd.f32 1.0, %v4004_v31  ;;  %v4006_v30 = vpop.eup %4005 }
 0x7b5   :  { %4009 = vrcp.f32 %v2515_v0  ;;  %v4008_v33 = vpop.eup %4007  ;;  %v2528_v24 = vadd.f32 1.0, %v4006_v30 }
 0x7b6   :  { %4011 = vrcp.f32 %v2521_v27 }
 0x7b7   :  { %4013 = vrcp.f32 %v2528_v24 }
 0x7bf   :  { %v4010_v34 = vpop.eup %4009 }
 0x7c0   :  { %v4012_v40 = vpop.eup %4011  ;;  %v2532_v43 = vmul.f32 %v4010_v34, %v4008_v33 }
 0x7c1   :  { %v2531_v39 = vmul.f32 %v4012_v40, %v5607_v60  ;;  %v4014_v52 = vpop.eup %4013 }
 0x7c3   :  { %v2577_v32 = vpop.f32.mrb[56].mxu1  ;;  %v2618_v50 = vpop.f32.mrb[72].mxu0  ;;  %v5757_v13 = vadd.f32 %v2532_v43, %v2531_v39 }
 0x7c4   :  { %v2625_v25 = vadd.f32 %v2577_v32, %v6880_v36  ;;  %v2627_v35 = vadd.f32 %v2618_v50, %v6881_v47  ;;  %v2579_v49 = vpop.f32.mrb[57].mxu1  ;;  %v2620_v38 = vpop.f32.mrb[73].mxu0  ;;  %v5789_v32 = vld [vmem:[#allocation6 + $0x88] ss:$16 sps:$4 sm:$0xff]   ;;  %v5792_v50 = vld [vmem:[#allocation6 + $0xa4] ss:$16 sps:$4 sm:$0xff]  }
 0x7c5   :  { %v2626_v28 = vadd.f32 %v2579_v49, %v6882_v18  ;;  %v2628_v14 = vadd.f32 %v2620_v38, %v6883_v21  ;;  %v2581_v2 = vpop.f32.mrb[58].mxu1  ;;  %v2622_v41 = vpop.f32.mrb[74].mxu0  ;;  %4015 = vtanh.f32 %v5757_v13  ;;  %v5795_v36 = vld [vmem:[#allocation6 + $0xac] ss:$16 sps:$4 sm:$0xff]   ;;  %v5801_v47 = vld [vmem:[#allocation6 + $0xa8] ss:$16 sps:$4 sm:$0xff]  }
 0x7c6   :  { %v3543_v60 = vmul.f32 -1.442695, %v2625_v25  ;;  %v2582_v45 = vpop.f32.mrb[59].mxu1  ;;  %v2623_v3 = vpop.f32.mrb[75].mxu0  ;;  %v5798_v25 = vld [vmem:[#allocation6 + $0xa0] ss:$16 sps:$4 sm:$0xff]  }
 0x7c7   :  { %v3544_v22 = vmul.f32 -1.442695, %v2626_v28  ;;  %v3545_v57 = vmul.f32 -1.442695, %v2628_v14  ;;  %v5807_v49 = vld [vmem:[#allocation6 + $0xcc] ss:$16 sps:$4 sm:$0xff]  }
 0x7c8   :  { %4017 = vpow2.f32 %v3543_v60  ;;  %v5810_v38 = vld [vmem:[#allocation6 + $0xc0] ss:$16 sps:$4 sm:$0xff]   ;;  %v5813_v18 = vld [vmem:[#allocation6 + $0xc8] ss:$16 sps:$4 sm:$0xff]   ;;  %v5816_v28 = vld [vmem:[#allocation6 + $0xe4] ss:$16 sps:$4 sm:$0xff]  }
 0x7c9   :  { %4019 = vpow2.f32 %v3544_v22  ;;  %v5819_v21 = vld [vmem:[#allocation6 + $0xec] ss:$16 sps:$4 sm:$0xff]   ;;  %v5822_v14 = vld [vmem:[#allocation6 + $0xe0] ss:$16 sps:$4 sm:$0xff]   ;;  %v5825_v2 = vld [vmem:[#allocation6 + $0xe8] ss:$16 sps:$4 sm:$0xff]  }
 0x7ca   :  { %4021 = vpow2.f32 %v3545_v57  ;;  %v5828_v41 = vld [vmem:[#allocation8 + $0x4] ss:$16 sps:$4 sm:$0xff]   ;;  %v5831_v60 = vld [vmem:[#allocation8 + $0xc] ss:$16 sps:$4 sm:$0xff]   ;;  %v5834_v45 = vld [vmem:[#allocation8] ss:$16 sps:$4 sm:$0xff]  }
 0x7cb   :  { %4023 = vtanh.f32 %v2627_v35  ;;  %v5804_v35 = vld [vmem:[#allocation6 + $0xc4] ss:$16 sps:$4 sm:$0xff]   ;;  %v5837_v3 = vld [vmem:[#allocation8 + $0x8] ss:$16 sps:$4 sm:$0xff]  }
 0x7cc   :  { %v5840_v22 = vld [vmem:[#allocation8 + $0x24] ss:$16 sps:$4 sm:$0xff]   ;;  %v5849_v57 = vld [vmem:[#allocation8 + $0x28] ss:$16 sps:$4 sm:$0xff]  }
 0x7cf   :  { %v4016_v56 = vpop.eup %4015 }
 0x7d0   :  { %v2535_v63 = vmul.f32 %v4016_v56, %v4014_v52  ;;  %v5843_v52 = vld [vmem:[#allocation8 + $0x2c] ss:$16 sps:$4 sm:$0xff]   ;;  %v5846_v56 = vld [vmem:[#allocation8 + $0x20] ss:$16 sps:$4 sm:$0xff]  }
 0x7d2   :  { %v4018_v1 = vpop.eup %4017  ;;  %v2654_v4 = vpack.c.bf16 %v2535_v63, %v2535_v63  ;;  %v5852_v63 = vld [vmem:[#allocation8 + $0x44] ss:$16 sps:$4 sm:$0xff]  }
 0x7d3   :  { %v4020_v5 = vpop.eup %4019  ;;  %v2632_v12 = vadd.f32 1.0, %v4018_v1  ;;  %v5855_v1 = vld [vmem:[#allocation8 + $0x4c] ss:$16 sps:$4 sm:$0xff]  }
 0x7d4   :  { %v2638_v15 = vadd.f32 1.0, %v4020_v5  ;;  %2687 = vmatprep.mubr.bf16.mxu1 %v2654_v4  ;;  %2728 = vmatprep.mubr.bf16.mxu0 %v2654_v4  ;;  %v4022_v17 = vpop.eup %4021  ;;  %v5858_v4 = vld [vmem:[#allocation8 + $0x40] ss:$16 sps:$4 sm:$0xff]   ;;  %v5861_v5 = vld [vmem:[#allocation8 + $0x48] ss:$16 sps:$4 sm:$0xff]  }
 0x7d5   :  { %4025 = vrcp.f32 %v2632_v12  ;;  %v4024_v51 = vpop.eup %4023  ;;  %v2645_v30 = vadd.f32 1.0, %v4022_v17  ;;  %6884 = vst [vmem:[#allocation70_spill] sm:$0xff] %v5858_v4  ;;  %6885 = vst [vmem:[#allocation71_spill] sm:$0xff] %v5861_v5  ;;  %v5864_v12 = vld [vmem:[#allocation8 + $0x64] ss:$16 sps:$4 sm:$0xff]  }
 0x7d6   :  { %4027 = vrcp.f32 %v2638_v15  ;;  %6886 = vst [vmem:[#allocation72_spill] sm:$0xff] %v5864_v12  ;;  %v5867_v15 = vld [vmem:[#allocation8 + $0x6c] ss:$16 sps:$4 sm:$0xff]   ;;  %v5870_v17 = vld [vmem:[#allocation8 + $0x60] ss:$16 sps:$4 sm:$0xff]  }
 0x7d7   :  { %4029 = vrcp.f32 %v2645_v30  ;;  %6887 = vst [vmem:[#allocation73_spill] sm:$0xff] %v5867_v15  ;;  %6888 = vst [vmem:[#allocation22_spill] sm:$0xff] %v5870_v17  ;;  %v5885_v30 = vld [vmem:[#allocation8 + $0x88] ss:$16 sps:$4 sm:$0xff]  }
 0x7d8   :  { %6893 = vst [vmem:[#allocation82_spill] sm:$0xff] %v5885_v30 }
 0x7df   :  { %v4026_v31 = vpop.eup %4025 }
 0x7e0   :  { %v4028_v0 = vpop.eup %4027  ;;  %v2649_v27 = vmul.f32 %v4026_v31, %v4024_v51  ;;  %v5873_v51 = vld [vmem:[#allocation8 + $0x68] ss:$16 sps:$4 sm:$0xff]   ;;  %v5876_v31 = vld [vmem:[#allocation8 + $0x84] ss:$16 sps:$4 sm:$0xff]  }
 0x7e1   :  { %v2648_v33 = vmul.f32 %v4028_v0, %v5615_v8  ;;  %v4030_v40 = vpop.eup %4029  ;;  %v5786_v8 = vld [vmem:[#allocation6 + $0x80] ss:$16 sps:$4 sm:$0xff]   ;;  %6889 = vst [vmem:[#allocation78_spill] sm:$0xff] %v5873_v51  ;;  %6890 = vst [vmem:[#allocation79_spill] sm:$0xff] %v5876_v31  ;;  %v5879_v0 = vld [vmem:[#allocation8 + $0x8c] ss:$16 sps:$4 sm:$0xff]  }
 0x7e2   :  { %6891 = vst [vmem:[#allocation80_spill] sm:$0xff] %v5879_v0 }
 0x7e3   :  { %v5765_v34 = vadd.f32 %v2649_v27, %v2648_v33  ;;  %v5882_v27 = vld [vmem:[#allocation8 + $0x80] ss:$16 sps:$4 sm:$0xff]   ;;  %v5888_v33 = vld [vmem:[#allocation8 + $0xa4] ss:$16 sps:$4 sm:$0xff]  }
 0x7e4   :  { %6892 = vst [vmem:[#allocation81_spill] sm:$0xff] %v5882_v27  ;;  %6894 = vst [vmem:[#allocation83_spill] sm:$0xff] %v5888_v33 }
 0x7e5   :  { %4031 = vtanh.f32 %v5765_v34 }
 0x7ef   :  { %v4032_v43 = vpop.eup %4031 }
 0x7f0   :  { %v2652_v24 = vmul.f32 %v4032_v43, %v4030_v40  ;;  %v5891_v40 = vld [vmem:[#allocation8 + $0xac] ss:$16 sps:$4 sm:$0xff]   ;;  %v5894_v43 = vld [vmem:[#allocation8 + $0xa0] ss:$16 sps:$4 sm:$0xff]  }
 0x7f1   :  { %6895 = vst [vmem:[#allocation84_spill] sm:$0xff] %v5891_v40  ;;  %6896 = vst [vmem:[#allocation85_spill] sm:$0xff] %v5894_v43 }
 0x7f2   :  { %v2653_v39 = vpack.c.bf16 %v2652_v24, %v2652_v24  ;;  %v5897_v24 = vld [vmem:[#allocation8 + $0xa8] ss:$16 sps:$4 sm:$0xff]  }
 0x7f3   :  { %6897 = vst [vmem:[#allocation25_spill] sm:$0xff] %v5897_v24 }
 0x7f4   :  { %2688 = vmatmul.mubr.bf16.vlgmr.msra.gmra.mrb[60].mxu1 %v2653_v39  ;;  %2729 = vmatmul.mubr.bf16.vlgmr.msra.gmra.mrb[76].mxu0 %v2653_v39 }
 0x7f5   :  { %2769 = vmatpush1.bf16.msra.mxu1 %v5618_v55  ;;  %2810 = vmatpush1.bf16.msra.mxu0 %v5621_v23 }
 0x7f6   :  { %2770 = vmatprep.subr.bf16.mxu1 %v5624_v53  ;;  %2811 = vmatprep.subr.bf16.mxu0 %v5627_v26 }
 0x7f7   :  { %2800 = vmatprep.mubr.bf16.mxu1 %v6594_v19  ;;  %2841 = vmatprep.mubr.bf16.mxu0 %v6594_v19 }
 0x7f9   :  { %2771 = vmatpush1.bf16.msra.mxu1 %v5632_v59  ;;  %2812 = vmatpush1.bf16.msra.mxu0 %v5635_v42 }
 0x7fa   :  { %2772 = vmatprep.subr.bf16.mxu1 %v5638_v6  ;;  %2813 = vmatprep.subr.bf16.mxu0 %v5641_v58 }
 0x7fd   :  { %2773 = vmatpush1.bf16.msra.mxu1 %v5644_v9  ;;  %2814 = vmatpush1.bf16.msra.mxu0 %v5647_v10 }
 0x7fe   :  { %2774 = vmatprep.subr.bf16.mxu1 %v5650_v62  ;;  %2815 = vmatprep.subr.bf16.mxu0 %v5653_v7 }
 0x801   :  { %2775 = vmatpush1.bf16.msra.mxu1 %v5656_v54  ;;  %2816 = vmatpush1.bf16.msra.mxu0 %v5659_v29 }
 0x802   :  { %2776 = vmatprep.subr.bf16.mxu1 %v5662_v20  ;;  %2817 = vmatprep.subr.bf16.mxu0 %v5665_v48 }
 0x805   :  { %2777 = vmatpush1.bf16.msra.mxu1 %v5786_v8  ;;  %2818 = vmatpush1.bf16.msra.mxu0 %v5789_v32 }
 0x806   :  { %2778 = vmatprep.subr.bf16.mxu1 %v5792_v50  ;;  %2819 = vmatprep.subr.bf16.mxu0 %v5795_v36 }
 0x809   :  { %2779 = vmatpush1.bf16.msra.mxu1 %v5798_v25  ;;  %2820 = vmatpush1.bf16.msra.mxu0 %v5801_v47 }
 0x80a   :  { %2780 = vmatprep.subr.bf16.mxu1 %v5804_v35  ;;  %2821 = vmatprep.subr.bf16.mxu0 %v5807_v49 }
 0x80d   :  { %2781 = vmatpush1.bf16.msra.mxu1 %v5810_v38  ;;  %2822 = vmatpush1.bf16.msra.mxu0 %v5813_v18 }
 0x80e   :  { %2782 = vmatprep.subr.bf16.mxu1 %v5816_v28  ;;  %2823 = vmatprep.subr.bf16.mxu0 %v5819_v21 }
 0x811   :  { %2783 = vmatpush1.bf16.msra.mxu1 %v5822_v14  ;;  %2824 = vmatpush1.bf16.msra.mxu0 %v5825_v2 }
 0x812   :  { %2880 = vmatprep.subr.bf16.mxu1 %v5828_v41  ;;  %2921 = vmatprep.subr.bf16.mxu0 %v5831_v60 }
 0x814   :  { %2801 = vmatmul.mubr.bf16.vlgmr.msra.gmra.mrb[64].mxu1 %v2653_v39  ;;  %2842 = vmatmul.mubr.bf16.vlgmr.msra.gmra.mrb[80].mxu0 %v2653_v39  ;;  %v5900_v39 = vld [vmem:[#allocation8 + $0xc4] ss:$16 sps:$4 sm:$0xff]  }
 0x815   :  { %2881 = vmatpush1.bf16.msra.mxu1 %v5834_v45  ;;  %2922 = vmatpush1.bf16.msra.mxu0 %v5837_v3  ;;  %6898 = vst [vmem:[#allocation26_spill] sm:$0xff] %v5900_v39 }
 0x816   :  { %2882 = vmatprep.subr.bf16.mxu1 %v5840_v22  ;;  %2923 = vmatprep.subr.bf16.mxu0 %v5843_v52 }
 0x819   :  { %2883 = vmatpush1.bf16.msra.mxu1 %v5846_v56  ;;  %2924 = vmatpush1.bf16.msra.mxu0 %v5849_v57 }
 0x81a   :  { %2884 = vmatprep.subr.bf16.mxu1 %v5852_v63  ;;  %2925 = vmatprep.subr.bf16.mxu0 %v5855_v1 }
 0x81d   :  { %2885 = vmatpush1.bf16.msra.mxu1 %v5858_v4  ;;  %2926 = vmatpush1.bf16.msra.mxu0 %v5861_v5 }
 0x81e   :  { %2886 = vmatprep.subr.bf16.mxu1 %v5864_v12  ;;  %2927 = vmatprep.subr.bf16.mxu0 %v5867_v15 }
 0x821   :  { %2887 = vmatpush1.bf16.msra.mxu1 %v5870_v17  ;;  %2928 = vmatpush1.bf16.msra.mxu0 %v5873_v51 }
 0x822   :  { %2888 = vmatprep.subr.bf16.mxu1 %v5876_v31  ;;  %2929 = vmatprep.subr.bf16.mxu0 %v5879_v0 }
 0x825   :  { %2889 = vmatpush1.bf16.msra.mxu1 %v5882_v27  ;;  %2930 = vmatpush1.bf16.msra.mxu0 %v5885_v30  ;;  %v5903_v30 = vld [vmem:[#allocation8 + $0xcc] ss:$16 sps:$4 sm:$0xff]  }
 0x826   :  { %2890 = vmatprep.subr.bf16.mxu1 %v5888_v33  ;;  %2931 = vmatprep.subr.bf16.mxu0 %v5891_v40  ;;  %6899 = vst [vmem:[#allocation27_spill] sm:$0xff] %v5903_v30  ;;  %v5906_v33 = vld [vmem:[#allocation8 + $0xc0] ss:$16 sps:$4 sm:$0xff]   ;;  %v5909_v40 = vld [vmem:[#allocation8 + $0xc8] ss:$16 sps:$4 sm:$0xff]  }
 0x827   :  { %6900 = vst [vmem:[#allocation28_spill] sm:$0xff] %v5906_v33  ;;  %6901 = vst [vmem:[#allocation29_spill] sm:$0xff] %v5909_v40 }
 0x829   :  { %2891 = vmatpush1.bf16.msra.mxu1 %v5894_v43  ;;  %2932 = vmatpush1.bf16.msra.mxu0 %v5897_v24  ;;  %v5912_v43 = vld [vmem:[#allocation8 + $0xe4] ss:$16 sps:$4 sm:$0xff]   ;;  %v5915_v24 = vld [vmem:[#allocation8 + $0xec] ss:$16 sps:$4 sm:$0xff]  }
 0x82a   :  { %2892 = vmatprep.subr.bf16.mxu1 %v5900_v39  ;;  %2933 = vmatprep.subr.bf16.mxu0 %v5903_v30  ;;  %6902 = vst [vmem:[#allocation30_spill] sm:$0xff] %v5912_v43  ;;  %6903 = vst [vmem:[#allocation31_spill] sm:$0xff] %v5915_v24  ;;  %v5918_v39 = vld [vmem:[#allocation8 + $0xe0] ss:$16 sps:$4 sm:$0xff]   ;;  %v5921_v30 = vld [vmem:[#allocation8 + $0xe8] ss:$16 sps:$4 sm:$0xff]  }
 0x82b   :  { %6904 = vst [vmem:[#allocation32_spill] sm:$0xff] %v5918_v39  ;;  %6905 = vst [vmem:[#allocation33_spill] sm:$0xff] %v5921_v30 }
 0x82d   :  { %2893 = vmatpush1.bf16.msra.mxu1 %v5906_v33  ;;  %2934 = vmatpush1.bf16.msra.mxu0 %v5909_v40  ;;  %v5924_v33 = vld [vmem:[#allocation8 + $0x104] ss:$16 sps:$4 sm:$0xff]   ;;  %v5927_v40 = vld [vmem:[#allocation8 + $0x10c] ss:$16 sps:$4 sm:$0xff]  }
 0x82e   :  { %2894 = vmatprep.subr.bf16.mxu1 %v5912_v43  ;;  %2935 = vmatprep.subr.bf16.mxu0 %v5915_v24  ;;  %6906 = vst [vmem:[#allocation34_spill] sm:$0xff] %v5924_v33  ;;  %6907 = vst [vmem:[#allocation35_spill] sm:$0xff] %v5927_v40  ;;  %v5930_v43 = vld [vmem:[#allocation8 + $0x100] ss:$16 sps:$4 sm:$0xff]   ;;  %v5933_v24 = vld [vmem:[#allocation8 + $0x108] ss:$16 sps:$4 sm:$0xff]  }
 0x82f   :  { %6908 = vst [vmem:[#allocation13_spill] sm:$0xff] %v5930_v43  ;;  %6909 = vst [vmem:[#allocation14_spill] sm:$0xff] %v5933_v24 }
 0x831   :  { %2895 = vmatpush1.bf16.msra.mxu1 %v5918_v39  ;;  %2936 = vmatpush1.bf16.msra.mxu0 %v5921_v30  ;;  %v5936_v39 = vld [vmem:[#allocation8 + $0x124] ss:$16 sps:$4 sm:$0xff]   ;;  %v5939_v30 = vld [vmem:[#allocation8 + $0x12c] ss:$16 sps:$4 sm:$0xff]  }
 0x832   :  { %2896 = vmatprep.subr.bf16.mxu1 %v5924_v33  ;;  %2937 = vmatprep.subr.bf16.mxu0 %v5927_v40  ;;  %6910 = vst [vmem:[#allocation16_spill] sm:$0xff] %v5936_v39  ;;  %6911 = vst [vmem:[#allocation17_spill] sm:$0xff] %v5939_v30  ;;  %v5942_v33 = vld [vmem:[#allocation8 + $0x120] ss:$16 sps:$4 sm:$0xff]   ;;  %v5945_v40 = vld [vmem:[#allocation8 + $0x128] ss:$16 sps:$4 sm:$0xff]  }
 0x833   :  { %6912 = vst [vmem:[#allocation15_spill] sm:$0xff] %v5942_v33  ;;  %6913 = vst [vmem:[#allocation23_spill] sm:$0xff] %v5945_v40 }
 0x835   :  { %2897 = vmatpush1.bf16.msra.mxu1 %v5930_v43  ;;  %2938 = vmatpush1.bf16.msra.mxu0 %v5933_v24  ;;  %v5948_v43 = vld [vmem:[#allocation8 + $0x144] ss:$16 sps:$4 sm:$0xff]   ;;  %v5951_v24 = vld [vmem:[#allocation8 + $0x14c] ss:$16 sps:$4 sm:$0xff]  }
 0x836   :  { %2898 = vmatprep.subr.bf16.mxu1 %v5936_v39  ;;  %2939 = vmatprep.subr.bf16.mxu0 %v5939_v30  ;;  %6914 = vst [vmem:[#allocation24_spill] sm:$0xff] %v5948_v43  ;;  %6915 = vst [vmem:[#allocation86_spill] sm:$0xff] %v5951_v24  ;;  %v5954_v39 = vld [vmem:[#allocation8 + $0x140] ss:$16 sps:$4 sm:$0xff]   ;;  %v5957_v30 = vld [vmem:[#allocation8 + $0x148] ss:$16 sps:$4 sm:$0xff]  }
 0x837   :  { %6916 = vst [vmem:[#allocation87_spill] sm:$0xff] %v5954_v39  ;;  %6917 = vst [vmem:[#allocation88_spill] sm:$0xff] %v5957_v30 }
 0x839   :  { %2899 = vmatpush1.bf16.msra.mxu1 %v5942_v33  ;;  %2940 = vmatpush1.bf16.msra.mxu0 %v5945_v40  ;;  %v5960_v33 = vld [vmem:[#allocation8 + $0x164] ss:$16 sps:$4 sm:$0xff]   ;;  %v5963_v40 = vld [vmem:[#allocation8 + $0x16c] ss:$16 sps:$4 sm:$0xff]  }
 0x83a   :  { %2900 = vmatprep.subr.bf16.mxu1 %v5948_v43  ;;  %2941 = vmatprep.subr.bf16.mxu0 %v5951_v24  ;;  %6918 = vst [vmem:[#allocation89_spill] sm:$0xff] %v5960_v33  ;;  %6919 = vst [vmem:[#allocation74_spill] sm:$0xff] %v5963_v40  ;;  %v5966_v43 = vld [vmem:[#allocation8 + $0x160] ss:$16 sps:$4 sm:$0xff]   ;;  %v5969_v24 = vld [vmem:[#allocation8 + $0x168] ss:$16 sps:$4 sm:$0xff]  }
 0x83b   :  { %6920 = vst [vmem:[#allocation75_spill] sm:$0xff] %v5966_v43  ;;  %6921 = vst [vmem:[#allocation76_spill] sm:$0xff] %v5969_v24 }
 0x83d   :  { %2901 = vmatpush1.bf16.msra.mxu1 %v5954_v39  ;;  %2942 = vmatpush1.bf16.msra.mxu0 %v5957_v30  ;;  %v5972_v39 = vld [vmem:[#allocation8 + $0x184] ss:$16 sps:$4 sm:$0xff]   ;;  %v5975_v30 = vld [vmem:[#allocation8 + $0x18c] ss:$16 sps:$4 sm:$0xff]  }
 0x83e   :  { %2902 = vmatprep.subr.bf16.mxu1 %v5960_v33  ;;  %2943 = vmatprep.subr.bf16.mxu0 %v5963_v40  ;;  %6922 = vst [vmem:[#allocation77_spill] sm:$0xff] %v5972_v39  ;;  %6923 = vst [vmem:[#allocation36_spill] sm:$0xff] %v5975_v30  ;;  %v5978_v33 = vld [vmem:[#allocation8 + $0x180] ss:$16 sps:$4 sm:$0xff]   ;;  %v5981_v40 = vld [vmem:[#allocation8 + $0x188] ss:$16 sps:$4 sm:$0xff]  }
 0x83f   :  { %6924 = vst [vmem:[#allocation37_spill] sm:$0xff] %v5978_v33  ;;  %6925 = vst [vmem:[#allocation38_spill] sm:$0xff] %v5981_v40 }
 0x841   :  { %2903 = vmatpush1.bf16.msra.mxu1 %v5966_v43  ;;  %2944 = vmatpush1.bf16.msra.mxu0 %v5969_v24  ;;  %v5984_v43 = vld [vmem:[#allocation8 + $0x1a4] ss:$16 sps:$4 sm:$0xff]   ;;  %v5987_v24 = vld [vmem:[#allocation8 + $0x1ac] ss:$16 sps:$4 sm:$0xff]  }
 0x842   :  { %2904 = vmatprep.subr.bf16.mxu1 %v5972_v39  ;;  %2945 = vmatprep.subr.bf16.mxu0 %v5975_v30  ;;  %6926 = vst [vmem:[#allocation39_spill] sm:$0xff] %v5984_v43  ;;  %6927 = vst [vmem:[#allocation40_spill] sm:$0xff] %v5987_v24  ;;  %v5990_v39 = vld [vmem:[#allocation8 + $0x1a0] ss:$16 sps:$4 sm:$0xff]   ;;  %v5993_v30 = vld [vmem:[#allocation8 + $0x1a8] ss:$16 sps:$4 sm:$0xff]  }
 0x843   :  { %6928 = vst [vmem:[#allocation41_spill] sm:$0xff] %v5990_v39  ;;  %6929 = vst [vmem:[#allocation42_spill] sm:$0xff] %v5993_v30 }
 0x845   :  { %2905 = vmatpush1.bf16.msra.mxu1 %v5978_v33  ;;  %2946 = vmatpush1.bf16.msra.mxu0 %v5981_v40  ;;  %v5996_v33 = vld [vmem:[#allocation8 + $0x1c4] ss:$16 sps:$4 sm:$0xff]   ;;  %v5999_v40 = vld [vmem:[#allocation8 + $0x1cc] ss:$16 sps:$4 sm:$0xff]  }
 0x846   :  { %2906 = vmatprep.subr.bf16.mxu1 %v5984_v43  ;;  %2947 = vmatprep.subr.bf16.mxu0 %v5987_v24  ;;  %6930 = vst [vmem:[#allocation43_spill] sm:$0xff] %v5996_v33  ;;  %6931 = vst [vmem:[#allocation44_spill] sm:$0xff] %v5999_v40  ;;  %v6002_v43 = vld [vmem:[#allocation8 + $0x1c0] ss:$16 sps:$4 sm:$0xff]   ;;  %v6005_v24 = vld [vmem:[#allocation8 + $0x1c8] ss:$16 sps:$4 sm:$0xff]  }
 0x847   :  { %6932 = vst [vmem:[#allocation45_spill] sm:$0xff] %v6002_v43  ;;  %6933 = vst [vmem:[#allocation46_spill] sm:$0xff] %v6005_v24 }
 0x849   :  { %2907 = vmatpush1.bf16.msra.mxu1 %v5990_v39  ;;  %2948 = vmatpush1.bf16.msra.mxu0 %v5993_v30  ;;  %v6008_v39 = vld [vmem:[#allocation8 + $0x1e4] ss:$16 sps:$4 sm:$0xff]   ;;  %v6011_v30 = vld [vmem:[#allocation8 + $0x1ec] ss:$16 sps:$4 sm:$0xff]  }
 0x84a   :  { %2908 = vmatprep.subr.bf16.mxu1 %v5996_v33  ;;  %2949 = vmatprep.subr.bf16.mxu0 %v5999_v40  ;;  %6934 = vst [vmem:[#allocation47_spill] sm:$0xff] %v6008_v39  ;;  %6935 = vst [vmem:[#allocation48_spill] sm:$0xff] %v6011_v30  ;;  %v6014_v33 = vld [vmem:[#allocation8 + $0x1e0] ss:$16 sps:$4 sm:$0xff]   ;;  %v6017_v40 = vld [vmem:[#allocation8 + $0x1e8] ss:$16 sps:$4 sm:$0xff]  }
 0x84b   :  { %6936 = vst [vmem:[#allocation49_spill] sm:$0xff] %v6014_v33  ;;  %6937 = vst [vmem:[#allocation50_spill] sm:$0xff] %v6017_v40 }
 0x84d   :  { %2909 = vmatpush1.bf16.msra.mxu1 %v6002_v43  ;;  %2950 = vmatpush1.bf16.msra.mxu0 %v6005_v24 }
 0x84e   :  { %2910 = vmatprep.subr.bf16.mxu1 %v6008_v39  ;;  %2951 = vmatprep.subr.bf16.mxu0 %v6011_v30 }
 0x851   :  { %2911 = vmatpush1.bf16.msra.mxu1 %v6014_v33  ;;  %2952 = vmatpush1.bf16.msra.mxu0 %v6017_v40 }
 0x852   :  { %2993 = vmatprep.subr.bf16.mxu1 %v5746_v44  ;;  %3034 = vmatprep.subr.bf16.mxu0 %v5749_v37 }
 0x8c7   :  { %v2689_v24 = vpop.f32.mrb[60].mxu1  ;;  %v2730_v43 = vpop.f32.mrb[76].mxu0 }
 0x8c8   :  { %v2690_v39 = vadd.f32 %v2689_v24, %v6876_v61  ;;  %v2691_v27 = vpop.f32.mrb[61].mxu1  ;;  %v2732_v0 = vpop.f32.mrb[77].mxu0  ;;  %v2731_v37 = vadd.f32 %v2730_v43, %v6879_v16  ;;  %v6938_v43 = vld [vmem:[#allocation94_spill] sm:$0xff]  ;;  %v6941_v16 = vld [vmem:[#allocation97_spill] sm:$0xff] }
 0x8c9   :  { %v2692_v30 = vadd.f32 %v2691_v27, %v6877_v46  ;;  %v2693_v31 = vpop.f32.mrb[62].mxu1  ;;  %v2734_v51 = vpop.f32.mrb[78].mxu0  ;;  %v2733_v44 = vadd.f32 %v2732_v0, %v6878_v11 }
 0x8ca   :  { %v3546_v17 = vmul.f32 -1.442695, %v2690_v39  ;;  %v2694_v33 = vpop.f32.mrb[63].mxu1  ;;  %v2735_v15 = vpop.f32.mrb[79].mxu0 }
 0x8cb   :  { %v3547_v12 = vmul.f32 -1.442695, %v2692_v30  ;;  %v3548_v40 = vmul.f32 -1.442695, %v2733_v44 }
 0x8cc   :  { %4033 = vpow2.f32 %v3546_v17 }
 0x8cd   :  { %4035 = vpow2.f32 %v3547_v12 }
 0x8ce   :  { %4037 = vpow2.f32 %v3548_v40  ;;  %v6939_v40 = vld [vmem:[#allocation95_spill] sm:$0xff] }
 0x8cf   :  { %4039 = vtanh.f32 %v2731_v37 }
 0x8d6   :  { %v4034_v5 = vpop.eup %4033 }
 0x8d7   :  { %v4036_v4 = vpop.eup %4035  ;;  %v2740_v24 = vadd.f32 1.0, %v4034_v5 }
 0x8d8   :  { %v2746_v61 = vadd.f32 1.0, %v4036_v4  ;;  %v4038_v51 = vpop.eup %4037 }
 0x8d9   :  { %4041 = vrcp.f32 %v2740_v24  ;;  %v4040_v31 = vpop.eup %4039  ;;  %v2753_v17 = vadd.f32 1.0, %v4038_v51 }
 0x8da   :  { %4043 = vrcp.f32 %v2746_v61  ;;  %v6940_v61 = vld [vmem:[#allocation96_spill] sm:$0xff] }
 0x8db   :  { %4045 = vrcp.f32 %v2753_v17 }
 0x8e3   :  { %v4042_v27 = vpop.eup %4041 }
 0x8e4   :  { %v4044_v15 = vpop.eup %4043  ;;  %v2757_v30 = vmul.f32 %v4042_v27, %v4040_v31 }
 0x8e5   :  { %v2756_v12 = vmul.f32 %v4044_v15, %v5757_v13 }
 0x8e7   :  { %v2802_v0 = vpop.f32.mrb[64].mxu1  ;;  %v2843_v33 = vpop.f32.mrb[80].mxu0  ;;  %v6027_v39 = vadd.f32 %v2757_v30, %v2756_v12 }
 0x8e8   :  { %v2850_v5 = vadd.f32 %v2802_v0, %v6938_v43  ;;  %v2852_v44 = vadd.f32 %v2843_v33, %v6939_v40  ;;  %v2804_v4 = vpop.f32.mrb[65].mxu1  ;;  %v2845_v37 = vpop.f32.mrb[81].mxu0 }
 0x8e9   :  { %v2851_v24 = vadd.f32 %v2804_v4, %v6940_v61  ;;  %v2853_v11 = vadd.f32 %v2845_v37, %v6941_v16  ;;  %v2806_v46 = vpop.f32.mrb[66].mxu1  ;;  %v2847_v31 = vpop.f32.mrb[82].mxu0  ;;  %4047 = vtanh.f32 %v6027_v39 }
 0x8ea   :  { %v3549_v13 = vmul.f32 -1.442695, %v2850_v5  ;;  %v2807_v51 = vpop.f32.mrb[67].mxu1  ;;  %v2848_v27 = vpop.f32.mrb[83].mxu0 }
 0x8eb   :  { %v3550_v15 = vmul.f32 -1.442695, %v2851_v24  ;;  %v4046_v30 = vpop.eup %4045  ;;  %v3551_v12 = vmul.f32 -1.442695, %v2853_v11 }
 0x8ec   :  { %4049 = vpow2.f32 %v3549_v13 }
 0x8ed   :  { %4051 = vpow2.f32 %v3550_v15 }
 0x8ee   :  { %4053 = vpow2.f32 %v3551_v12  ;;  %v6986_v12 = vld [vmem:[#allocation41_spill] sm:$0xff] }
 0x8ef   :  { %4055 = vtanh.f32 %v2852_v44 }
 0x8f3   :  { %v4048_v17 = vpop.eup %4047 }
 0x8f4   :  { %v2760_v0 = vmul.f32 %v4048_v17, %v4046_v30  ;;  %v6984_v30 = vld [vmem:[#allocation39_spill] sm:$0xff]  ;;  %v6985_v17 = vld [vmem:[#allocation40_spill] sm:$0xff] }
 0x8f6   :  { %v4050_v33 = vpop.eup %4049  ;;  %v2879_v43 = vpack.c.bf16 %v2760_v0, %v2760_v0  ;;  %v6987_v0 = vld [vmem:[#allocation42_spill] sm:$0xff] }
 0x8f7   :  { %v4052_v40 = vpop.eup %4051  ;;  %v2857_v4 = vadd.f32 1.0, %v4050_v33  ;;  %v6988_v33 = vld [vmem:[#allocation43_spill] sm:$0xff] }
 0x8f8   :  { %v2863_v46 = vadd.f32 1.0, %v4052_v40  ;;  %2912 = vmatprep.mubr.bf16.mxu1 %v2879_v43  ;;  %2953 = vmatprep.mubr.bf16.mxu0 %v2879_v43  ;;  %v4054_v16 = vpop.eup %4053  ;;  %v6989_v43 = vld [vmem:[#allocation44_spill] sm:$0xff]  ;;  %v6990_v40 = vld [vmem:[#allocation45_spill] sm:$0xff] }
 0x8f9   :  { %4057 = vrcp.f32 %v2857_v4  ;;  %v4056_v5 = vpop.eup %4055  ;;  %v2870_v31 = vadd.f32 1.0, %v4054_v16  ;;  %v6991_v4 = vld [vmem:[#allocation46_spill] sm:$0xff]  ;;  %v6993_v16 = vld [vmem:[#allocation48_spill] sm:$0xff] }
 0x8fa   :  { %4059 = vrcp.f32 %v2863_v46  ;;  %v6992_v46 = vld [vmem:[#allocation47_spill] sm:$0xff] }
 0x8fb   :  { %4061 = vrcp.f32 %v2870_v31  ;;  %v6996_v31 = vld [vmem:[#allocation18_spill] sm:$0xff] }
 0x903   :  { %v4058_v37 = vpop.eup %4057 }
 0x904   :  { %v4060_v61 = vpop.eup %4059  ;;  %v2874_v24 = vmul.f32 %v4058_v37, %v4056_v5  ;;  %v6994_v5 = vld [vmem:[#allocation49_spill] sm:$0xff]  ;;  %v6995_v37 = vld [vmem:[#allocation50_spill] sm:$0xff] }
 0x905   :  { %v2873_v11 = vmul.f32 %v4060_v61, %v5765_v34  ;;  %v4062_v51 = vpop.eup %4061  ;;  %v6959_v34 = vld [vmem:[#allocation29_spill] sm:$0xff] }
 0x907   :  { %v6035_v13 = vadd.f32 %v2874_v24, %v2873_v11 }
 0x909   :  { %4063 = vtanh.f32 %v6035_v13 }
 0x913   :  { %v4064_v44 = vpop.eup %4063 }
 0x914   :  { %v2877_v27 = vmul.f32 %v4064_v44, %v4062_v51 }
 0x916   :  { %v2878_v15 = vpack.c.bf16 %v2877_v27, %v2877_v27  ;;  %v6997_v27 = vld [vmem:[#allocation19_spill] sm:$0xff] }
 0x918   :  { %2913 = vmatmul.mubr.bf16.vlgmr.msra.gmra.mrb[68].mxu1 %v2878_v15  ;;  %2954 = vmatmul.mubr.bf16.vlgmr.msra.gmra.mrb[84].mxu0 %v2878_v15 }
 0x919   :  { %2994 = vmatpush1.bf16.msra.mxu1 %v5618_v55  ;;  %3035 = vmatpush1.bf16.msra.mxu0 %v5621_v23  ;;  %v6943_v55 = vld [vmem:[#allocation71_spill] sm:$0xff]  ;;  %v6944_v23 = vld [vmem:[#allocation72_spill] sm:$0xff] }
 0x91a   :  { %2995 = vmatprep.subr.bf16.mxu1 %v5624_v53  ;;  %3036 = vmatprep.subr.bf16.mxu0 %v5627_v26  ;;  %v6945_v53 = vld [vmem:[#allocation73_spill] sm:$0xff]  ;;  %v6946_v26 = vld [vmem:[#allocation22_spill] sm:$0xff] }
 0x91b   :  { %3025 = vmatprep.mubr.bf16.mxu1 %v6594_v19  ;;  %3066 = vmatprep.mubr.bf16.mxu0 %v6594_v19  ;;  %v6942_v19 = vld [vmem:[#allocation70_spill] sm:$0xff] }
 0x91d   :  { %2996 = vmatpush1.bf16.msra.mxu1 %v5632_v59  ;;  %3037 = vmatpush1.bf16.msra.mxu0 %v5635_v42  ;;  %v6947_v59 = vld [vmem:[#allocation78_spill] sm:$0xff]  ;;  %v6948_v42 = vld [vmem:[#allocation79_spill] sm:$0xff] }
 0x91e   :  { %2997 = vmatprep.subr.bf16.mxu1 %v5638_v6  ;;  %3038 = vmatprep.subr.bf16.mxu0 %v5641_v58  ;;  %v6949_v6 = vld [vmem:[#allocation80_spill] sm:$0xff]  ;;  %v6950_v58 = vld [vmem:[#allocation81_spill] sm:$0xff] }
 0x921   :  { %2998 = vmatpush1.bf16.msra.mxu1 %v5644_v9  ;;  %3039 = vmatpush1.bf16.msra.mxu0 %v5647_v10  ;;  %v6951_v9 = vld [vmem:[#allocation82_spill] sm:$0xff]  ;;  %v6952_v10 = vld [vmem:[#allocation83_spill] sm:$0xff] }
 0x922   :  { %2999 = vmatprep.subr.bf16.mxu1 %v5650_v62  ;;  %3040 = vmatprep.subr.bf16.mxu0 %v5653_v7  ;;  %v6953_v62 = vld [vmem:[#allocation84_spill] sm:$0xff]  ;;  %v6954_v7 = vld [vmem:[#allocation85_spill] sm:$0xff] }
 0x925   :  { %3000 = vmatpush1.bf16.msra.mxu1 %v5656_v54  ;;  %3041 = vmatpush1.bf16.msra.mxu0 %v5659_v29  ;;  %v6955_v54 = vld [vmem:[#allocation25_spill] sm:$0xff]  ;;  %v6956_v29 = vld [vmem:[#allocation26_spill] sm:$0xff] }
 0x926   :  { %3001 = vmatprep.subr.bf16.mxu1 %v5662_v20  ;;  %3042 = vmatprep.subr.bf16.mxu0 %v5665_v48  ;;  %v6957_v20 = vld [vmem:[#allocation27_spill] sm:$0xff]  ;;  %v6958_v48 = vld [vmem:[#allocation28_spill] sm:$0xff] }
 0x929   :  { %3002 = vmatpush1.bf16.msra.mxu1 %v5786_v8  ;;  %3043 = vmatpush1.bf16.msra.mxu0 %v5789_v32  ;;  %v6960_v8 = vld [vmem:[#allocation30_spill] sm:$0xff]  ;;  %v6961_v32 = vld [vmem:[#allocation31_spill] sm:$0xff] }
 0x92a   :  { %3003 = vmatprep.subr.bf16.mxu1 %v5792_v50  ;;  %3044 = vmatprep.subr.bf16.mxu0 %v5795_v36  ;;  %v6962_v50 = vld [vmem:[#allocation32_spill] sm:$0xff]  ;;  %v6963_v36 = vld [vmem:[#allocation33_spill] sm:$0xff] }
 0x92d   :  { %3004 = vmatpush1.bf16.msra.mxu1 %v5798_v25  ;;  %3045 = vmatpush1.bf16.msra.mxu0 %v5801_v47  ;;  %v6964_v25 = vld [vmem:[#allocation34_spill] sm:$0xff]  ;;  %v6965_v47 = vld [vmem:[#allocation35_spill] sm:$0xff] }
 0x92e   :  { %3005 = vmatprep.subr.bf16.mxu1 %v5804_v35  ;;  %3046 = vmatprep.subr.bf16.mxu0 %v5807_v49  ;;  %v6966_v35 = vld [vmem:[#allocation13_spill] sm:$0xff]  ;;  %v6967_v49 = vld [vmem:[#allocation14_spill] sm:$0xff] }
 0x931   :  { %3006 = vmatpush1.bf16.msra.mxu1 %v5810_v38  ;;  %3047 = vmatpush1.bf16.msra.mxu0 %v5813_v18  ;;  %v6968_v38 = vld [vmem:[#allocation16_spill] sm:$0xff]  ;;  %v6969_v18 = vld [vmem:[#allocation17_spill] sm:$0xff] }
 0x932   :  { %3007 = vmatprep.subr.bf16.mxu1 %v5816_v28  ;;  %3048 = vmatprep.subr.bf16.mxu0 %v5819_v21  ;;  %v6970_v28 = vld [vmem:[#allocation15_spill] sm:$0xff] }
 0x933   :  { %v6971_v21 = vld [vmem:[#allocation23_spill] sm:$0xff] }
 0x935   :  { %3008 = vmatpush1.bf16.msra.mxu1 %v5822_v14  ;;  %3049 = vmatpush1.bf16.msra.mxu0 %v5825_v2  ;;  %v6972_v14 = vld [vmem:[#allocation24_spill] sm:$0xff]  ;;  %v6973_v2 = vld [vmem:[#allocation86_spill] sm:$0xff] }
 0x936   :  { %3105 = vmatprep.subr.bf16.mxu1 %v5828_v41  ;;  %3146 = vmatprep.subr.bf16.mxu0 %v5831_v60  ;;  %v6974_v41 = vld [vmem:[#allocation87_spill] sm:$0xff]  ;;  %v6975_v60 = vld [vmem:[#allocation88_spill] sm:$0xff] }
 0x938   :  { %3026 = vmatmul.mubr.bf16.vlgmr.msra.gmra.mrb[72].mxu1 %v2878_v15  ;;  %3067 = vmatmul.mubr.bf16.vlgmr.msra.gmra.mrb[88].mxu0 %v2878_v15 }
 0x939   :  { %3106 = vmatpush1.bf16.msra.mxu1 %v5834_v45  ;;  %3147 = vmatpush1.bf16.msra.mxu0 %v5837_v3  ;;  %v6976_v45 = vld [vmem:[#allocation89_spill] sm:$0xff]  ;;  %v6977_v3 = vld [vmem:[#allocation74_spill] sm:$0xff] }
 0x93a   :  { %3107 = vmatprep.subr.bf16.mxu1 %v5840_v22  ;;  %3148 = vmatprep.subr.bf16.mxu0 %v5843_v52  ;;  %v6978_v22 = vld [vmem:[#allocation75_spill] sm:$0xff]  ;;  %v6979_v52 = vld [vmem:[#allocation76_spill] sm:$0xff] }
 0x93d   :  { %3108 = vmatpush1.bf16.msra.mxu1 %v5846_v56  ;;  %3149 = vmatpush1.bf16.msra.mxu0 %v5849_v57  ;;  %v6980_v56 = vld [vmem:[#allocation77_spill] sm:$0xff]  ;;  %v6981_v57 = vld [vmem:[#allocation36_spill] sm:$0xff] }
 0x93e   :  { %3109 = vmatprep.subr.bf16.mxu1 %v5852_v63  ;;  %3150 = vmatprep.subr.bf16.mxu0 %v5855_v1  ;;  %v6982_v63 = vld [vmem:[#allocation37_spill] sm:$0xff]  ;;  %v6983_v1 = vld [vmem:[#allocation38_spill] sm:$0xff] }
 0x941   :  { %3110 = vmatpush1.bf16.msra.mxu1 %v6942_v19  ;;  %3151 = vmatpush1.bf16.msra.mxu0 %v6943_v55 }
 0x942   :  { %3111 = vmatprep.subr.bf16.mxu1 %v6944_v23  ;;  %3152 = vmatprep.subr.bf16.mxu0 %v6945_v53 }
 0x945   :  { %3112 = vmatpush1.bf16.msra.mxu1 %v6946_v26  ;;  %3153 = vmatpush1.bf16.msra.mxu0 %v6947_v59 }
 0x946   :  { %3113 = vmatprep.subr.bf16.mxu1 %v6948_v42  ;;  %3154 = vmatprep.subr.bf16.mxu0 %v6949_v6  ;;  %v6998_v42 = vld [vmem:[#allocation20_spill] sm:$0xff] }
 0x949   :  { %3114 = vmatpush1.bf16.msra.mxu1 %v6950_v58  ;;  %3155 = vmatpush1.bf16.msra.mxu0 %v6951_v9  ;;  %v6999_v9 = vld [vmem:[#allocation21_spill] sm:$0xff] }
 0x94a   :  { %3115 = vmatprep.subr.bf16.mxu1 %v6952_v10  ;;  %3156 = vmatprep.subr.bf16.mxu0 %v6953_v62 }
 0x94d   :  { %3116 = vmatpush1.bf16.msra.mxu1 %v6954_v7  ;;  %3157 = vmatpush1.bf16.msra.mxu0 %v6955_v54 }
 0x94e   :  { %3117 = vmatprep.subr.bf16.mxu1 %v6956_v29  ;;  %3158 = vmatprep.subr.bf16.mxu0 %v6957_v20 }
 0x951   :  { %3118 = vmatpush1.bf16.msra.mxu1 %v6958_v48  ;;  %3159 = vmatpush1.bf16.msra.mxu0 %v6959_v34 }
 0x952   :  { %3119 = vmatprep.subr.bf16.mxu1 %v6960_v8  ;;  %3160 = vmatprep.subr.bf16.mxu0 %v6961_v32 }
 0x955   :  { %3120 = vmatpush1.bf16.msra.mxu1 %v6962_v50  ;;  %3161 = vmatpush1.bf16.msra.mxu0 %v6963_v36 }
 0x956   :  { %3121 = vmatprep.subr.bf16.mxu1 %v6964_v25  ;;  %3162 = vmatprep.subr.bf16.mxu0 %v6965_v47 }
 0x959   :  { %3122 = vmatpush1.bf16.msra.mxu1 %v6966_v35  ;;  %3163 = vmatpush1.bf16.msra.mxu0 %v6967_v49  ;;  %v7000_v49 = vld [vmem:[#allocation98_spill] sm:$0xff] }
 0x95a   :  { %3123 = vmatprep.subr.bf16.mxu1 %v6968_v38  ;;  %3164 = vmatprep.subr.bf16.mxu0 %v6969_v18  ;;  %v7001_v18 = vld [vmem:[#allocation99_spill] sm:$0xff] }
 0x95d   :  { %3124 = vmatpush1.bf16.msra.mxu1 %v6970_v28  ;;  %3165 = vmatpush1.bf16.msra.mxu0 %v6971_v21 }
 0x95e   :  { %3125 = vmatprep.subr.bf16.mxu1 %v6972_v14  ;;  %3166 = vmatprep.subr.bf16.mxu0 %v6973_v2  ;;  %v7002_v2 = vld [vmem:[#allocation100_spill] sm:$0xff] }
 0x961   :  { %3126 = vmatpush1.bf16.msra.mxu1 %v6974_v41  ;;  %3167 = vmatpush1.bf16.msra.mxu0 %v6975_v60  ;;  %v7003_v60 = vld [vmem:[#allocation101_spill] sm:$0xff] }
 0x962   :  { %3127 = vmatprep.subr.bf16.mxu1 %v6976_v45  ;;  %3168 = vmatprep.subr.bf16.mxu0 %v6977_v3 }
 0x965   :  { %3128 = vmatpush1.bf16.msra.mxu1 %v6978_v22  ;;  %3169 = vmatpush1.bf16.msra.mxu0 %v6979_v52 }
 0x966   :  { %3129 = vmatprep.subr.bf16.mxu1 %v6980_v56  ;;  %3170 = vmatprep.subr.bf16.mxu0 %v6981_v57 }
 0x969   :  { %3130 = vmatpush1.bf16.msra.mxu1 %v6982_v63  ;;  %3171 = vmatpush1.bf16.msra.mxu0 %v6983_v1 }
 0x96a   :  { %3131 = vmatprep.subr.bf16.mxu1 %v6984_v30  ;;  %3172 = vmatprep.subr.bf16.mxu0 %v6985_v17 }
 0x96d   :  { %3132 = vmatpush1.bf16.msra.mxu1 %v6986_v12  ;;  %3173 = vmatpush1.bf16.msra.mxu0 %v6987_v0 }
 0x96e   :  { %3133 = vmatprep.subr.bf16.mxu1 %v6988_v33  ;;  %3174 = vmatprep.subr.bf16.mxu0 %v6989_v43 }
 0x971   :  { %3134 = vmatpush1.bf16.msra.mxu1 %v6990_v40  ;;  %3175 = vmatpush1.bf16.msra.mxu0 %v6991_v4 }
 0x972   :  { %3135 = vmatprep.subr.bf16.mxu1 %v6992_v46  ;;  %3176 = vmatprep.subr.bf16.mxu0 %v6993_v16 }
 0x975   :  { %3136 = vmatpush1.bf16.msra.mxu1 %v6994_v5  ;;  %3177 = vmatpush1.bf16.msra.mxu0 %v6995_v37 }
 0x9eb   :  { %v2914_v61 = vpop.f32.mrb[68].mxu1  ;;  %v2955_v24 = vpop.f32.mrb[84].mxu0 }
 0x9ec   :  { %v2915_v11 = vadd.f32 %v2914_v61, %v6996_v31  ;;  %v2916_v51 = vpop.f32.mrb[69].mxu1  ;;  %v2957_v44 = vpop.f32.mrb[85].mxu0  ;;  %v2956_v10 = vadd.f32 %v2955_v24, %v6999_v9 }
 0x9ed   :  { %v2917_v15 = vadd.f32 %v2916_v51, %v6997_v27  ;;  %v2918_v19 = vpop.f32.mrb[70].mxu1  ;;  %v2959_v55 = vpop.f32.mrb[86].mxu0  ;;  %v2958_v6 = vadd.f32 %v2957_v44, %v6998_v42 }
 0x9ee   :  { %v3552_v23 = vmul.f32 -1.442695, %v2915_v11  ;;  %v2919_v53 = vpop.f32.mrb[71].mxu1  ;;  %v2960_v26 = vpop.f32.mrb[87].mxu0  ;;  %v3849_v55 = vld [vmem:[%s6199_s8] sm:$0xff]  }
 0x9ef   :  { %v3553_v59 = vmul.f32 -1.442695, %v2917_v15  ;;  %v3554_v58 = vmul.f32 -1.442695, %v2958_v6  ;;  %v3851_v53 = vld [vmem:[%s6199_s8 + $0x10] sm:$0xff]   ;;  %v3852_v26 = vld [vmem:[%s6199_s8 + $0x18] sm:$0xff]  }
 0x9f0   :  { %4065 = vpow2.f32 %v3552_v23  ;;  %v4406_v23 = vmov 0.0   ;;  %v3854_v6 = vld [vmem:[%s6199_s8 + $0x28] sm:$0xff]  }
 0x9f1   :  { %4067 = vpow2.f32 %v3553_v59  ;;  %3579 = vmatprep.subr.bf16.mxu1 %v4406_v23  ;;  %v3853_v59 = vld [vmem:[%s6199_s8 + $0x20] sm:$0xff]  }
 0x9f2   :  { %4069 = vpow2.f32 %v3554_v58  ;;  %v3855_v58 = vld [vmem:[%s6199_s8 + $0x30] sm:$0xff]  }
 0x9f3   :  { %4071 = vtanh.f32 %v2956_v10  ;;  %v3856_v10 = vld [vmem:[%s6199_s8 + $0x38] sm:$0xff]  }
 0x9fa   :  { %v4066_v62 = vpop.eup %4065 }
 0x9fb   :  { %v4068_v7 = vpop.eup %4067  ;;  %v2965_v54 = vadd.f32 1.0, %v4066_v62 }
 0x9fc   :  { %v2971_v29 = vadd.f32 1.0, %v4068_v7  ;;  %v4070_v20 = vpop.eup %4069 }
 0x9fd   :  { %4073 = vrcp.f32 %v2965_v54  ;;  %v4072_v48 = vpop.eup %4071  ;;  %v2978_v50 = vadd.f32 1.0, %v4070_v20 }
 0x9fe   :  { %4075 = vrcp.f32 %v2971_v29 }
 0x9ff   :  { %4077 = vrcp.f32 %v2978_v50 }
 0xa07   :  { %v4074_v34 = vpop.eup %4073 }
 0xa08   :  { %v4076_v8 = vpop.eup %4075  ;;  %v2982_v32 = vmul.f32 %v4074_v34, %v4072_v48 }
 0xa09   :  { %v2981_v36 = vmul.f32 %v4076_v8, %v6027_v39  ;;  %v4078_v63 = vpop.eup %4077 }
 0xa0b   :  { %v3027_v25 = vpop.f32.mrb[72].mxu1  ;;  %v3068_v47 = vpop.f32.mrb[88].mxu0  ;;  %v6139_v35 = vadd.f32 %v2982_v32, %v2981_v36 }
 0xa0c   :  { %v3075_v38 = vadd.f32 %v3027_v25, %v7000_v49  ;;  %v3077_v28 = vadd.f32 %v3068_v47, %v7001_v18  ;;  %v3029_v21 = vpop.f32.mrb[73].mxu1  ;;  %v3070_v14 = vpop.f32.mrb[89].mxu0 }
 0xa0d   :  { %v3076_v41 = vadd.f32 %v3029_v21, %v7002_v2  ;;  %v3078_v45 = vadd.f32 %v3070_v14, %v7003_v60  ;;  %v3031_v3 = vpop.f32.mrb[74].mxu1  ;;  %v3072_v22 = vpop.f32.mrb[90].mxu0  ;;  %4079 = vtanh.f32 %v6139_v35 }
 0xa0e   :  { %v3555_v39 = vmul.f32 -1.442695, %v3075_v38  ;;  %v3032_v52 = vpop.f32.mrb[75].mxu1  ;;  %v3073_v56 = vpop.f32.mrb[91].mxu0 }
 0xa0f   :  { %v3556_v57 = vmul.f32 -1.442695, %v3076_v41  ;;  %v3557_v30 = vmul.f32 -1.442695, %v3078_v45  ;;  %v3561_v56 = vld [vmem:[%s6200_s9] ss:$0 sm:$0xff] }
 0xa10   :  { %4081 = vpow2.f32 %v3555_v39 }
 0xa11   :  { %4083 = vpow2.f32 %v3556_v57 }
 0xa12   :  { %4085 = vpow2.f32 %v3557_v30 }
 0xa13   :  { %4087 = vtanh.f32 %v3077_v28 }
 0xa17   :  { %v4080_v1 = vpop.eup %4079 }
 0xa18   :  { %v2985_v17 = vmul.f32 %v4080_v1, %v4078_v63 }
 0xa1a   :  { %v4082_v12 = vpop.eup %4081  ;;  %v3104_v0 = vpack.c.bf16 %v2985_v17, %v2985_v17 }
 0xa1b   :  { %v4084_v33 = vpop.eup %4083  ;;  %v3082_v43 = vadd.f32 1.0, %v4082_v12 }
 0xa1c   :  { %v3088_v40 = vadd.f32 1.0, %v4084_v33  ;;  %3137 = vmatprep.mubr.bf16.mxu1 %v3104_v0  ;;  %3178 = vmatprep.mubr.bf16.mxu0 %v3104_v0  ;;  %v4086_v4 = vpop.eup %4085 }
 0xa1d   :  { %4089 = vrcp.f32 %v3082_v43  ;;  %v4088_v46 = vpop.eup %4087  ;;  %v3095_v61 = vadd.f32 1.0, %v4086_v4 }
 0xa1e   :  { %4091 = vrcp.f32 %v3088_v40 }
 0xa1f   :  { %4093 = vrcp.f32 %v3095_v61 }
 0xa27   :  { %v4090_v16 = vpop.eup %4089 }
 0xa28   :  { %v4092_v5 = vpop.eup %4091  ;;  %v3099_v37 = vmul.f32 %v4090_v16, %v4088_v46 }
 0xa29   :  { %v3098_v24 = vmul.f32 %v4092_v5, %v6035_v13  ;;  %v4094_v51 = vpop.eup %4093  ;;  %v3850_v13 = vld [vmem:[%s6199_s8 + $0x8] sm:$0xff]  }
 0xa2b   :  { %v3100_v11 = vadd.f32 %v3099_v37, %v3098_v24 }
 0xa2d   :  { %4095 = vtanh.f32 %v3100_v11 }
 0xa37   :  { %v4096_v44 = vpop.eup %4095 }
 0xa38   :  { %v3102_v15 = vmul.f32 %v4096_v44, %v4094_v51 }
 0xa3a   :  { %v3103_v19 = vpack.c.bf16 %v3102_v15, %v3102_v15 }
 0xa3c   :  { %3138 = vmatmul.mubr.bf16.vlgmr.msra.gmra.mrb[76].mxu1 %v3103_v19  ;;  %3179 = vmatmul.mubr.bf16.vlgmr.msra.gmra.mrb[92].mxu0 %v3103_v19 }
 0xa3d   :  { %3580 = vmatpush3.bf16.msra.mxu1 %v3849_v55  ;;  %3595 = vmatprep.mubr.msk.bf16.mxu1 %vm4407_vm2, %v4406_v23 }
 0xa3e   :  { %3581 = vmatprep.subr.bf16.mxu1 %v4406_v23 }
 0xa41   :  { %3582 = vmatpush3.bf16.msra.mxu1 %v3850_v13 }
 0xa42   :  { %3583 = vmatprep.subr.bf16.mxu1 %v4406_v23 }
 0xa45   :  { %3584 = vmatpush3.bf16.msra.mxu1 %v3851_v53 }
 0xa46   :  { %3585 = vmatprep.subr.bf16.mxu1 %v4406_v23 }
 0xa49   :  { %3586 = vmatpush3.bf16.msra.mxu1 %v3852_v26 }
 0xa4a   :  { %3587 = vmatprep.subr.bf16.mxu1 %v4406_v23 }
 0xa4d   :  { %3588 = vmatpush3.bf16.msra.mxu1 %v3853_v59 }
 0xa4e   :  { %3589 = vmatprep.subr.bf16.mxu1 %v4406_v23 }
 0xa51   :  { %3590 = vmatpush3.bf16.msra.mxu1 %v3854_v6 }
 0xa52   :  { %3591 = vmatprep.subr.bf16.mxu1 %v4406_v23 }
 0xa55   :  { %3592 = vmatpush3.bf16.msra.mxu1 %v3855_v58 }
 0xa56   :  { %3593 = vmatprep.subr.bf16.mxu1 %v4406_v23 }
 0xa59   :  { %3594 = vmatpush3.bf16.msra.mxu1 %v3856_v10 }
 0xb0f   :  { %v3139_v62 = vpop.f32.mrb[76].mxu1  ;;  %v3180_v7 = vpop.f32.mrb[92].mxu0 }
 0xb10   :  { %v3140_v54 = vadd.f32 %v3139_v62, %v6996_v31  ;;  %v3141_v29 = vpop.f32.mrb[77].mxu1  ;;  %v3182_v20 = vpop.f32.mrb[93].mxu0  ;;  %v3181_v38 = vadd.f32 %v3180_v7, %v6999_v9 }
 0xb11   :  { %v3142_v48 = vadd.f32 %v3141_v29, %v6997_v27  ;;  %v3143_v34 = vpop.f32.mrb[78].mxu1  ;;  %v3184_v8 = vpop.f32.mrb[94].mxu0  ;;  %v3183_v47 = vadd.f32 %v3182_v20, %v6998_v42 }
 0xb12   :  { %v3558_v32 = vmul.f32 -1.442695, %v3140_v54  ;;  %v3144_v50 = vpop.f32.mrb[79].mxu1  ;;  %v3185_v36 = vpop.f32.mrb[95].mxu0 }
 0xb13   :  { %v3559_v25 = vmul.f32 -1.442695, %v3142_v48  ;;  %v3560_v49 = vmul.f32 -1.442695, %v3183_v47 }
 0xb14   :  { %4097 = vpow2.f32 %v3558_v32 }
 0xb15   :  { %4099 = vpow2.f32 %v3559_v25 }
 0xb16   :  { %4101 = vpow2.f32 %v3560_v49 }
 0xb17   :  { %4103 = vtanh.f32 %v3181_v38 }
 0xb1e   :  { %v4098_v18 = vpop.eup %4097 }
 0xb1f   :  { %v4100_v28 = vpop.eup %4099  ;;  %v3190_v31 = vadd.f32 1.0, %v4098_v18 }
 0xb20   :  { %v3196_v21 = vadd.f32 1.0, %v4100_v28  ;;  %v4102_v27 = vpop.eup %4101 }
 0xb21   :  { %4105 = vrcp.f32 %v3190_v31  ;;  %v4104_v14 = vpop.eup %4103  ;;  %v3203_v45 = vadd.f32 1.0, %v4102_v27 }
 0xb22   :  { %4107 = vrcp.f32 %v3196_v21 }
 0xb23   :  { %4109 = vrcp.f32 %v3203_v45 }
 0xb2b   :  { %v4106_v2 = vpop.eup %4105 }
 0xb2c   :  { %v4108_v41 = vpop.eup %4107  ;;  %v3207_v60 = vmul.f32 %v4106_v2, %v4104_v14 }
 0xb2d   :  { %v3206_v3 = vmul.f32 %v4108_v41, %v6139_v35  ;;  %v4110_v9 = vpop.eup %4109 }
 0xb2f   :  { %v3208_v42 = vadd.f32 %v3207_v60, %v3206_v3 }
 0xb31   :  { %4111 = vtanh.f32 %v3208_v42 }
 0xb3b   :  { %v4112_v22 = vpop.eup %4111 }
 0xb3c   :  { %v3210_v39 = vmul.f32 %v4112_v22, %v4110_v9 }
 0xb3e   :  { %v3211_v52 = vpack.c.bf16 %v3210_v39, %v3210_v39 }
 0xb40   :  { %3596 = vmatmul.mubr.bf16.vlgmr.msra.gmra.mrb[80].mxu1 %v3211_v52 }
 0xc13   :  { %v3317_v57 = vpop.f32.mrb[80].mxu1 }
 0xc14   :  { %v3318_v63 = vadd.f32 %v3561_v56, %v3317_v57  ;;  %v3597_v1 = vpop.f32.mrb[81].mxu1 }
 0xc15   :  { %v3320_v30 = vpop.f32.mrb[82].mxu1 }
 0xc16   :  { %3323 = vst [vmem:[#allocation9] sm:$0xff] %v3318_v63  ;;  %v3598_v35 = vpop.f32.mrb[83].mxu1 }
 0xc17   :  { %4382 = shalt.err (!%p4379_p0)
}
 0xc18   :  { %s4383_s9 = scalar_lea.hbm %s6201_s10, 128 }
 0xc19   :  { %p4384_p1 = scmp.ne.s32.totalorder %s6201_s10, %s4383_s9  ;;  %p4387_p2 = scmp.lt.u32.totalorder %s4383_s9, %s6201_s10 }
 0xc1b   :  { %p4389_p3 = pnand %p4387_p2, %p4384_p1 }
 0xc1d   :  { %4392 = shalt.err (!%p4389_p3)
}
 0xc1e   :  { %3333 = dma.vmem_to_hbm [thread:$0]  %s3331_s21, 128, %s6201_s10, [#allocation5]  }
 0xc1f   :  { %4397 = dma.done.wait [#allocation5], 128  }
 0xc20   :  { %4398 = vsyncadd [#allocation5], 4294967168 }
 0xc21   :  { %3337 = vsyncpa [#allocation4], 1 }
 0xc22   :  { %3338 = vsyncpa [#allocation7], 1 }
 0xc23   :  { %3339 = vsyncpa [#allocation5], 1 }

</bundles_post_ra>
